<compile_context>
chip_gen: v5e
topology: v5e:2x2
jax: 0.10.0
libtpu: 0.0.40
codegen_flags: <defaults>
</compile_context>

<pallas_src>
import functools
import math

import jax
import jax.numpy as jnp
from jax.experimental import pallas as pl
from jax.experimental.pallas import tpu as pltpu

_N_FIXED = 4      # src, pe, p_left, p_right
_N_WEIGHTS = 34   # 8 (encoder) + 12 (decoder1) + 12 (decoder2) + 2 (fcn)


# ---------------------------- fused forward kernel ---------------------------

def _tranad_fused_kernel(*refs, n_head):
    n_in = _N_FIXED + _N_WEIGHTS
    src_ref, pe_ref, plft_ref, prgt_ref = refs[:_N_FIXED]
    x1_ref, x2_ref = refs[n_in], refs[n_in + 1]

    (e_wqkv, e_bqkv, e_wo, e_bo, e_w1, e_b1, e_w2, e_b2,
     d1s_wqkv, d1s_bqkv, d1s_wo, d1s_bo,
     d1c_wqkv, d1c_bqkv, d1c_wo, d1c_bo,
     d1_w1, d1_b1, d1_w2, d1_b2,
     d2s_wqkv, d2s_bqkv, d2s_wo, d2s_bo,
     d2c_wqkv, d2c_bqkv, d2c_wo, d2c_bo,
     d2_w1, d2_b1, d2_w2, d2_b2,
     f_w, f_b) = [r[...] for r in refs[_N_FIXED:n_in]]
    del d1s_wqkv, d2s_wqkv  # unused: decoder self-attn collapses on a zero target

    src = src_ref[...]        # (TB, S, F)  batch tile
    pe = pe_ref[...]          # (TB, 1, E)  its positional-encoding rows
    p_left = plft_ref[...]    # (F, E) = sqrt(d_model) * [I | 0]
    p_right = prgt_ref[...]   # (F, E) = sqrt(d_model) * [0 | I]

    TB, S, F = src.shape
    E = pe.shape[-1]
    H = n_head
    hd = E // H
    scale = 1.0 / math.sqrt(hd)
    f32 = jnp.float32

    def lin(x, w_t, b):                       # x:(...,K) @ w_t:(K,N) + b:(1,N)
        return jnp.dot(x, w_t, preferred_element_type=f32) + b

    # nn.LeakyReLU(True): negative_slope == True == 1.0  ->  identity, so the
    # FFN activation is omitted everywhere below.

    def softmax_last(s):
        m = jnp.max(s, axis=-1, keepdims=True)
        e = jnp.exp(s - m)
        return e * pl.reciprocal(jnp.sum(e, axis=-1, keepdims=True), approx=True)

    def mha_self(x, wqkv, bqkv, wo, bo):
        # nn.MultiheadAttention self-attention, batched over the batch tile.
        # wqkv = in_proj_weight.T (E, 3E); wo = out_proj.weight.T (E, E).
        qkv = lin(x, wqkv, bqkv)                                   # (TB, S, 3E)
        acc = None
        for h in range(H):                                         # heads stay in VMEM
            q = qkv[..., h * hd:(h + 1) * hd] * scale
            k = qkv[..., E + h * hd:E + (h + 1) * hd]
            v = qkv[..., 2 * E + h * hd:2 * E + (h + 1) * hd]
            s = jnp.einsum('bqd,bkd->bqk', q, k,
                           preferred_element_type=f32)             # (TB, S, S)
            p = softmax_last(s)
            oh = jnp.einsum('bqk,bkd->bqd', p, v,
                            preferred_element_type=f32)            # (TB, S, hd)
            # out_proj folded per head: concat_h(O_h) @ Wo.T == sum_h O_h @ Wo.T[h]
            c = jnp.dot(oh, wo[h * hd:(h + 1) * hd, :],
                        preferred_element_type=f32)
            acc = c if acc is None else acc + c
        return acc + bo

    def enc_layer(x):
        x = x + mha_self(x, e_wqkv, e_bqkv, e_wo, e_bo)            # residual, no LayerNorm
        x = x + lin(lin(x, e_w1, e_b1), e_w2, e_b2)
        return x

    def encode(c):
        # cat((src, c), -1) * sqrt(d_model) + pe, expressed as two selector
        # matmuls (the sqrt(d_model) scale is folded into p_left / p_right).
        x = jnp.dot(src, p_left, preferred_element_type=f32) + pe  # (TB, S, E)
        if c is not None:
            x = x + jnp.dot(c, p_right, preferred_element_type=f32)
        return enc_layer(x)

    def decoder_row(mem, s_bqkv, s_wo, s_bo,
                    c_wqkv, c_bqkv, c_wo, c_bo, w1, b1, w2, b2):
        # The decoder target is identically zero (module constructs it that way)
        # and there is no target pos-encoding / mask, so every decoder query row
        # is identical and the whole decoder output is one row per batch element.
        #   self-attn(0): q=k=v are the bias rows; attention over identical value
        #   rows returns v exactly  ->  out = bv @ Wo + bo  (softmax drops out).
        bv = s_bqkv[:, 2 * E:3 * E]                                        # (1, E)
        r = jnp.dot(bv, s_wo, preferred_element_type=f32) + s_bo           # (1, E)
        x = jnp.broadcast_to(r, (TB, 1, E))                                # 0 + self_attn
        # cross-attn: constant query row per batch element against memory.
        q = lin(x, c_wqkv[:, 0:E], c_bqkv[:, 0:E])                         # (TB, 1, E)
        kv = lin(mem, c_wqkv[:, E:3 * E], c_bqkv[:, E:3 * E])              # (TB, S, 2E)
        acc = None
        for h in range(H):
            qh = q[..., h * hd:(h + 1) * hd] * scale                       # (TB, 1, hd)
            kh = kv[..., h * hd:(h + 1) * hd]                              # (TB, S, hd)
            vh = kv[..., E + h * hd:E + (h + 1) * hd]                      # (TB, S, hd)
            s = jnp.einsum('bqd,bkd->bqk', qh, kh,
                           preferred_element_type=f32)                     # (TB, 1, S)
            p = softmax_last(s)
            oh = jnp.einsum('bqk,bkd->bqd', p, vh,
                            preferred_element_type=f32)                    # (TB, 1, hd)
            c = jnp.dot(oh, c_wo[h * hd:(h + 1) * hd, :],
                        preferred_element_type=f32)
            acc = c if acc is None else acc + c
        x = x + acc + c_bo
        x = x + lin(lin(x, w1, b1), w2, b2)
        return x                                                           # (TB, 1, E)

    def fcn(x):                       # nn.Linear(d_model, feats) + nn.Sigmoid
        y = lin(x, f_w, f_b)
        return 1.0 / (1.0 + jnp.exp(-y))

    # -------- pass 1: c1 = zeros --------
    mem1 = encode(None)
    row1 = decoder_row(mem1, d1s_bqkv, d1s_wo, d1s_bo,
                       d1c_wqkv, d1c_bqkv, d1c_wo, d1c_bo,
                       d1_w1, d1_b1, d1_w2, d1_b2)
    x1_row = fcn(row1)                                             # (TB, 1, F)
    x1_ref[...] = jnp.broadcast_to(x1_row, (TB, S, F))

    # -------- pass 2: self-conditioning c2 = (x1 - src)^2 --------
    c2 = (x1_row - src) ** 2                                       # (TB, S, F)
    mem2 = encode(c2)
    row2 = decoder_row(mem2, d2s_bqkv, d2s_wo, d2s_bo,
                       d2c_wqkv, d2c_bqkv, d2c_wo, d2c_bo,
                       d2_w1, d2_b1, d2_w2, d2_b2)
    x2_ref[...] = jnp.broadcast_to(fcn(row2), (TB, S, F))


# --------------------------------- wrapper -----------------------------------

def _flat_weights(params):
    def attn(a): return [a["wqkv"], a["bqkv"], a["wo"], a["bo"]]
    def ffn(f): return [f["w1"], f["b1"], f["w2"], f["b2"]]
    return (attn(params["enc"]["attn"]) + ffn(params["enc"]["ffn"])
            + attn(params["dec1"]["self_attn"]) + attn(params["dec1"]["cross_attn"])
            + ffn(params["dec1"]["ffn"])
            + attn(params["dec2"]["self_attn"]) + attn(params["dec2"]["cross_attn"])
            + ffn(params["dec2"]["ffn"])
            + [params["fcn_w"], params["fcn_b"]])


def _batch_tile(B):
    # Largest divisor of B that is <= 8: whole-batch when small, tiled when big.
    for tb in (8, 4, 2, 1):
        if tb <= B and B % tb == 0:
            return tb
    return 1


@jax.jit
def tranad_forward(src, params):
    """Forward of TranAD_SelfConditioning; returns (x1, x2), each (B, S, feats)."""
    B, S, F = src.shape
    E = 2 * F
    n_head = 2 if (F > 1 and E % 2 == 0) else 1
    if E % n_head != 0:
        n_head = 1

    src = src.astype(jnp.float32)
    # PositionalEncoding is applied before the permute -> indexed by batch (B <= n_window).
    pe_b = params["pe"][:B].reshape(B, 1, E)

    weights = _flat_weights(params)
    assert len(weights) == _N_WEIGHTS
    inputs = [src, pe_b, params["p_left"], params["p_right"], *weights]

    tb = _batch_tile(B)
    grid = (B // tb,)

    in_specs = [
        pl.BlockSpec((tb, S, F), lambda b: (b, 0, 0)),   # src: one batch tile / step
        pl.BlockSpec((tb, 1, E), lambda b: (b, 0, 0)),   # its positional-encoding rows
        pl.BlockSpec((F, E), lambda b: (0, 0)),          # p_left  (sqrt(d)*[I|0])
        pl.BlockSpec((F, E), lambda b: (0, 0)),          # p_right (sqrt(d)*[0|I])
    ]
    # Whole pre-transposed weights, VMEM-resident; constant index_map -> DMA'd once.
    in_specs += [pl.BlockSpec(w.shape, lambda b: (0, 0)) for w in weights]

    out_spec = pl.BlockSpec((tb, S, F), lambda b: (b, 0, 0))
    out_shape = (jax.ShapeDtypeStruct((B, S, F), jnp.float32),
                 jax.ShapeDtypeStruct((B, S, F), jnp.float32))

    return pl.pallas_call(
        functools.partial(_tranad_fused_kernel, n_head=n_head),
        out_shape=out_shape,
        grid=grid,
        in_specs=in_specs,
        out_specs=(out_spec, out_spec),
        compiler_params=pltpu.CompilerParams(
            dimension_semantics=("parallel",),           # batch tiles -> both TCs on v7x
            vmem_limit_bytes=32 * 1024 * 1024,           # explicit, well within budget
        ),
    )(*inputs)


# ------------------------ deterministic parameter init -----------------------

def _uniform(key, shape, bound):
    return jax.random.uniform(key, shape, jnp.float32, -bound, bound)


def _positional_encoding(max_len, d_model):
    # TranAD's PositionalEncoding: sin and cos summed over ALL d_model columns.
    pos = jnp.arange(max_len, dtype=jnp.float32)[:, None]
    div = jnp.exp(jnp.arange(d_model, dtype=jnp.float32)
                  * (-math.log(10000.0) / d_model))
    ang = pos * div
    return jnp.sin(ang) + jnp.cos(ang)                   # (max_len, d_model)


def _init_mha(key, E):
    k1, k2, k3 = jax.random.split(key, 3)
    b = 1.0 / math.sqrt(E)
    return dict(wqkv=_uniform(k1, (E, 3 * E), b),        # in_proj_weight.T (pre-transposed)
                bqkv=_uniform(k2, (1, 3 * E), b),
                wo=_uniform(k3, (E, E), b),              # out_proj.weight.T
                bo=jnp.zeros((1, E), jnp.float32))       # torch zero-inits out_proj bias


def _init_ffn(key, E, FF):
    k1, k2, k3, k4 = jax.random.split(key, 4)
    return dict(w1=_uniform(k1, (E, FF), 1.0 / math.sqrt(E)),    # linear1.weight.T
                b1=_uniform(k2, (1, FF), 1.0 / math.sqrt(E)),
                w2=_uniform(k3, (FF, E), 1.0 / math.sqrt(FF)),   # linear2.weight.T
                b2=_uniform(k4, (1, E), 1.0 / math.sqrt(FF)))


def init_params(key, *, feats, n_window, dim_feedforward=16):
    E = 2 * feats
    keys = jax.random.split(key, 10)
    sqrt_d = math.sqrt(float(E))
    eye = jnp.eye(feats, dtype=jnp.float32) * sqrt_d
    zero = jnp.zeros((feats, feats), jnp.float32)
    return dict(
        pe=_positional_encoding(n_window, E),            # (n_window, E)
        p_left=jnp.concatenate([eye, zero], axis=1),     # sqrt(d) * [I | 0]
        p_right=jnp.concatenate([zero, eye], axis=1),    # sqrt(d) * [0 | I]
        enc=dict(attn=_init_mha(keys[0], E), ffn=_init_ffn(keys[1], E, dim_feedforward)),
        dec1=dict(self_attn=_init_mha(keys[2], E),
                  cross_attn=_init_mha(keys[3], E),
                  ffn=_init_ffn(keys[4], E, dim_feedforward)),
        dec2=dict(self_attn=_init_mha(keys[5], E),
                  cross_attn=_init_mha(keys[6], E),
                  ffn=_init_ffn(keys[7], E, dim_feedforward)),
        fcn_w=_uniform(keys[8], (E, feats), 1.0 / math.sqrt(E)),   # fcn[0].weight.T
        fcn_b=_uniform(keys[9], (1, feats), 1.0 / math.sqrt(E)),
    )


# --------------------------- plain-JAX reference ------------------------------

def _reference_forward(src, params):
    """Non-Pallas reference of the same forward, full (un-collapsed) decoder.

    Used only for verification — in particular it validates the kernel's
    zero-target decoder row-reduction against the general computation.
    """
    B, S, F = src.shape
    E = 2 * F
    H = 2 if (F > 1 and E % 2 == 0) else 1
    if E % H != 0:
        H = 1
    hd = E // H
    sqrt_d = math.sqrt(float(E))

    def lin(x, w, b): return x @ w + b

    def mha(xq, xkv, a):
        q = lin(xq, a["wqkv"][:, :E], a["bqkv"][:, :E])
        k = lin(xkv, a["wqkv"][:, E:2 * E], a["bqkv"][:, E:2 * E])
        v = lin(xkv, a["wqkv"][:, 2 * E:], a["bqkv"][:, 2 * E:])
        heads = []
        for h in range(H):
            sl = slice(h * hd, (h + 1) * hd)
            s = (q[:, sl] / math.sqrt(hd)) @ k[:, sl].T
            heads.append(jax.nn.softmax(s, axis=-1) @ v[:, sl])
        return jnp.concatenate(heads, axis=-1) @ a["wo"] + a["bo"]

    def ffn(x, f):                                     # LeakyReLU(True) == identity
        return lin(lin(x, f["w1"], f["b1"]), f["w2"], f["b2"])

    def enc_layer(x):
        x = x + mha(x, x, params["enc"]["attn"])
        return x + ffn(x, params["enc"]["ffn"])

    def dec_layer(x, mem, p):
        x = x + mha(x, x, p["self_attn"])
        x = x + mha(x, mem, p["cross_attn"])
        return x + ffn(x, p["ffn"])

    def fcn(x):
        return jax.nn.sigmoid(lin(x, params["fcn_w"], params["fcn_b"]))

    x1s, x2s = [], []
    for b in range(B):
        s_b = src[b]
        pe_b = params["pe"][b][None, :]
        tgt = jnp.zeros((S, E), jnp.float32)

        mem1 = enc_layer(jnp.concatenate([s_b, jnp.zeros_like(s_b)], -1) * sqrt_d + pe_b)
        x1 = fcn(dec_layer(tgt, mem1, params["dec1"]))

        c2 = (x1 - s_b) ** 2
        mem2 = enc_layer(jnp.concatenate([s_b, c2], -1) * sqrt_d + pe_b)
        x2 = fcn(dec_layer(tgt, mem2, params["dec2"]))

        x1s.append(x1)
        x2s.append(x2)
    return jnp.stack(x1s), jnp.stack(x2s)


# ----------------------------------- main -------------------------------------

if __name__ == "__main__":
    feats = 8        # -> d_model = 16, n_head = 2, head_dim = 8, dim_feedforward = 16
    n_window = 10
    batch = 2

    key = jax.random.PRNGKey(0)
    k_param, k_data = jax.random.split(key)
    params = init_params(k_param, feats=feats, n_window=n_window)
    src = jax.random.uniform(k_data, (batch, n_window, feats), jnp.float32)

    x1, x2 = tranad_forward(src, params)
    (x1, x2) = jax.block_until_ready((x1, x2))

    assert x1.shape == (batch, n_window, feats), x1.shape
    assert x2.shape == (batch, n_window, feats), x2.shape
    assert bool(jnp.all(jnp.isfinite(x1))) and bool(jnp.all(jnp.isfinite(x2)))

    # Verify against a plain-JAX reference running the full (un-collapsed)
    # decoder (tolerance covers the approximate softmax reciprocal in-kernel).
    r1, r2 = jax.jit(_reference_forward)(src, params)
    err = max(float(jnp.max(jnp.abs(x1 - r1))), float(jnp.max(jnp.abs(x2 - r2))))
    assert err < 2e-2, f"mismatch vs reference: max abs err = {err}"

    print("KERNEL_OK")
</pallas_src>

<mosaic_0001>
module attributes {stable_mosaic.version = 11 : i64} {
  func.func @_tranad_fused_kernel(%arg0: i32, %arg1: memref<2x10x8xf32, #tpu.memory_space<vmem>>, %arg2: memref<2x1x16xf32, #tpu.memory_space<vmem>>, %arg3: memref<8x16xf32, #tpu.memory_space<vmem>>, %arg4: memref<8x16xf32, #tpu.memory_space<vmem>>, %arg5: memref<16x48xf32, #tpu.memory_space<vmem>>, %arg6: memref<1x48xf32, #tpu.memory_space<vmem>>, %arg7: memref<16x16xf32, #tpu.memory_space<vmem>>, %arg8: memref<1x16xf32, #tpu.memory_space<vmem>>, %arg9: memref<16x16xf32, #tpu.memory_space<vmem>>, %arg10: memref<1x16xf32, #tpu.memory_space<vmem>>, %arg11: memref<16x16xf32, #tpu.memory_space<vmem>>, %arg12: memref<1x16xf32, #tpu.memory_space<vmem>>, %arg13: memref<16x48xf32, #tpu.memory_space<vmem>>, %arg14: memref<1x48xf32, #tpu.memory_space<vmem>>, %arg15: memref<16x16xf32, #tpu.memory_space<vmem>>, %arg16: memref<1x16xf32, #tpu.memory_space<vmem>>, %arg17: memref<16x48xf32, #tpu.memory_space<vmem>>, %arg18: memref<1x48xf32, #tpu.memory_space<vmem>>, %arg19: memref<16x16xf32, #tpu.memory_space<vmem>>, %arg20: memref<1x16xf32, #tpu.memory_space<vmem>>, %arg21: memref<16x16xf32, #tpu.memory_space<vmem>>, %arg22: memref<1x16xf32, #tpu.memory_space<vmem>>, %arg23: memref<16x16xf32, #tpu.memory_space<vmem>>, %arg24: memref<1x16xf32, #tpu.memory_space<vmem>>, %arg25: memref<16x48xf32, #tpu.memory_space<vmem>>, %arg26: memref<1x48xf32, #tpu.memory_space<vmem>>, %arg27: memref<16x16xf32, #tpu.memory_space<vmem>>, %arg28: memref<1x16xf32, #tpu.memory_space<vmem>>, %arg29: memref<16x48xf32, #tpu.memory_space<vmem>>, %arg30: memref<1x48xf32, #tpu.memory_space<vmem>>, %arg31: memref<16x16xf32, #tpu.memory_space<vmem>>, %arg32: memref<1x16xf32, #tpu.memory_space<vmem>>, %arg33: memref<16x16xf32, #tpu.memory_space<vmem>>, %arg34: memref<1x16xf32, #tpu.memory_space<vmem>>, %arg35: memref<16x16xf32, #tpu.memory_space<vmem>>, %arg36: memref<1x16xf32, #tpu.memory_space<vmem>>, %arg37: memref<16x8xf32, #tpu.memory_space<vmem>>, %arg38: memref<1x8xf32, #tpu.memory_space<vmem>>, %arg39: memref<2x10x8xf32, #tpu.memory_space<vmem>>, %arg40: memref<2x10x8xf32, #tpu.memory_space<vmem>>) attributes {dimension_semantics = [#tpu.dimension_semantics<parallel>], iteration_bounds = array<i64: 1>, scalar_prefetch = 0 : i64, scratch_operands = 0 : i64, tpu.core_type = #tpu.core_type<tc>, window_params = [{transform_indices = @transform_0, window_bounds = array<i64: 2, 10, 8>}, {transform_indices = @transform_1, window_bounds = array<i64: 2, 1, 16>}, {pipeline_mode = #tpu.pipeline_mode<synchronous>, transform_indices = @transform_2, window_bounds = array<i64: 8, 16>}, {pipeline_mode = #tpu.pipeline_mode<synchronous>, transform_indices = @transform_3, window_bounds = array<i64: 8, 16>}, {pipeline_mode = #tpu.pipeline_mode<synchronous>, transform_indices = @transform_4, window_bounds = array<i64: 16, 48>}, {pipeline_mode = #tpu.pipeline_mode<synchronous>, transform_indices = @transform_5, window_bounds = array<i64: 1, 48>}, {pipeline_mode = #tpu.pipeline_mode<synchronous>, transform_indices = @transform_6, window_bounds = array<i64: 16, 16>}, {pipeline_mode = #tpu.pipeline_mode<synchronous>, transform_indices = @transform_7, window_bounds = array<i64: 1, 16>}, {pipeline_mode = #tpu.pipeline_mode<synchronous>, transform_indices = @transform_8, window_bounds = array<i64: 16, 16>}, {pipeline_mode = #tpu.pipeline_mode<synchronous>, transform_indices = @transform_9, window_bounds = array<i64: 1, 16>}, {pipeline_mode = #tpu.pipeline_mode<synchronous>, transform_indices = @transform_10, window_bounds = array<i64: 16, 16>}, {pipeline_mode = #tpu.pipeline_mode<synchronous>, transform_indices = @transform_11, window_bounds = array<i64: 1, 16>}, {pipeline_mode = #tpu.pipeline_mode<synchronous>, transform_indices = @transform_12, window_bounds = array<i64: 16, 48>}, {pipeline_mode = #tpu.pipeline_mode<synchronous>, transform_indices = @transform_13, window_bounds = array<i64: 1, 48>}, {pipeline_mode = #tpu.pipeline_mode<synchronous>, transform_indices = @transform_14, window_bounds = array<i64: 16, 16>}, {pipeline_mode = #tpu.pipeline_mode<synchronous>, transform_indices = @transform_15, window_bounds = array<i64: 1, 16>}, {pipeline_mode = #tpu.pipeline_mode<synchronous>, transform_indices = @transform_16, window_bounds = array<i64: 16, 48>}, {pipeline_mode = #tpu.pipeline_mode<synchronous>, transform_indices = @transform_17, window_bounds = array<i64: 1, 48>}, {pipeline_mode = #tpu.pipeline_mode<synchronous>, transform_indices = @transform_18, window_bounds = array<i64: 16, 16>}, {pipeline_mode = #tpu.pipeline_mode<synchronous>, transform_indices = @transform_19, window_bounds = array<i64: 1, 16>}, {pipeline_mode = #tpu.pipeline_mode<synchronous>, transform_indices = @transform_20, window_bounds = array<i64: 16, 16>}, {pipeline_mode = #tpu.pipeline_mode<synchronous>, transform_indices = @transform_21, window_bounds = array<i64: 1, 16>}, {pipeline_mode = #tpu.pipeline_mode<synchronous>, transform_indices = @transform_22, window_bounds = array<i64: 16, 16>}, {pipeline_mode = #tpu.pipeline_mode<synchronous>, transform_indices = @transform_23, window_bounds = array<i64: 1, 16>}, {pipeline_mode = #tpu.pipeline_mode<synchronous>, transform_indices = @transform_24, window_bounds = array<i64: 16, 48>}, {pipeline_mode = #tpu.pipeline_mode<synchronous>, transform_indices = @transform_25, window_bounds = array<i64: 1, 48>}, {pipeline_mode = #tpu.pipeline_mode<synchronous>, transform_indices = @transform_26, window_bounds = array<i64: 16, 16>}, {pipeline_mode = #tpu.pipeline_mode<synchronous>, transform_indices = @transform_27, window_bounds = array<i64: 1, 16>}, {pipeline_mode = #tpu.pipeline_mode<synchronous>, transform_indices = @transform_28, window_bounds = array<i64: 16, 48>}, {pipeline_mode = #tpu.pipeline_mode<synchronous>, transform_indices = @transform_29, window_bounds = array<i64: 1, 48>}, {pipeline_mode = #tpu.pipeline_mode<synchronous>, transform_indices = @transform_30, window_bounds = array<i64: 16, 16>}, {pipeline_mode = #tpu.pipeline_mode<synchronous>, transform_indices = @transform_31, window_bounds = array<i64: 1, 16>}, {pipeline_mode = #tpu.pipeline_mode<synchronous>, transform_indices = @transform_32, window_bounds = array<i64: 16, 16>}, {pipeline_mode = #tpu.pipeline_mode<synchronous>, transform_indices = @transform_33, window_bounds = array<i64: 1, 16>}, {pipeline_mode = #tpu.pipeline_mode<synchronous>, transform_indices = @transform_34, window_bounds = array<i64: 16, 16>}, {pipeline_mode = #tpu.pipeline_mode<synchronous>, transform_indices = @transform_35, window_bounds = array<i64: 1, 16>}, {pipeline_mode = #tpu.pipeline_mode<synchronous>, transform_indices = @transform_36, window_bounds = array<i64: 16, 8>}, {pipeline_mode = #tpu.pipeline_mode<synchronous>, transform_indices = @transform_37, window_bounds = array<i64: 1, 8>}, {transform_indices = @transform_38, window_bounds = array<i64: 2, 10, 8>}, {transform_indices = @transform_39, window_bounds = array<i64: 2, 10, 8>}]} {
    %c0 = arith.constant 0 : index
    %c0_0 = arith.constant 0 : index
    %0 = vector.load %arg5[%c0, %c0_0] : memref<16x48xf32, #tpu.memory_space<vmem>>, vector<16x48xf32>
    %c0_1 = arith.constant 0 : index
    %c0_2 = arith.constant 0 : index
    %1 = vector.load %arg6[%c0_1, %c0_2] : memref<1x48xf32, #tpu.memory_space<vmem>>, vector<1x48xf32>
    %c0_3 = arith.constant 0 : index
    %c0_4 = arith.constant 0 : index
    %2 = vector.load %arg7[%c0_3, %c0_4] : memref<16x16xf32, #tpu.memory_space<vmem>>, vector<16x16xf32>
    %c0_5 = arith.constant 0 : index
    %c0_6 = arith.constant 0 : index
    %3 = vector.load %arg8[%c0_5, %c0_6] : memref<1x16xf32, #tpu.memory_space<vmem>>, vector<1x16xf32>
    %c0_7 = arith.constant 0 : index
    %c0_8 = arith.constant 0 : index
    %4 = vector.load %arg9[%c0_7, %c0_8] : memref<16x16xf32, #tpu.memory_space<vmem>>, vector<16x16xf32>
    %c0_9 = arith.constant 0 : index
    %c0_10 = arith.constant 0 : index
    %5 = vector.load %arg10[%c0_9, %c0_10] : memref<1x16xf32, #tpu.memory_space<vmem>>, vector<1x16xf32>
    %c0_11 = arith.constant 0 : index
    %c0_12 = arith.constant 0 : index
    %6 = vector.load %arg11[%c0_11, %c0_12] : memref<16x16xf32, #tpu.memory_space<vmem>>, vector<16x16xf32>
    %c0_13 = arith.constant 0 : index
    %c0_14 = arith.constant 0 : index
    %7 = vector.load %arg12[%c0_13, %c0_14] : memref<1x16xf32, #tpu.memory_space<vmem>>, vector<1x16xf32>
    %c0_15 = arith.constant 0 : index
    %c0_16 = arith.constant 0 : index
    %8 = vector.load %arg14[%c0_15, %c0_16] : memref<1x48xf32, #tpu.memory_space<vmem>>, vector<1x48xf32>
    %c0_17 = arith.constant 0 : index
    %c0_18 = arith.constant 0 : index
    %9 = vector.load %arg15[%c0_17, %c0_18] : memref<16x16xf32, #tpu.memory_space<vmem>>, vector<16x16xf32>
    %c0_19 = arith.constant 0 : index
    %c0_20 = arith.constant 0 : index
    %10 = vector.load %arg16[%c0_19, %c0_20] : memref<1x16xf32, #tpu.memory_space<vmem>>, vector<1x16xf32>
    %c0_21 = arith.constant 0 : index
    %c0_22 = arith.constant 0 : index
    %11 = vector.load %arg17[%c0_21, %c0_22] : memref<16x48xf32, #tpu.memory_space<vmem>>, vector<16x48xf32>
    %c0_23 = arith.constant 0 : index
    %c0_24 = arith.constant 0 : index
    %12 = vector.load %arg18[%c0_23, %c0_24] : memref<1x48xf32, #tpu.memory_space<vmem>>, vector<1x48xf32>
    %c0_25 = arith.constant 0 : index
    %c0_26 = arith.constant 0 : index
    %13 = vector.load %arg19[%c0_25, %c0_26] : memref<16x16xf32, #tpu.memory_space<vmem>>, vector<16x16xf32>
    %c0_27 = arith.constant 0 : index
    %c0_28 = arith.constant 0 : index
    %14 = vector.load %arg20[%c0_27, %c0_28] : memref<1x16xf32, #tpu.memory_space<vmem>>, vector<1x16xf32>
    %c0_29 = arith.constant 0 : index
    %c0_30 = arith.constant 0 : index
    %15 = vector.load %arg21[%c0_29, %c0_30] : memref<16x16xf32, #tpu.memory_space<vmem>>, vector<16x16xf32>
    %c0_31 = arith.constant 0 : index
    %c0_32 = arith.constant 0 : index
    %16 = vector.load %arg22[%c0_31, %c0_32] : memref<1x16xf32, #tpu.memory_space<vmem>>, vector<1x16xf32>
    %c0_33 = arith.constant 0 : index
    %c0_34 = arith.constant 0 : index
    %17 = vector.load %arg23[%c0_33, %c0_34] : memref<16x16xf32, #tpu.memory_space<vmem>>, vector<16x16xf32>
    %c0_35 = arith.constant 0 : index
    %c0_36 = arith.constant 0 : index
    %18 = vector.load %arg24[%c0_35, %c0_36] : memref<1x16xf32, #tpu.memory_space<vmem>>, vector<1x16xf32>
    %c0_37 = arith.constant 0 : index
    %c0_38 = arith.constant 0 : index
    %19 = vector.load %arg26[%c0_37, %c0_38] : memref<1x48xf32, #tpu.memory_space<vmem>>, vector<1x48xf32>
    %c0_39 = arith.constant 0 : index
    %c0_40 = arith.constant 0 : index
    %20 = vector.load %arg27[%c0_39, %c0_40] : memref<16x16xf32, #tpu.memory_space<vmem>>, vector<16x16xf32>
    %c0_41 = arith.constant 0 : index
    %c0_42 = arith.constant 0 : index
    %21 = vector.load %arg28[%c0_41, %c0_42] : memref<1x16xf32, #tpu.memory_space<vmem>>, vector<1x16xf32>
    %c0_43 = arith.constant 0 : index
    %c0_44 = arith.constant 0 : index
    %22 = vector.load %arg29[%c0_43, %c0_44] : memref<16x48xf32, #tpu.memory_space<vmem>>, vector<16x48xf32>
    %c0_45 = arith.constant 0 : index
    %c0_46 = arith.constant 0 : index
    %23 = vector.load %arg30[%c0_45, %c0_46] : memref<1x48xf32, #tpu.memory_space<vmem>>, vector<1x48xf32>
    %c0_47 = arith.constant 0 : index
    %c0_48 = arith.constant 0 : index
    %24 = vector.load %arg31[%c0_47, %c0_48] : memref<16x16xf32, #tpu.memory_space<vmem>>, vector<16x16xf32>
    %c0_49 = arith.constant 0 : index
    %c0_50 = arith.constant 0 : index
    %25 = vector.load %arg32[%c0_49, %c0_50] : memref<1x16xf32, #tpu.memory_space<vmem>>, vector<1x16xf32>
    %c0_51 = arith.constant 0 : index
    %c0_52 = arith.constant 0 : index
    %26 = vector.load %arg33[%c0_51, %c0_52] : memref<16x16xf32, #tpu.memory_space<vmem>>, vector<16x16xf32>
    %c0_53 = arith.constant 0 : index
    %c0_54 = arith.constant 0 : index
    %27 = vector.load %arg34[%c0_53, %c0_54] : memref<1x16xf32, #tpu.memory_space<vmem>>, vector<1x16xf32>
    %c0_55 = arith.constant 0 : index
    %c0_56 = arith.constant 0 : index
    %28 = vector.load %arg35[%c0_55, %c0_56] : memref<16x16xf32, #tpu.memory_space<vmem>>, vector<16x16xf32>
    %c0_57 = arith.constant 0 : index
    %c0_58 = arith.constant 0 : index
    %29 = vector.load %arg36[%c0_57, %c0_58] : memref<1x16xf32, #tpu.memory_space<vmem>>, vector<1x16xf32>
    %c0_59 = arith.constant 0 : index
    %c0_60 = arith.constant 0 : index
    %30 = vector.load %arg37[%c0_59, %c0_60] : memref<16x8xf32, #tpu.memory_space<vmem>>, vector<16x8xf32>
    %c0_61 = arith.constant 0 : index
    %c0_62 = arith.constant 0 : index
    %31 = vector.load %arg38[%c0_61, %c0_62] : memref<1x8xf32, #tpu.memory_space<vmem>>, vector<1x8xf32>
    %c0_63 = arith.constant 0 : index
    %c0_64 = arith.constant 0 : index
    %c0_65 = arith.constant 0 : index
    %32 = vector.load %arg1[%c0_63, %c0_64, %c0_65] : memref<2x10x8xf32, #tpu.memory_space<vmem>>, vector<2x10x8xf32>
    %c0_66 = arith.constant 0 : index
    %c0_67 = arith.constant 0 : index
    %c0_68 = arith.constant 0 : index
    %33 = vector.load %arg2[%c0_66, %c0_67, %c0_68] : memref<2x1x16xf32, #tpu.memory_space<vmem>>, vector<2x1x16xf32>
    %c0_69 = arith.constant 0 : index
    %c0_70 = arith.constant 0 : index
    %34 = vector.load %arg3[%c0_69, %c0_70] : memref<8x16xf32, #tpu.memory_space<vmem>>, vector<8x16xf32>
    %c0_71 = arith.constant 0 : index
    %c0_72 = arith.constant 0 : index
    %35 = vector.load %arg4[%c0_71, %c0_72] : memref<8x16xf32, #tpu.memory_space<vmem>>, vector<8x16xf32>
    %cst = arith.constant dense<0.000000e+00> : vector<2x10x16xf32>
    %36 = tpu.matmul %32, %34, %cst {dimension_numbers = #tpu.dot_dimension_numbers<[2], [0], [0, 1], [1], [0, 0, 0, 1, 1, 1], [], []>} : vector<2x10x8xf32>, vector<8x16xf32>, vector<2x10x16xf32> -> vector<2x10x16xf32>
    %37 = vector.broadcast %33 : vector<2x1x16xf32> to vector<2x10x16xf32>
    %38 = arith.addf %36, %37 : vector<2x10x16xf32>
    %cst_73 = arith.constant dense<0.000000e+00> : vector<2x10x48xf32>
    %39 = tpu.matmul %38, %0, %cst_73 {dimension_numbers = #tpu.dot_dimension_numbers<[2], [0], [0, 1], [1], [0, 0, 0, 1, 1, 1], [], []>} : vector<2x10x16xf32>, vector<16x48xf32>, vector<2x10x48xf32> -> vector<2x10x48xf32>
    %40 = vector.shape_cast %1 : vector<1x48xf32> to vector<1x1x48xf32>
    %41 = vector.broadcast %40 : vector<1x1x48xf32> to vector<2x10x48xf32>
    %42 = arith.addf %39, %41 : vector<2x10x48xf32>
    %43 = vector.extract_strided_slice %42 {offsets = [0, 0, 0], sizes = [2, 10, 8], strides = [1, 1, 1]} : vector<2x10x48xf32> to vector<2x10x8xf32>
    %cst_74 = arith.constant 0.353553385 : f32
    %44 = vector.broadcast %cst_74 : f32 to vector<2x10x8xf32>
    %45 = arith.mulf %43, %44 : vector<2x10x8xf32>
    %46 = vector.extract_strided_slice %42 {offsets = [0, 0, 16], sizes = [2, 10, 8], strides = [1, 1, 1]} : vector<2x10x48xf32> to vector<2x10x8xf32>
    %47 = vector.extract_strided_slice %42 {offsets = [0, 0, 32], sizes = [2, 10, 8], strides = [1, 1, 1]} : vector<2x10x48xf32> to vector<2x10x8xf32>
    "tpu.trace_start"() <{level = 10 : i32, message = "bqd,bkd->bqk"}> : () -> ()
    %cst_75 = arith.constant dense<0.000000e+00> : vector<2x10x10xf32>
    %48 = tpu.matmul %45, %46, %cst_75 {dimension_numbers = #tpu.dot_dimension_numbers<[2], [2], [1], [1], [0, 0, 0, 1, 1, 1], [0], [0]>} : vector<2x10x8xf32>, vector<2x10x8xf32>, vector<2x10x10xf32> -> vector<2x10x10xf32>
    "tpu.trace_stop"() : () -> ()
    %cst_76 = arith.constant dense<0xFF800000> : vector<2x10xf32>
    %49 = vector.multi_reduction <maximumf>, %48, %cst_76 [2] : vector<2x10x10xf32> to vector<2x10xf32>
    %50 = vector.shape_cast %49 : vector<2x10xf32> to vector<2x10x1xf32>
    %51 = vector.broadcast %50 : vector<2x10x1xf32> to vector<2x10x10xf32>
    %52 = arith.subf %48, %51 : vector<2x10x10xf32>
    %53 = math.exp %52 : vector<2x10x10xf32>
    %cst_77 = arith.constant dense<0.000000e+00> : vector<2x10xf32>
    %54 = vector.multi_reduction <add>, %53, %cst_77 [2] : vector<2x10x10xf32> to vector<2x10xf32>
    %55 = vector.shape_cast %54 : vector<2x10xf32> to vector<2x10x1xf32>
    %56 = tpu.reciprocal %55 {approx = true} : vector<2x10x1xf32> -> vector<2x10x1xf32>
    %57 = vector.broadcast %56 : vector<2x10x1xf32> to vector<2x10x10xf32>
    %58 = arith.mulf %53, %57 : vector<2x10x10xf32>
    "tpu.trace_start"() <{level = 10 : i32, message = "bqk,bkd->bqd"}> : () -> ()
    %cst_78 = arith.constant dense<0.000000e+00> : vector<2x10x8xf32>
    %59 = tpu.matmul %58, %47, %cst_78 {dimension_numbers = #tpu.dot_dimension_numbers<[2], [1], [1], [2], [0, 0, 0, 1, 1, 2], [0], [0]>} : vector<2x10x10xf32>, vector<2x10x8xf32>, vector<2x10x8xf32> -> vector<2x10x8xf32>
    "tpu.trace_stop"() : () -> ()
    %60 = vector.extract_strided_slice %2 {offsets = [0, 0], sizes = [8, 16], strides = [1, 1]} : vector<16x16xf32> to vector<8x16xf32>
    %cst_79 = arith.constant dense<0.000000e+00> : vector<2x10x16xf32>
    %61 = tpu.matmul %59, %60, %cst_79 {dimension_numbers = #tpu.dot_dimension_numbers<[2], [0], [0, 1], [1], [0, 0, 0, 1, 1, 1], [], []>} : vector<2x10x8xf32>, vector<8x16xf32>, vector<2x10x16xf32> -> vector<2x10x16xf32>
    %62 = vector.extract_strided_slice %42 {offsets = [0, 0, 8], sizes = [2, 10, 8], strides = [1, 1, 1]} : vector<2x10x48xf32> to vector<2x10x8xf32>
    %cst_80 = arith.constant 0.353553385 : f32
    %63 = vector.broadcast %cst_80 : f32 to vector<2x10x8xf32>
    %64 = arith.mulf %62, %63 : vector<2x10x8xf32>
    %65 = vector.extract_strided_slice %42 {offsets = [0, 0, 24], sizes = [2, 10, 8], strides = [1, 1, 1]} : vector<2x10x48xf32> to vector<2x10x8xf32>
    %66 = vector.extract_strided_slice %42 {offsets = [0, 0, 40], sizes = [2, 10, 8], strides = [1, 1, 1]} : vector<2x10x48xf32> to vector<2x10x8xf32>
    "tpu.trace_start"() <{level = 10 : i32, message = "bqd,bkd->bqk"}> : () -> ()
    %cst_81 = arith.constant dense<0.000000e+00> : vector<2x10x10xf32>
    %67 = tpu.matmul %64, %65, %cst_81 {dimension_numbers = #tpu.dot_dimension_numbers<[2], [2], [1], [1], [0, 0, 0, 1, 1, 1], [0], [0]>} : vector<2x10x8xf32>, vector<2x10x8xf32>, vector<2x10x10xf32> -> vector<2x10x10xf32>
    "tpu.trace_stop"() : () -> ()
    %cst_82 = arith.constant dense<0xFF800000> : vector<2x10xf32>
    %68 = vector.multi_reduction <maximumf>, %67, %cst_82 [2] : vector<2x10x10xf32> to vector<2x10xf32>
    %69 = vector.shape_cast %68 : vector<2x10xf32> to vector<2x10x1xf32>
    %70 = vector.broadcast %69 : vector<2x10x1xf32> to vector<2x10x10xf32>
    %71 = arith.subf %67, %70 : vector<2x10x10xf32>
    %72 = math.exp %71 : vector<2x10x10xf32>
    %cst_83 = arith.constant dense<0.000000e+00> : vector<2x10xf32>
    %73 = vector.multi_reduction <add>, %72, %cst_83 [2] : vector<2x10x10xf32> to vector<2x10xf32>
    %74 = vector.shape_cast %73 : vector<2x10xf32> to vector<2x10x1xf32>
    %75 = tpu.reciprocal %74 {approx = true} : vector<2x10x1xf32> -> vector<2x10x1xf32>
    %76 = vector.broadcast %75 : vector<2x10x1xf32> to vector<2x10x10xf32>
    %77 = arith.mulf %72, %76 : vector<2x10x10xf32>
    "tpu.trace_start"() <{level = 10 : i32, message = "bqk,bkd->bqd"}> : () -> ()
    %cst_84 = arith.constant dense<0.000000e+00> : vector<2x10x8xf32>
    %78 = tpu.matmul %77, %66, %cst_84 {dimension_numbers = #tpu.dot_dimension_numbers<[2], [1], [1], [2], [0, 0, 0, 1, 1, 2], [0], [0]>} : vector<2x10x10xf32>, vector<2x10x8xf32>, vector<2x10x8xf32> -> vector<2x10x8xf32>
    "tpu.trace_stop"() : () -> ()
    %79 = vector.extract_strided_slice %2 {offsets = [8, 0], sizes = [8, 16], strides = [1, 1]} : vector<16x16xf32> to vector<8x16xf32>
    %cst_85 = arith.constant dense<0.000000e+00> : vector<2x10x16xf32>
    %80 = tpu.matmul %78, %79, %cst_85 {dimension_numbers = #tpu.dot_dimension_numbers<[2], [0], [0, 1], [1], [0, 0, 0, 1, 1, 1], [], []>} : vector<2x10x8xf32>, vector<8x16xf32>, vector<2x10x16xf32> -> vector<2x10x16xf32>
    %81 = arith.addf %61, %80 : vector<2x10x16xf32>
    %82 = vector.shape_cast %3 : vector<1x16xf32> to vector<1x1x16xf32>
    %83 = vector.broadcast %82 : vector<1x1x16xf32> to vector<2x10x16xf32>
    %84 = arith.addf %81, %83 : vector<2x10x16xf32>
    %85 = arith.addf %38, %84 : vector<2x10x16xf32>
    %cst_86 = arith.constant dense<0.000000e+00> : vector<2x10x16xf32>
    %86 = tpu.matmul %85, %4, %cst_86 {dimension_numbers = #tpu.dot_dimension_numbers<[2], [0], [0, 1], [1], [0, 0, 0, 1, 1, 1], [], []>} : vector<2x10x16xf32>, vector<16x16xf32>, vector<2x10x16xf32> -> vector<2x10x16xf32>
    %87 = vector.shape_cast %5 : vector<1x16xf32> to vector<1x1x16xf32>
    %88 = vector.broadcast %87 : vector<1x1x16xf32> to vector<2x10x16xf32>
    %89 = arith.addf %86, %88 : vector<2x10x16xf32>
    %cst_87 = arith.constant dense<0.000000e+00> : vector<2x10x16xf32>
    %90 = tpu.matmul %89, %6, %cst_87 {dimension_numbers = #tpu.dot_dimension_numbers<[2], [0], [0, 1], [1], [0, 0, 0, 1, 1, 1], [], []>} : vector<2x10x16xf32>, vector<16x16xf32>, vector<2x10x16xf32> -> vector<2x10x16xf32>
    %91 = vector.shape_cast %7 : vector<1x16xf32> to vector<1x1x16xf32>
    %92 = vector.broadcast %91 : vector<1x1x16xf32> to vector<2x10x16xf32>
    %93 = arith.addf %90, %92 : vector<2x10x16xf32>
    %94 = arith.addf %85, %93 : vector<2x10x16xf32>
    %95 = vector.extract_strided_slice %8 {offsets = [0, 32], sizes = [1, 16], strides = [1, 1]} : vector<1x48xf32> to vector<1x16xf32>
    %cst_88 = arith.constant dense<0.000000e+00> : vector<1x16xf32>
    %96 = tpu.matmul %95, %9, %cst_88 {dimension_numbers = #tpu.dot_dimension_numbers<[1], [0], [0], [1], [0, 0, 1, 1], [], []>} : vector<1x16xf32>, vector<16x16xf32>, vector<1x16xf32> -> vector<1x16xf32>
    %97 = arith.addf %96, %10 : vector<1x16xf32>
    %98 = vector.shape_cast %97 : vector<1x16xf32> to vector<1x1x16xf32>
    %99 = vector.broadcast %98 : vector<1x1x16xf32> to vector<2x1x16xf32>
    %100 = vector.extract_strided_slice %11 {offsets = [0, 0], sizes = [16, 16], strides = [1, 1]} : vector<16x48xf32> to vector<16x16xf32>
    %101 = vector.extract_strided_slice %12 {offsets = [0, 0], sizes = [1, 16], strides = [1, 1]} : vector<1x48xf32> to vector<1x16xf32>
    %cst_89 = arith.constant dense<0.000000e+00> : vector<2x1x16xf32>
    %102 = tpu.matmul %99, %100, %cst_89 {dimension_numbers = #tpu.dot_dimension_numbers<[2], [0], [0, 1], [1], [0, 0, 0, 1, 1, 1], [], []>} : vector<2x1x16xf32>, vector<16x16xf32>, vector<2x1x16xf32> -> vector<2x1x16xf32>
    %103 = vector.shape_cast %101 : vector<1x16xf32> to vector<1x1x16xf32>
    %104 = vector.broadcast %103 : vector<1x1x16xf32> to vector<2x1x16xf32>
    %105 = arith.addf %102, %104 : vector<2x1x16xf32>
    %106 = vector.extract_strided_slice %11 {offsets = [0, 16], sizes = [16, 32], strides = [1, 1]} : vector<16x48xf32> to vector<16x32xf32>
    %107 = vector.extract_strided_slice %12 {offsets = [0, 16], sizes = [1, 32], strides = [1, 1]} : vector<1x48xf32> to vector<1x32xf32>
    %cst_90 = arith.constant dense<0.000000e+00> : vector<2x10x32xf32>
    %108 = tpu.matmul %94, %106, %cst_90 {dimension_numbers = #tpu.dot_dimension_numbers<[2], [0], [0, 1], [1], [0, 0, 0, 1, 1, 1], [], []>} : vector<2x10x16xf32>, vector<16x32xf32>, vector<2x10x32xf32> -> vector<2x10x32xf32>
    %109 = vector.shape_cast %107 : vector<1x32xf32> to vector<1x1x32xf32>
    %110 = vector.broadcast %109 : vector<1x1x32xf32> to vector<2x10x32xf32>
    %111 = arith.addf %108, %110 : vector<2x10x32xf32>
    %112 = vector.extract_strided_slice %105 {offsets = [0, 0, 0], sizes = [2, 1, 8], strides = [1, 1, 1]} : vector<2x1x16xf32> to vector<2x1x8xf32>
    %cst_91 = arith.constant 0.353553385 : f32
    %113 = vector.broadcast %cst_91 : f32 to vector<2x1x8xf32>
    %114 = arith.mulf %112, %113 : vector<2x1x8xf32>
    %115 = vector.extract_strided_slice %111 {offsets = [0, 0, 0], sizes = [2, 10, 8], strides = [1, 1, 1]} : vector<2x10x32xf32> to vector<2x10x8xf32>
    %116 = vector.extract_strided_slice %111 {offsets = [0, 0, 16], sizes = [2, 10, 8], strides = [1, 1, 1]} : vector<2x10x32xf32> to vector<2x10x8xf32>
    "tpu.trace_start"() <{level = 10 : i32, message = "bqd,bkd->bqk"}> : () -> ()
    %cst_92 = arith.constant dense<0.000000e+00> : vector<2x1x10xf32>
    %117 = tpu.matmul %114, %115, %cst_92 {dimension_numbers = #tpu.dot_dimension_numbers<[2], [2], [1], [1], [0, 0, 0, 1, 1, 1], [0], [0]>} : vector<2x1x8xf32>, vector<2x10x8xf32>, vector<2x1x10xf32> -> vector<2x1x10xf32>
    "tpu.trace_stop"() : () -> ()
    %cst_93 = arith.constant dense<0xFF800000> : vector<2x1xf32>
    %118 = vector.multi_reduction <maximumf>, %117, %cst_93 [2] : vector<2x1x10xf32> to vector<2x1xf32>
    %119 = vector.shape_cast %118 : vector<2x1xf32> to vector<2x1x1xf32>
    %120 = vector.broadcast %119 : vector<2x1x1xf32> to vector<2x1x10xf32>
    %121 = arith.subf %117, %120 : vector<2x1x10xf32>
    %122 = math.exp %121 : vector<2x1x10xf32>
    %cst_94 = arith.constant dense<0.000000e+00> : vector<2x1xf32>
    %123 = vector.multi_reduction <add>, %122, %cst_94 [2] : vector<2x1x10xf32> to vector<2x1xf32>
    %124 = vector.shape_cast %123 : vector<2x1xf32> to vector<2x1x1xf32>
    %125 = tpu.reciprocal %124 {approx = true} : vector<2x1x1xf32> -> vector<2x1x1xf32>
    %126 = vector.broadcast %125 : vector<2x1x1xf32> to vector<2x1x10xf32>
    %127 = arith.mulf %122, %126 : vector<2x1x10xf32>
    "tpu.trace_start"() <{level = 10 : i32, message = "bqk,bkd->bqd"}> : () -> ()
    %cst_95 = arith.constant dense<0.000000e+00> : vector<2x1x8xf32>
    %128 = tpu.matmul %127, %116, %cst_95 {dimension_numbers = #tpu.dot_dimension_numbers<[2], [1], [1], [2], [0, 0, 0, 1, 1, 2], [0], [0]>} : vector<2x1x10xf32>, vector<2x10x8xf32>, vector<2x1x8xf32> -> vector<2x1x8xf32>
    "tpu.trace_stop"() : () -> ()
    %129 = vector.extract_strided_slice %13 {offsets = [0, 0], sizes = [8, 16], strides = [1, 1]} : vector<16x16xf32> to vector<8x16xf32>
    %cst_96 = arith.constant dense<0.000000e+00> : vector<2x1x16xf32>
    %130 = tpu.matmul %128, %129, %cst_96 {dimension_numbers = #tpu.dot_dimension_numbers<[2], [0], [0, 1], [1], [0, 0, 0, 1, 1, 1], [], []>} : vector<2x1x8xf32>, vector<8x16xf32>, vector<2x1x16xf32> -> vector<2x1x16xf32>
    %131 = vector.extract_strided_slice %105 {offsets = [0, 0, 8], sizes = [2, 1, 8], strides = [1, 1, 1]} : vector<2x1x16xf32> to vector<2x1x8xf32>
    %cst_97 = arith.constant 0.353553385 : f32
    %132 = vector.broadcast %cst_97 : f32 to vector<2x1x8xf32>
    %133 = arith.mulf %131, %132 : vector<2x1x8xf32>
    %134 = vector.extract_strided_slice %111 {offsets = [0, 0, 8], sizes = [2, 10, 8], strides = [1, 1, 1]} : vector<2x10x32xf32> to vector<2x10x8xf32>
    %135 = vector.extract_strided_slice %111 {offsets = [0, 0, 24], sizes = [2, 10, 8], strides = [1, 1, 1]} : vector<2x10x32xf32> to vector<2x10x8xf32>
    "tpu.trace_start"() <{level = 10 : i32, message = "bqd,bkd->bqk"}> : () -> ()
    %cst_98 = arith.constant dense<0.000000e+00> : vector<2x1x10xf32>
    %136 = tpu.matmul %133, %134, %cst_98 {dimension_numbers = #tpu.dot_dimension_numbers<[2], [2], [1], [1], [0, 0, 0, 1, 1, 1], [0], [0]>} : vector<2x1x8xf32>, vector<2x10x8xf32>, vector<2x1x10xf32> -> vector<2x1x10xf32>
    "tpu.trace_stop"() : () -> ()
    %cst_99 = arith.constant dense<0xFF800000> : vector<2x1xf32>
    %137 = vector.multi_reduction <maximumf>, %136, %cst_99 [2] : vector<2x1x10xf32> to vector<2x1xf32>
    %138 = vector.shape_cast %137 : vector<2x1xf32> to vector<2x1x1xf32>
    %139 = vector.broadcast %138 : vector<2x1x1xf32> to vector<2x1x10xf32>
    %140 = arith.subf %136, %139 : vector<2x1x10xf32>
    %141 = math.exp %140 : vector<2x1x10xf32>
    %cst_100 = arith.constant dense<0.000000e+00> : vector<2x1xf32>
    %142 = vector.multi_reduction <add>, %141, %cst_100 [2] : vector<2x1x10xf32> to vector<2x1xf32>
    %143 = vector.shape_cast %142 : vector<2x1xf32> to vector<2x1x1xf32>
    %144 = tpu.reciprocal %143 {approx = true} : vector<2x1x1xf32> -> vector<2x1x1xf32>
    %145 = vector.broadcast %144 : vector<2x1x1xf32> to vector<2x1x10xf32>
    %146 = arith.mulf %141, %145 : vector<2x1x10xf32>
    "tpu.trace_start"() <{level = 10 : i32, message = "bqk,bkd->bqd"}> : () -> ()
    %cst_101 = arith.constant dense<0.000000e+00> : vector<2x1x8xf32>
    %147 = tpu.matmul %146, %135, %cst_101 {dimension_numbers = #tpu.dot_dimension_numbers<[2], [1], [1], [2], [0, 0, 0, 1, 1, 2], [0], [0]>} : vector<2x1x10xf32>, vector<2x10x8xf32>, vector<2x1x8xf32> -> vector<2x1x8xf32>
    "tpu.trace_stop"() : () -> ()
    %148 = vector.extract_strided_slice %13 {offsets = [8, 0], sizes = [8, 16], strides = [1, 1]} : vector<16x16xf32> to vector<8x16xf32>
    %cst_102 = arith.constant dense<0.000000e+00> : vector<2x1x16xf32>
    %149 = tpu.matmul %147, %148, %cst_102 {dimension_numbers = #tpu.dot_dimension_numbers<[2], [0], [0, 1], [1], [0, 0, 0, 1, 1, 1], [], []>} : vector<2x1x8xf32>, vector<8x16xf32>, vector<2x1x16xf32> -> vector<2x1x16xf32>
    %150 = arith.addf %130, %149 : vector<2x1x16xf32>
    %151 = arith.addf %99, %150 : vector<2x1x16xf32>
    %152 = vector.shape_cast %14 : vector<1x16xf32> to vector<1x1x16xf32>
    %153 = vector.broadcast %152 : vector<1x1x16xf32> to vector<2x1x16xf32>
    %154 = arith.addf %151, %153 : vector<2x1x16xf32>
    %cst_103 = arith.constant dense<0.000000e+00> : vector<2x1x16xf32>
    %155 = tpu.matmul %154, %15, %cst_103 {dimension_numbers = #tpu.dot_dimension_numbers<[2], [0], [0, 1], [1], [0, 0, 0, 1, 1, 1], [], []>} : vector<2x1x16xf32>, vector<16x16xf32>, vector<2x1x16xf32> -> vector<2x1x16xf32>
    %156 = vector.shape_cast %16 : vector<1x16xf32> to vector<1x1x16xf32>
    %157 = vector.broadcast %156 : vector<1x1x16xf32> to vector<2x1x16xf32>
    %158 = arith.addf %155, %157 : vector<2x1x16xf32>
    %cst_104 = arith.constant dense<0.000000e+00> : vector<2x1x16xf32>
    %159 = tpu.matmul %158, %17, %cst_104 {dimension_numbers = #tpu.dot_dimension_numbers<[2], [0], [0, 1], [1], [0, 0, 0, 1, 1, 1], [], []>} : vector<2x1x16xf32>, vector<16x16xf32>, vector<2x1x16xf32> -> vector<2x1x16xf32>
    %160 = vector.shape_cast %18 : vector<1x16xf32> to vector<1x1x16xf32>
    %161 = vector.broadcast %160 : vector<1x1x16xf32> to vector<2x1x16xf32>
    %162 = arith.addf %159, %161 : vector<2x1x16xf32>
    %163 = arith.addf %154, %162 : vector<2x1x16xf32>
    %cst_105 = arith.constant dense<0.000000e+00> : vector<2x1x8xf32>
    %164 = tpu.matmul %163, %30, %cst_105 {dimension_numbers = #tpu.dot_dimension_numbers<[2], [0], [0, 1], [1], [0, 0, 0, 1, 1, 1], [], []>} : vector<2x1x16xf32>, vector<16x8xf32>, vector<2x1x8xf32> -> vector<2x1x8xf32>
    %165 = vector.shape_cast %31 : vector<1x8xf32> to vector<1x1x8xf32>
    %166 = vector.broadcast %165 : vector<1x1x8xf32> to vector<2x1x8xf32>
    %167 = arith.addf %164, %166 : vector<2x1x8xf32>
    %cst_106 = arith.constant 0.000000e+00 : f32
    %168 = vector.broadcast %cst_106 : f32 to vector<2x1x8xf32>
    %169 = arith.subf %168, %167 : vector<2x1x8xf32>
    %170 = math.exp %169 : vector<2x1x8xf32>
    %cst_107 = arith.constant 1.000000e+00 : f32
    %171 = vector.broadcast %cst_107 : f32 to vector<2x1x8xf32>
    %172 = arith.addf %171, %170 : vector<2x1x8xf32>
    %cst_108 = arith.constant 1.000000e+00 : f32
    %173 = vector.broadcast %cst_108 : f32 to vector<2x1x8xf32>
    %174 = arith.divf %173, %172 : vector<2x1x8xf32>
    %175 = vector.shape_cast %174 : vector<2x1x8xf32> to vector<2x1x8xf32>
    %176 = vector.broadcast %175 : vector<2x1x8xf32> to vector<2x10x8xf32>
    %c0_109 = arith.constant 0 : index
    %c0_110 = arith.constant 0 : index
    %c0_111 = arith.constant 0 : index
    %177 = vector.load %arg39[%c0_109, %c0_110, %c0_111] : memref<2x10x8xf32, #tpu.memory_space<vmem>>, vector<2x10x8xf32>
    tpu.vector_store %arg39[%c0_109, %c0_110, %c0_111], %176 {strides = array<i32>} : memref<2x10x8xf32, #tpu.memory_space<vmem>>, vector<2x10x8xf32>,
    %178 = vector.broadcast %174 : vector<2x1x8xf32> to vector<2x10x8xf32>
    %179 = arith.subf %178, %32 : vector<2x10x8xf32>
    %180 = arith.mulf %179, %179 : vector<2x10x8xf32>
    %cst_112 = arith.constant dense<0.000000e+00> : vector<2x10x16xf32>
    %181 = tpu.matmul %32, %34, %cst_112 {dimension_numbers = #tpu.dot_dimension_numbers<[2], [0], [0, 1], [1], [0, 0, 0, 1, 1, 1], [], []>} : vector<2x10x8xf32>, vector<8x16xf32>, vector<2x10x16xf32> -> vector<2x10x16xf32>
    %182 = vector.broadcast %33 : vector<2x1x16xf32> to vector<2x10x16xf32>
    %183 = arith.addf %181, %182 : vector<2x10x16xf32>
    %cst_113 = arith.constant dense<0.000000e+00> : vector<2x10x16xf32>
    %184 = tpu.matmul %180, %35, %cst_113 {dimension_numbers = #tpu.dot_dimension_numbers<[2], [0], [0, 1], [1], [0, 0, 0, 1, 1, 1], [], []>} : vector<2x10x8xf32>, vector<8x16xf32>, vector<2x10x16xf32> -> vector<2x10x16xf32>
    %185 = arith.addf %183, %184 : vector<2x10x16xf32>
    %cst_114 = arith.constant dense<0.000000e+00> : vector<2x10x48xf32>
    %186 = tpu.matmul %185, %0, %cst_114 {dimension_numbers = #tpu.dot_dimension_numbers<[2], [0], [0, 1], [1], [0, 0, 0, 1, 1, 1], [], []>} : vector<2x10x16xf32>, vector<16x48xf32>, vector<2x10x48xf32> -> vector<2x10x48xf32>
    %187 = vector.shape_cast %1 : vector<1x48xf32> to vector<1x1x48xf32>
    %188 = vector.broadcast %187 : vector<1x1x48xf32> to vector<2x10x48xf32>
    %189 = arith.addf %186, %188 : vector<2x10x48xf32>
    %190 = vector.extract_strided_slice %189 {offsets = [0, 0, 0], sizes = [2, 10, 8], strides = [1, 1, 1]} : vector<2x10x48xf32> to vector<2x10x8xf32>
    %cst_115 = arith.constant 0.353553385 : f32
    %191 = vector.broadcast %cst_115 : f32 to vector<2x10x8xf32>
    %192 = arith.mulf %190, %191 : vector<2x10x8xf32>
    %193 = vector.extract_strided_slice %189 {offsets = [0, 0, 16], sizes = [2, 10, 8], strides = [1, 1, 1]} : vector<2x10x48xf32> to vector<2x10x8xf32>
    %194 = vector.extract_strided_slice %189 {offsets = [0, 0, 32], sizes = [2, 10, 8], strides = [1, 1, 1]} : vector<2x10x48xf32> to vector<2x10x8xf32>
    "tpu.trace_start"() <{level = 10 : i32, message = "bqd,bkd->bqk"}> : () -> ()
    %cst_116 = arith.constant dense<0.000000e+00> : vector<2x10x10xf32>
    %195 = tpu.matmul %192, %193, %cst_116 {dimension_numbers = #tpu.dot_dimension_numbers<[2], [2], [1], [1], [0, 0, 0, 1, 1, 1], [0], [0]>} : vector<2x10x8xf32>, vector<2x10x8xf32>, vector<2x10x10xf32> -> vector<2x10x10xf32>
    "tpu.trace_stop"() : () -> ()
    %cst_117 = arith.constant dense<0xFF800000> : vector<2x10xf32>
    %196 = vector.multi_reduction <maximumf>, %195, %cst_117 [2] : vector<2x10x10xf32> to vector<2x10xf32>
    %197 = vector.shape_cast %196 : vector<2x10xf32> to vector<2x10x1xf32>
    %198 = vector.broadcast %197 : vector<2x10x1xf32> to vector<2x10x10xf32>
    %199 = arith.subf %195, %198 : vector<2x10x10xf32>
    %200 = math.exp %199 : vector<2x10x10xf32>
    %cst_118 = arith.constant dense<0.000000e+00> : vector<2x10xf32>
    %201 = vector.multi_reduction <add>, %200, %cst_118 [2] : vector<2x10x10xf32> to vector<2x10xf32>
    %202 = vector.shape_cast %201 : vector<2x10xf32> to vector<2x10x1xf32>
    %203 = tpu.reciprocal %202 {approx = true} : vector<2x10x1xf32> -> vector<2x10x1xf32>
    %204 = vector.broadcast %203 : vector<2x10x1xf32> to vector<2x10x10xf32>
    %205 = arith.mulf %200, %204 : vector<2x10x10xf32>
    "tpu.trace_start"() <{level = 10 : i32, message = "bqk,bkd->bqd"}> : () -> ()
    %cst_119 = arith.constant dense<0.000000e+00> : vector<2x10x8xf32>
    %206 = tpu.matmul %205, %194, %cst_119 {dimension_numbers = #tpu.dot_dimension_numbers<[2], [1], [1], [2], [0, 0, 0, 1, 1, 2], [0], [0]>} : vector<2x10x10xf32>, vector<2x10x8xf32>, vector<2x10x8xf32> -> vector<2x10x8xf32>
    "tpu.trace_stop"() : () -> ()
    %207 = vector.extract_strided_slice %2 {offsets = [0, 0], sizes = [8, 16], strides = [1, 1]} : vector<16x16xf32> to vector<8x16xf32>
    %cst_120 = arith.constant dense<0.000000e+00> : vector<2x10x16xf32>
    %208 = tpu.matmul %206, %207, %cst_120 {dimension_numbers = #tpu.dot_dimension_numbers<[2], [0], [0, 1], [1], [0, 0, 0, 1, 1, 1], [], []>} : vector<2x10x8xf32>, vector<8x16xf32>, vector<2x10x16xf32> -> vector<2x10x16xf32>
    %209 = vector.extract_strided_slice %189 {offsets = [0, 0, 8], sizes = [2, 10, 8], strides = [1, 1, 1]} : vector<2x10x48xf32> to vector<2x10x8xf32>
    %cst_121 = arith.constant 0.353553385 : f32
    %210 = vector.broadcast %cst_121 : f32 to vector<2x10x8xf32>
    %211 = arith.mulf %209, %210 : vector<2x10x8xf32>
    %212 = vector.extract_strided_slice %189 {offsets = [0, 0, 24], sizes = [2, 10, 8], strides = [1, 1, 1]} : vector<2x10x48xf32> to vector<2x10x8xf32>
    %213 = vector.extract_strided_slice %189 {offsets = [0, 0, 40], sizes = [2, 10, 8], strides = [1, 1, 1]} : vector<2x10x48xf32> to vector<2x10x8xf32>
    "tpu.trace_start"() <{level = 10 : i32, message = "bqd,bkd->bqk"}> : () -> ()
    %cst_122 = arith.constant dense<0.000000e+00> : vector<2x10x10xf32>
    %214 = tpu.matmul %211, %212, %cst_122 {dimension_numbers = #tpu.dot_dimension_numbers<[2], [2], [1], [1], [0, 0, 0, 1, 1, 1], [0], [0]>} : vector<2x10x8xf32>, vector<2x10x8xf32>, vector<2x10x10xf32> -> vector<2x10x10xf32>
    "tpu.trace_stop"() : () -> ()
    %cst_123 = arith.constant dense<0xFF800000> : vector<2x10xf32>
    %215 = vector.multi_reduction <maximumf>, %214, %cst_123 [2] : vector<2x10x10xf32> to vector<2x10xf32>
    %216 = vector.shape_cast %215 : vector<2x10xf32> to vector<2x10x1xf32>
    %217 = vector.broadcast %216 : vector<2x10x1xf32> to vector<2x10x10xf32>
    %218 = arith.subf %214, %217 : vector<2x10x10xf32>
    %219 = math.exp %218 : vector<2x10x10xf32>
    %cst_124 = arith.constant dense<0.000000e+00> : vector<2x10xf32>
    %220 = vector.multi_reduction <add>, %219, %cst_124 [2] : vector<2x10x10xf32> to vector<2x10xf32>
    %221 = vector.shape_cast %220 : vector<2x10xf32> to vector<2x10x1xf32>
    %222 = tpu.reciprocal %221 {approx = true} : vector<2x10x1xf32> -> vector<2x10x1xf32>
    %223 = vector.broadcast %222 : vector<2x10x1xf32> to vector<2x10x10xf32>
    %224 = arith.mulf %219, %223 : vector<2x10x10xf32>
    "tpu.trace_start"() <{level = 10 : i32, message = "bqk,bkd->bqd"}> : () -> ()
    %cst_125 = arith.constant dense<0.000000e+00> : vector<2x10x8xf32>
    %225 = tpu.matmul %224, %213, %cst_125 {dimension_numbers = #tpu.dot_dimension_numbers<[2], [1], [1], [2], [0, 0, 0, 1, 1, 2], [0], [0]>} : vector<2x10x10xf32>, vector<2x10x8xf32>, vector<2x10x8xf32> -> vector<2x10x8xf32>
    "tpu.trace_stop"() : () -> ()
    %226 = vector.extract_strided_slice %2 {offsets = [8, 0], sizes = [8, 16], strides = [1, 1]} : vector<16x16xf32> to vector<8x16xf32>
    %cst_126 = arith.constant dense<0.000000e+00> : vector<2x10x16xf32>
    %227 = tpu.matmul %225, %226, %cst_126 {dimension_numbers = #tpu.dot_dimension_numbers<[2], [0], [0, 1], [1], [0, 0, 0, 1, 1, 1], [], []>} : vector<2x10x8xf32>, vector<8x16xf32>, vector<2x10x16xf32> -> vector<2x10x16xf32>
    %228 = arith.addf %208, %227 : vector<2x10x16xf32>
    %229 = vector.shape_cast %3 : vector<1x16xf32> to vector<1x1x16xf32>
    %230 = vector.broadcast %229 : vector<1x1x16xf32> to vector<2x10x16xf32>
    %231 = arith.addf %228, %230 : vector<2x10x16xf32>
    %232 = arith.addf %185, %231 : vector<2x10x16xf32>
    %cst_127 = arith.constant dense<0.000000e+00> : vector<2x10x16xf32>
    %233 = tpu.matmul %232, %4, %cst_127 {dimension_numbers = #tpu.dot_dimension_numbers<[2], [0], [0, 1], [1], [0, 0, 0, 1, 1, 1], [], []>} : vector<2x10x16xf32>, vector<16x16xf32>, vector<2x10x16xf32> -> vector<2x10x16xf32>
    %234 = vector.shape_cast %5 : vector<1x16xf32> to vector<1x1x16xf32>
    %235 = vector.broadcast %234 : vector<1x1x16xf32> to vector<2x10x16xf32>
    %236 = arith.addf %233, %235 : vector<2x10x16xf32>
    %cst_128 = arith.constant dense<0.000000e+00> : vector<2x10x16xf32>
    %237 = tpu.matmul %236, %6, %cst_128 {dimension_numbers = #tpu.dot_dimension_numbers<[2], [0], [0, 1], [1], [0, 0, 0, 1, 1, 1], [], []>} : vector<2x10x16xf32>, vector<16x16xf32>, vector<2x10x16xf32> -> vector<2x10x16xf32>
    %238 = vector.shape_cast %7 : vector<1x16xf32> to vector<1x1x16xf32>
    %239 = vector.broadcast %238 : vector<1x1x16xf32> to vector<2x10x16xf32>
    %240 = arith.addf %237, %239 : vector<2x10x16xf32>
    %241 = arith.addf %232, %240 : vector<2x10x16xf32>
    %242 = vector.extract_strided_slice %19 {offsets = [0, 32], sizes = [1, 16], strides = [1, 1]} : vector<1x48xf32> to vector<1x16xf32>
    %cst_129 = arith.constant dense<0.000000e+00> : vector<1x16xf32>
    %243 = tpu.matmul %242, %20, %cst_129 {dimension_numbers = #tpu.dot_dimension_numbers<[1], [0], [0], [1], [0, 0, 1, 1], [], []>} : vector<1x16xf32>, vector<16x16xf32>, vector<1x16xf32> -> vector<1x16xf32>
    %244 = arith.addf %243, %21 : vector<1x16xf32>
    %245 = vector.shape_cast %244 : vector<1x16xf32> to vector<1x1x16xf32>
    %246 = vector.broadcast %245 : vector<1x1x16xf32> to vector<2x1x16xf32>
    %247 = vector.extract_strided_slice %22 {offsets = [0, 0], sizes = [16, 16], strides = [1, 1]} : vector<16x48xf32> to vector<16x16xf32>
    %248 = vector.extract_strided_slice %23 {offsets = [0, 0], sizes = [1, 16], strides = [1, 1]} : vector<1x48xf32> to vector<1x16xf32>
    %cst_130 = arith.constant dense<0.000000e+00> : vector<2x1x16xf32>
    %249 = tpu.matmul %246, %247, %cst_130 {dimension_numbers = #tpu.dot_dimension_numbers<[2], [0], [0, 1], [1], [0, 0, 0, 1, 1, 1], [], []>} : vector<2x1x16xf32>, vector<16x16xf32>, vector<2x1x16xf32> -> vector<2x1x16xf32>
    %250 = vector.shape_cast %248 : vector<1x16xf32> to vector<1x1x16xf32>
    %251 = vector.broadcast %250 : vector<1x1x16xf32> to vector<2x1x16xf32>
    %252 = arith.addf %249, %251 : vector<2x1x16xf32>
    %253 = vector.extract_strided_slice %22 {offsets = [0, 16], sizes = [16, 32], strides = [1, 1]} : vector<16x48xf32> to vector<16x32xf32>
    %254 = vector.extract_strided_slice %23 {offsets = [0, 16], sizes = [1, 32], strides = [1, 1]} : vector<1x48xf32> to vector<1x32xf32>
    %cst_131 = arith.constant dense<0.000000e+00> : vector<2x10x32xf32>
    %255 = tpu.matmul %241, %253, %cst_131 {dimension_numbers = #tpu.dot_dimension_numbers<[2], [0], [0, 1], [1], [0, 0, 0, 1, 1, 1], [], []>} : vector<2x10x16xf32>, vector<16x32xf32>, vector<2x10x32xf32> -> vector<2x10x32xf32>
    %256 = vector.shape_cast %254 : vector<1x32xf32> to vector<1x1x32xf32>
    %257 = vector.broadcast %256 : vector<1x1x32xf32> to vector<2x10x32xf32>
    %258 = arith.addf %255, %257 : vector<2x10x32xf32>
    %259 = vector.extract_strided_slice %252 {offsets = [0, 0, 0], sizes = [2, 1, 8], strides = [1, 1, 1]} : vector<2x1x16xf32> to vector<2x1x8xf32>
    %cst_132 = arith.constant 0.353553385 : f32
    %260 = vector.broadcast %cst_132 : f32 to vector<2x1x8xf32>
    %261 = arith.mulf %259, %260 : vector<2x1x8xf32>
    %262 = vector.extract_strided_slice %258 {offsets = [0, 0, 0], sizes = [2, 10, 8], strides = [1, 1, 1]} : vector<2x10x32xf32> to vector<2x10x8xf32>
    %263 = vector.extract_strided_slice %258 {offsets = [0, 0, 16], sizes = [2, 10, 8], strides = [1, 1, 1]} : vector<2x10x32xf32> to vector<2x10x8xf32>
    "tpu.trace_start"() <{level = 10 : i32, message = "bqd,bkd->bqk"}> : () -> ()
    %cst_133 = arith.constant dense<0.000000e+00> : vector<2x1x10xf32>
    %264 = tpu.matmul %261, %262, %cst_133 {dimension_numbers = #tpu.dot_dimension_numbers<[2], [2], [1], [1], [0, 0, 0, 1, 1, 1], [0], [0]>} : vector<2x1x8xf32>, vector<2x10x8xf32>, vector<2x1x10xf32> -> vector<2x1x10xf32>
    "tpu.trace_stop"() : () -> ()
    %cst_134 = arith.constant dense<0xFF800000> : vector<2x1xf32>
    %265 = vector.multi_reduction <maximumf>, %264, %cst_134 [2] : vector<2x1x10xf32> to vector<2x1xf32>
    %266 = vector.shape_cast %265 : vector<2x1xf32> to vector<2x1x1xf32>
    %267 = vector.broadcast %266 : vector<2x1x1xf32> to vector<2x1x10xf32>
    %268 = arith.subf %264, %267 : vector<2x1x10xf32>
    %269 = math.exp %268 : vector<2x1x10xf32>
    %cst_135 = arith.constant dense<0.000000e+00> : vector<2x1xf32>
    %270 = vector.multi_reduction <add>, %269, %cst_135 [2] : vector<2x1x10xf32> to vector<2x1xf32>
    %271 = vector.shape_cast %270 : vector<2x1xf32> to vector<2x1x1xf32>
    %272 = tpu.reciprocal %271 {approx = true} : vector<2x1x1xf32> -> vector<2x1x1xf32>
    %273 = vector.broadcast %272 : vector<2x1x1xf32> to vector<2x1x10xf32>
    %274 = arith.mulf %269, %273 : vector<2x1x10xf32>
    "tpu.trace_start"() <{level = 10 : i32, message = "bqk,bkd->bqd"}> : () -> ()
    %cst_136 = arith.constant dense<0.000000e+00> : vector<2x1x8xf32>
    %275 = tpu.matmul %274, %263, %cst_136 {dimension_numbers = #tpu.dot_dimension_numbers<[2], [1], [1], [2], [0, 0, 0, 1, 1, 2], [0], [0]>} : vector<2x1x10xf32>, vector<2x10x8xf32>, vector<2x1x8xf32> -> vector<2x1x8xf32>
    "tpu.trace_stop"() : () -> ()
    %276 = vector.extract_strided_slice %24 {offsets = [0, 0], sizes = [8, 16], strides = [1, 1]} : vector<16x16xf32> to vector<8x16xf32>
    %cst_137 = arith.constant dense<0.000000e+00> : vector<2x1x16xf32>
    %277 = tpu.matmul %275, %276, %cst_137 {dimension_numbers = #tpu.dot_dimension_numbers<[2], [0], [0, 1], [1], [0, 0, 0, 1, 1, 1], [], []>} : vector<2x1x8xf32>, vector<8x16xf32>, vector<2x1x16xf32> -> vector<2x1x16xf32>
    %278 = vector.extract_strided_slice %252 {offsets = [0, 0, 8], sizes = [2, 1, 8], strides = [1, 1, 1]} : vector<2x1x16xf32> to vector<2x1x8xf32>
    %cst_138 = arith.constant 0.353553385 : f32
    %279 = vector.broadcast %cst_138 : f32 to vector<2x1x8xf32>
    %280 = arith.mulf %278, %279 : vector<2x1x8xf32>
    %281 = vector.extract_strided_slice %258 {offsets = [0, 0, 8], sizes = [2, 10, 8], strides = [1, 1, 1]} : vector<2x10x32xf32> to vector<2x10x8xf32>
    %282 = vector.extract_strided_slice %258 {offsets = [0, 0, 24], sizes = [2, 10, 8], strides = [1, 1, 1]} : vector<2x10x32xf32> to vector<2x10x8xf32>
    "tpu.trace_start"() <{level = 10 : i32, message = "bqd,bkd->bqk"}> : () -> ()
    %cst_139 = arith.constant dense<0.000000e+00> : vector<2x1x10xf32>
    %283 = tpu.matmul %280, %281, %cst_139 {dimension_numbers = #tpu.dot_dimension_numbers<[2], [2], [1], [1], [0, 0, 0, 1, 1, 1], [0], [0]>} : vector<2x1x8xf32>, vector<2x10x8xf32>, vector<2x1x10xf32> -> vector<2x1x10xf32>
    "tpu.trace_stop"() : () -> ()
    %cst_140 = arith.constant dense<0xFF800000> : vector<2x1xf32>
    %284 = vector.multi_reduction <maximumf>, %283, %cst_140 [2] : vector<2x1x10xf32> to vector<2x1xf32>
    %285 = vector.shape_cast %284 : vector<2x1xf32> to vector<2x1x1xf32>
    %286 = vector.broadcast %285 : vector<2x1x1xf32> to vector<2x1x10xf32>
    %287 = arith.subf %283, %286 : vector<2x1x10xf32>
    %288 = math.exp %287 : vector<2x1x10xf32>
    %cst_141 = arith.constant dense<0.000000e+00> : vector<2x1xf32>
    %289 = vector.multi_reduction <add>, %288, %cst_141 [2] : vector<2x1x10xf32> to vector<2x1xf32>
    %290 = vector.shape_cast %289 : vector<2x1xf32> to vector<2x1x1xf32>
    %291 = tpu.reciprocal %290 {approx = true} : vector<2x1x1xf32> -> vector<2x1x1xf32>
    %292 = vector.broadcast %291 : vector<2x1x1xf32> to vector<2x1x10xf32>
    %293 = arith.mulf %288, %292 : vector<2x1x10xf32>
    "tpu.trace_start"() <{level = 10 : i32, message = "bqk,bkd->bqd"}> : () -> ()
    %cst_142 = arith.constant dense<0.000000e+00> : vector<2x1x8xf32>
    %294 = tpu.matmul %293, %282, %cst_142 {dimension_numbers = #tpu.dot_dimension_numbers<[2], [1], [1], [2], [0, 0, 0, 1, 1, 2], [0], [0]>} : vector<2x1x10xf32>, vector<2x10x8xf32>, vector<2x1x8xf32> -> vector<2x1x8xf32>
    "tpu.trace_stop"() : () -> ()
    %295 = vector.extract_strided_slice %24 {offsets = [8, 0], sizes = [8, 16], strides = [1, 1]} : vector<16x16xf32> to vector<8x16xf32>
    %cst_143 = arith.constant dense<0.000000e+00> : vector<2x1x16xf32>
    %296 = tpu.matmul %294, %295, %cst_143 {dimension_numbers = #tpu.dot_dimension_numbers<[2], [0], [0, 1], [1], [0, 0, 0, 1, 1, 1], [], []>} : vector<2x1x8xf32>, vector<8x16xf32>, vector<2x1x16xf32> -> vector<2x1x16xf32>
    %297 = arith.addf %277, %296 : vector<2x1x16xf32>
    %298 = arith.addf %246, %297 : vector<2x1x16xf32>
    %299 = vector.shape_cast %25 : vector<1x16xf32> to vector<1x1x16xf32>
    %300 = vector.broadcast %299 : vector<1x1x16xf32> to vector<2x1x16xf32>
    %301 = arith.addf %298, %300 : vector<2x1x16xf32>
    %cst_144 = arith.constant dense<0.000000e+00> : vector<2x1x16xf32>
    %302 = tpu.matmul %301, %26, %cst_144 {dimension_numbers = #tpu.dot_dimension_numbers<[2], [0], [0, 1], [1], [0, 0, 0, 1, 1, 1], [], []>} : vector<2x1x16xf32>, vector<16x16xf32>, vector<2x1x16xf32> -> vector<2x1x16xf32>
    %303 = vector.shape_cast %27 : vector<1x16xf32> to vector<1x1x16xf32>
    %304 = vector.broadcast %303 : vector<1x1x16xf32> to vector<2x1x16xf32>
    %305 = arith.addf %302, %304 : vector<2x1x16xf32>
    %cst_145 = arith.constant dense<0.000000e+00> : vector<2x1x16xf32>
    %306 = tpu.matmul %305, %28, %cst_145 {dimension_numbers = #tpu.dot_dimension_numbers<[2], [0], [0, 1], [1], [0, 0, 0, 1, 1, 1], [], []>} : vector<2x1x16xf32>, vector<16x16xf32>, vector<2x1x16xf32> -> vector<2x1x16xf32>
    %307 = vector.shape_cast %29 : vector<1x16xf32> to vector<1x1x16xf32>
    %308 = vector.broadcast %307 : vector<1x1x16xf32> to vector<2x1x16xf32>
    %309 = arith.addf %306, %308 : vector<2x1x16xf32>
    %310 = arith.addf %301, %309 : vector<2x1x16xf32>
    %cst_146 = arith.constant dense<0.000000e+00> : vector<2x1x8xf32>
    %311 = tpu.matmul %310, %30, %cst_146 {dimension_numbers = #tpu.dot_dimension_numbers<[2], [0], [0, 1], [1], [0, 0, 0, 1, 1, 1], [], []>} : vector<2x1x16xf32>, vector<16x8xf32>, vector<2x1x8xf32> -> vector<2x1x8xf32>
    %312 = vector.shape_cast %31 : vector<1x8xf32> to vector<1x1x8xf32>
    %313 = vector.broadcast %312 : vector<1x1x8xf32> to vector<2x1x8xf32>
    %314 = arith.addf %311, %313 : vector<2x1x8xf32>
    %cst_147 = arith.constant 0.000000e+00 : f32
    %315 = vector.broadcast %cst_147 : f32 to vector<2x1x8xf32>
    %316 = arith.subf %315, %314 : vector<2x1x8xf32>
    %317 = math.exp %316 : vector<2x1x8xf32>
    %cst_148 = arith.constant 1.000000e+00 : f32
    %318 = vector.broadcast %cst_148 : f32 to vector<2x1x8xf32>
    %319 = arith.addf %318, %317 : vector<2x1x8xf32>
    %cst_149 = arith.constant 1.000000e+00 : f32
    %320 = vector.broadcast %cst_149 : f32 to vector<2x1x8xf32>
    %321 = arith.divf %320, %319 : vector<2x1x8xf32>
    %322 = vector.shape_cast %321 : vector<2x1x8xf32> to vector<2x1x8xf32>
    %323 = vector.broadcast %322 : vector<2x1x8xf32> to vector<2x10x8xf32>
    %c0_150 = arith.constant 0 : index
    %c0_151 = arith.constant 0 : index
    %c0_152 = arith.constant 0 : index
    %324 = vector.load %arg40[%c0_150, %c0_151, %c0_152] : memref<2x10x8xf32, #tpu.memory_space<vmem>>, vector<2x10x8xf32>
    tpu.vector_store %arg40[%c0_150, %c0_151, %c0_152], %323 {strides = array<i32>} : memref<2x10x8xf32, #tpu.memory_space<vmem>>, vector<2x10x8xf32>,
    return
  }
  func.func @transform_0(%arg0: i32) -> (i32, i32, i32) {
    %c0_i32 = arith.constant 0 : i32
    %c0_i32_0 = arith.constant 0 : i32
    %c0_i32_1 = arith.constant 0 : i32
    return %arg0, %c0_i32, %c0_i32_0 : i32, i32, i32
  }
  func.func @transform_1(%arg0: i32) -> (i32, i32, i32) {
    %c0_i32 = arith.constant 0 : i32
    %c0_i32_0 = arith.constant 0 : i32
    %c0_i32_1 = arith.constant 0 : i32
    return %arg0, %c0_i32, %c0_i32_0 : i32, i32, i32
  }
  func.func @transform_2(%arg0: i32) -> (i32, i32) {
    %c0_i32 = arith.constant 0 : i32
    %c0_i32_0 = arith.constant 0 : i32
    %c0_i32_1 = arith.constant 0 : i32
    return %c0_i32, %c0_i32_0 : i32, i32
  }
  func.func @transform_3(%arg0: i32) -> (i32, i32) {
    %c0_i32 = arith.constant 0 : i32
    %c0_i32_0 = arith.constant 0 : i32
    %c0_i32_1 = arith.constant 0 : i32
    return %c0_i32, %c0_i32_0 : i32, i32
  }
  func.func @transform_4(%arg0: i32) -> (i32, i32) {
    %c0_i32 = arith.constant 0 : i32
    %c0_i32_0 = arith.constant 0 : i32
    %c0_i32_1 = arith.constant 0 : i32
    return %c0_i32, %c0_i32_0 : i32, i32
  }
  func.func @transform_5(%arg0: i32) -> (i32, i32) {
    %c0_i32 = arith.constant 0 : i32
    %c0_i32_0 = arith.constant 0 : i32
    %c0_i32_1 = arith.constant 0 : i32
    return %c0_i32, %c0_i32_0 : i32, i32
  }
  func.func @transform_6(%arg0: i32) -> (i32, i32) {
    %c0_i32 = arith.constant 0 : i32
    %c0_i32_0 = arith.constant 0 : i32
    %c0_i32_1 = arith.constant 0 : i32
    return %c0_i32, %c0_i32_0 : i32, i32
  }
  func.func @transform_7(%arg0: i32) -> (i32, i32) {
    %c0_i32 = arith.constant 0 : i32
    %c0_i32_0 = arith.constant 0 : i32
    %c0_i32_1 = arith.constant 0 : i32
    return %c0_i32, %c0_i32_0 : i32, i32
  }
  func.func @transform_8(%arg0: i32) -> (i32, i32) {
    %c0_i32 = arith.constant 0 : i32
    %c0_i32_0 = arith.constant 0 : i32
    %c0_i32_1 = arith.constant 0 : i32
    return %c0_i32, %c0_i32_0 : i32, i32
  }
  func.func @transform_9(%arg0: i32) -> (i32, i32) {
    %c0_i32 = arith.constant 0 : i32
    %c0_i32_0 = arith.constant 0 : i32
    %c0_i32_1 = arith.constant 0 : i32
    return %c0_i32, %c0_i32_0 : i32, i32
  }
  func.func @transform_10(%arg0: i32) -> (i32, i32) {
    %c0_i32 = arith.constant 0 : i32
    %c0_i32_0 = arith.constant 0 : i32
    %c0_i32_1 = arith.constant 0 : i32
    return %c0_i32, %c0_i32_0 : i32, i32
  }
  func.func @transform_11(%arg0: i32) -> (i32, i32) {
    %c0_i32 = arith.constant 0 : i32
    %c0_i32_0 = arith.constant 0 : i32
    %c0_i32_1 = arith.constant 0 : i32
    return %c0_i32, %c0_i32_0 : i32, i32
  }
  func.func @transform_12(%arg0: i32) -> (i32, i32) {
    %c0_i32 = arith.constant 0 : i32
    %c0_i32_0 = arith.constant 0 : i32
    %c0_i32_1 = arith.constant 0 : i32
    return %c0_i32, %c0_i32_0 : i32, i32
  }
  func.func @transform_13(%arg0: i32) -> (i32, i32) {
    %c0_i32 = arith.constant 0 : i32
    %c0_i32_0 = arith.constant 0 : i32
    %c0_i32_1 = arith.constant 0 : i32
    return %c0_i32, %c0_i32_0 : i32, i32
  }
  func.func @transform_14(%arg0: i32) -> (i32, i32) {
    %c0_i32 = arith.constant 0 : i32
    %c0_i32_0 = arith.constant 0 : i32
    %c0_i32_1 = arith.constant 0 : i32
    return %c0_i32, %c0_i32_0 : i32, i32
  }
  func.func @transform_15(%arg0: i32) -> (i32, i32) {
    %c0_i32 = arith.constant 0 : i32
    %c0_i32_0 = arith.constant 0 : i32
    %c0_i32_1 = arith.constant 0 : i32
    return %c0_i32, %c0_i32_0 : i32, i32
  }
  func.func @transform_16(%arg0: i32) -> (i32, i32) {
    %c0_i32 = arith.constant 0 : i32
    %c0_i32_0 = arith.constant 0 : i32
    %c0_i32_1 = arith.constant 0 : i32
    return %c0_i32, %c0_i32_0 : i32, i32
  }
  func.func @transform_17(%arg0: i32) -> (i32, i32) {
    %c0_i32 = arith.constant 0 : i32
    %c0_i32_0 = arith.constant 0 : i32
    %c0_i32_1 = arith.constant 0 : i32
    return %c0_i32, %c0_i32_0 : i32, i32
  }
  func.func @transform_18(%arg0: i32) -> (i32, i32) {
    %c0_i32 = arith.constant 0 : i32
    %c0_i32_0 = arith.constant 0 : i32
    %c0_i32_1 = arith.constant 0 : i32
    return %c0_i32, %c0_i32_0 : i32, i32
  }
  func.func @transform_19(%arg0: i32) -> (i32, i32) {
    %c0_i32 = arith.constant 0 : i32
    %c0_i32_0 = arith.constant 0 : i32
    %c0_i32_1 = arith.constant 0 : i32
    return %c0_i32, %c0_i32_0 : i32, i32
  }
  func.func @transform_20(%arg0: i32) -> (i32, i32) {
    %c0_i32 = arith.constant 0 : i32
    %c0_i32_0 = arith.constant 0 : i32
    %c0_i32_1 = arith.constant 0 : i32
    return %c0_i32, %c0_i32_0 : i32, i32
  }
  func.func @transform_21(%arg0: i32) -> (i32, i32) {
    %c0_i32 = arith.constant 0 : i32
    %c0_i32_0 = arith.constant 0 : i32
    %c0_i32_1 = arith.constant 0 : i32
    return %c0_i32, %c0_i32_0 : i32, i32
  }
  func.func @transform_22(%arg0: i32) -> (i32, i32) {
    %c0_i32 = arith.constant 0 : i32
    %c0_i32_0 = arith.constant 0 : i32
    %c0_i32_1 = arith.constant 0 : i32
    return %c0_i32, %c0_i32_0 : i32, i32
  }
  func.func @transform_23(%arg0: i32) -> (i32, i32) {
    %c0_i32 = arith.constant 0 : i32
    %c0_i32_0 = arith.constant 0 : i32
    %c0_i32_1 = arith.constant 0 : i32
    return %c0_i32, %c0_i32_0 : i32, i32
  }
  func.func @transform_24(%arg0: i32) -> (i32, i32) {
    %c0_i32 = arith.constant 0 : i32
    %c0_i32_0 = arith.constant 0 : i32
    %c0_i32_1 = arith.constant 0 : i32
    return %c0_i32, %c0_i32_0 : i32, i32
  }
  func.func @transform_25(%arg0: i32) -> (i32, i32) {
    %c0_i32 = arith.constant 0 : i32
    %c0_i32_0 = arith.constant 0 : i32
    %c0_i32_1 = arith.constant 0 : i32
    return %c0_i32, %c0_i32_0 : i32, i32
  }
  func.func @transform_26(%arg0: i32) -> (i32, i32) {
    %c0_i32 = arith.constant 0 : i32
    %c0_i32_0 = arith.constant 0 : i32
    %c0_i32_1 = arith.constant 0 : i32
    return %c0_i32, %c0_i32_0 : i32, i32
  }
  func.func @transform_27(%arg0: i32) -> (i32, i32) {
    %c0_i32 = arith.constant 0 : i32
    %c0_i32_0 = arith.constant 0 : i32
    %c0_i32_1 = arith.constant 0 : i32
    return %c0_i32, %c0_i32_0 : i32, i32
  }
  func.func @transform_28(%arg0: i32) -> (i32, i32) {
    %c0_i32 = arith.constant 0 : i32
    %c0_i32_0 = arith.constant 0 : i32
    %c0_i32_1 = arith.constant 0 : i32
    return %c0_i32, %c0_i32_0 : i32, i32
  }
  func.func @transform_29(%arg0: i32) -> (i32, i32) {
    %c0_i32 = arith.constant 0 : i32
    %c0_i32_0 = arith.constant 0 : i32
    %c0_i32_1 = arith.constant 0 : i32
    return %c0_i32, %c0_i32_0 : i32, i32
  }
  func.func @transform_30(%arg0: i32) -> (i32, i32) {
    %c0_i32 = arith.constant 0 : i32
    %c0_i32_0 = arith.constant 0 : i32
    %c0_i32_1 = arith.constant 0 : i32
    return %c0_i32, %c0_i32_0 : i32, i32
  }
  func.func @transform_31(%arg0: i32) -> (i32, i32) {
    %c0_i32 = arith.constant 0 : i32
    %c0_i32_0 = arith.constant 0 : i32
    %c0_i32_1 = arith.constant 0 : i32
    return %c0_i32, %c0_i32_0 : i32, i32
  }
  func.func @transform_32(%arg0: i32) -> (i32, i32) {
    %c0_i32 = arith.constant 0 : i32
    %c0_i32_0 = arith.constant 0 : i32
    %c0_i32_1 = arith.constant 0 : i32
    return %c0_i32, %c0_i32_0 : i32, i32
  }
  func.func @transform_33(%arg0: i32) -> (i32, i32) {
    %c0_i32 = arith.constant 0 : i32
    %c0_i32_0 = arith.constant 0 : i32
    %c0_i32_1 = arith.constant 0 : i32
    return %c0_i32, %c0_i32_0 : i32, i32
  }
  func.func @transform_34(%arg0: i32) -> (i32, i32) {
    %c0_i32 = arith.constant 0 : i32
    %c0_i32_0 = arith.constant 0 : i32
    %c0_i32_1 = arith.constant 0 : i32
    return %c0_i32, %c0_i32_0 : i32, i32
  }
  func.func @transform_35(%arg0: i32) -> (i32, i32) {
    %c0_i32 = arith.constant 0 : i32
    %c0_i32_0 = arith.constant 0 : i32
    %c0_i32_1 = arith.constant 0 : i32
    return %c0_i32, %c0_i32_0 : i32, i32
  }
  func.func @transform_36(%arg0: i32) -> (i32, i32) {
    %c0_i32 = arith.constant 0 : i32
    %c0_i32_0 = arith.constant 0 : i32
    %c0_i32_1 = arith.constant 0 : i32
    return %c0_i32, %c0_i32_0 : i32, i32
  }
  func.func @transform_37(%arg0: i32) -> (i32, i32) {
    %c0_i32 = arith.constant 0 : i32
    %c0_i32_0 = arith.constant 0 : i32
    %c0_i32_1 = arith.constant 0 : i32
    return %c0_i32, %c0_i32_0 : i32, i32
  }
  func.func @transform_38(%arg0: i32) -> (i32, i32, i32) {
    %c0_i32 = arith.constant 0 : i32
    %c0_i32_0 = arith.constant 0 : i32
    %c0_i32_1 = arith.constant 0 : i32
    return %arg0, %c0_i32, %c0_i32_0 : i32, i32, i32
  }
  func.func @transform_39(%arg0: i32) -> (i32, i32, i32) {
    %c0_i32 = arith.constant 0 : i32
    %c0_i32_0 = arith.constant 0 : i32
    %c0_i32_1 = arith.constant 0 : i32
    return %arg0, %c0_i32, %c0_i32_0 : i32, i32, i32
  }
}

</mosaic_0001>

<bundles_post_ra>
// kernel: tranad_forward.1
= control target key start
LH: loop header
LB: loop body
LE: loop exit
PB: predicated region body
PF: predicated region fallthrough
CT: control target
= control target key end

     0   :  { %s5179_s6 = smov 1   ;;  %s5180_s10 = smov 2   ;;  %s6650_s0 = inlined_call_operand.smem [shape: u32[40], index: -1, kind: input, shape index: {}] }
   0x1   :  { %s5255_s5 = sld [smem:[%s6650_s0]]   ;;  %s5181_s14 = smov 3  }
   0x2   :  { %s5260_s9 = sld [smem:[%s6650_s0 + %s5179_s6]]   ;;  %s5182_s18 = smov 4  }
   0x3   :  { %s5265_s13 = sld [smem:[%s6650_s0 + %s5180_s10]]   ;;  %s5183_s22 = smov 5  }
   0x4   :  { %s5270_s17 = sld [smem:[%s6650_s0 + %s5181_s14]]   ;;  %s5184_s26 = smov 6  }
   0x5   :  { %s5275_s21 = sld [smem:[%s6650_s0 + %s5182_s18]]   ;;  %s5185_s30 = smov 7  }
   0x6   :  { %s5280_s25 = sld [smem:[%s6650_s0 + %s5183_s22]]   ;;  %s5186_s4 = smov 8  }
   0x7   :  { %6666 = sst [smem:[#allocation48_spill]] %s5255_s5  ;;  %s5187_s10 = smov 9  }
   0x8   :  { %6667 = sst [smem:[#allocation49_spill]] %s5260_s9  ;;  %s5188_s15 = smov 10  }
   0x9   :  { %6668 = sst [smem:[#allocation50_spill]] %s5265_s13  ;;  %s5189_s20 = smov 11  }
   0xa   :  { %s5285_s29 = sld [smem:[%s6650_s0 + %s5184_s26]]   ;;  %s5190_s26 = smov 12  }
   0xb   :  { %6669 = sst [smem:[#allocation51_spill]] %s5275_s21  ;;  %s5191_s1 = smov 13  }
   0xc   :  { %6670 = sst [smem:[#allocation52_spill]] %s5280_s25  ;;  %s5192_s7 = smov 14  }
   0xd   :  { %s5290_s3 = sld [smem:[%s6650_s0 + %s5185_s30]]   ;;  %s5194_s22 = smov 16  }
   0xe   :  { %s5295_s8 = sld [smem:[%s6650_s0 + %s5186_s4]]   ;;  %s5195_s28 = smov 17  }
   0xf   :  { %s5300_s14 = sld [smem:[%s6650_s0 + %s5187_s10]]  }
  0x10   :  { %6671 = sst [smem:[#allocation53_spill]] %s5285_s29 }
  0x11   :  { %s5305_s19 = sld [smem:[%s6650_s0 + %s5188_s15]]   ;;  %s5193_s15 = smov 15  }
  0x12   :  { %s5310_s24 = sld [smem:[%s6650_s0 + %s5189_s20]]  }
  0x13   :  { %6672 = sst [smem:[#allocation54_spill]] %s5290_s3 }
  0x14   :  { %6673 = sst [smem:[#allocation55_spill]] %s5295_s8 }
  0x15   :  { %6674 = sst [smem:[#allocation56_spill]] %s5300_s14 }
  0x16   :  { %s5315_s30 = sld [smem:[%s6650_s0 + %s5190_s26]]  }
  0x17   :  { %6675 = sst [smem:[#allocation57_spill]] %s5305_s19 }
  0x18   :  { %6676 = sst [smem:[#allocation58_spill]] %s5310_s24 }
  0x19   :  { %s5320_s6 = sld [smem:[%s6650_s0 + %s5191_s1]]  }
  0x1a   :  { %s5325_s12 = sld [smem:[%s6650_s0 + %s5192_s7]]   ;;  %s5196_s7 = smov 18  }
  0x1b   :  { %s5330_s20 = sld [smem:[%s6650_s0 + %s5193_s15]]   ;;  %s5197_s15 = smov 19  }
  0x1c   :  { %s5335_s27 = sld [smem:[%s6650_s0 + %s5194_s22]]   ;;  %s5198_s22 = smov 20  }
  0x1d   :  { %s5340_s4 = sld [smem:[%s6650_s0 + %s5195_s28]]   ;;  %s5199_s28 = smov 21  }
  0x1e   :  { %s5345_s19 = sld [smem:[%s6650_s0 + %s5196_s7]]   ;;  %s5200_s7 = smov 22  }
  0x1f   :  { %6677 = sst [smem:[#allocation59_spill]] %s5320_s6 }
  0x20   :  { %s5355_s24 = sld [smem:[%s6650_s0 + %s5198_s22]]   ;;  %s5202_s22 = smov 24  }
  0x21   :  { %6678 = sst [smem:[#allocation60_spill]] %s5330_s20 }
  0x22   :  { %s5350_s20 = sld [smem:[%s6650_s0 + %s5197_s15]]   ;;  %s5201_s15 = smov 23  }
  0x23   :  { %s5360_s6 = sld [smem:[%s6650_s0 + %s5199_s28]]   ;;  %s5203_s28 = smov 25  }
  0x24   :  { %s5365_s14 = sld [smem:[%s6650_s0 + %s5200_s7]]   ;;  %s5204_s7 = smov 26  }
  0x25   :  { %s5370_s8 = sld [smem:[%s6650_s0 + %s5201_s15]]   ;;  %s5205_s15 = smov 27  }
  0x26   :  { %s5375_s3 = sld [smem:[%s6650_s0 + %s5202_s22]]   ;;  %s5206_s22 = smov 28  }
  0x27   :  { %s5380_s29 = sld [smem:[%s6650_s0 + %s5203_s28]]   ;;  %s5207_s28 = smov 29  }
  0x28   :  { %s5385_s25 = sld [smem:[%s6650_s0 + %s5204_s7]]   ;;  %s5208_s7 = smov 30  }
  0x29   :  { %6679 = sst [smem:[#allocation61_spill]] %s5360_s6 }
  0x2a   :  { %s5390_s21 = sld [smem:[%s6650_s0 + %s5205_s15]]   ;;  %s5209_s15 = smov 31  }
  0x2b   :  { %6680 = sst [smem:[#allocation62_spill]] %s5370_s8 }
  0x2c   :  { %s5395_s9 = sld [smem:[%s6650_s0 + %s5206_s22]]   ;;  %s5210_s22 = smov 32  }
  0x2d   :  { %6681 = sst [smem:[#allocation63_spill]] %s5380_s29 }
  0x2e   :  { %6682 = sst [smem:[#allocation64_spill]] %s5385_s25 }
  0x2f   :  { %s5400_s29 = sld [smem:[%s6650_s0 + %s5207_s28]]   ;;  %s5211_s28 = smov 33  }
  0x30   :  { %s5405_s5 = sld [smem:[%s6650_s0 + %s5208_s7]]   ;;  %s5212_s7 = smov 34  }
  0x31   :  { %s5410_s13 = sld [smem:[%s6650_s0 + %s5209_s15]]   ;;  %s5213_s15 = smov 35  }
  0x32   :  { %6683 = sst [smem:[#allocation65_spill]] %s5395_s9 }
  0x33   :  { %s5415_s9 = sld [smem:[%s6650_s0 + %s5210_s22]]   ;;  %s5214_s22 = smov 36  }
  0x34   :  { %s5420_s25 = sld [smem:[%s6650_s0 + %s5211_s28]]   ;;  %s5215_s28 = smov 37  }
  0x35   :  { %s5430_s8 = sld [smem:[%s6650_s0 + %s5213_s15]]   ;;  %s5217_s15 = smov 39  }
  0x36   :  { %6684 = sst [smem:[#allocation66_spill]] %s5405_s5 }
  0x37   :  { %s5425_s5 = sld [smem:[%s6650_s0 + %s5212_s7]]   ;;  %s5216_s7 = smov 38  }
  0x38   :  { %s5440_s6 = sld [smem:[%s6650_s0 + %s5215_s28]]  }
  0x39   :  { %6685 = sst [smem:[#allocation67_spill]] %s5415_s9 }
  0x3a   :  { %s5435_s9 = sld [smem:[%s6650_s0 + %s5214_s22]]  }
  0x3b   :  { %6687 = sst [smem:[#allocation69_spill]] %s5430_s8 }
  0x3c   :  { %s5450_s8 = sld [smem:[%s6650_s0 + %s5217_s15]]  }
  0x3d   :  { %6686 = sst [smem:[#allocation68_spill]] %s5425_s5 }
  0x3e   :  { %s5445_s5 = sld [smem:[%s6650_s0 + %s5216_s7]]  }
  0x3f   :  { %85 = vsyncpa [#allocation3], 0 }
  0x40   :  { %86 = vsyncpa [#allocation5], 0 }
  0x41   :  { %87 = vsyncpa [#allocation8], 0 }
  0x42   :  { %88 = vsyncpa [#allocation11], 0 }
  0x43   :  { %89 = vsyncpa [#allocation14], 0 }
  0x44   :  { %90 = vsyncpa [#allocation17], 0 }
  0x45   :  { %91 = vsyncpa [#allocation20], 0 }
  0x46   :  { %92 = vsyncpa [#allocation23], 0 }
  0x47   :  { %93 = vsyncpa [#allocation26], 0 }
  0x48   :  { %94 = vsyncpa [#allocation29], 0 }
  0x49   :  { %95 = vsyncpa [#allocation32], 0  ;;  %s134_s22 = sshll.u32 %s5315_s30, 4  ;;  %s135_s22 = int_to_ptr.hbm [resolvable:$true] %s134_s22 }
  0x4a   :  { %96 = vsyncpa [#allocation35], 0  ;;  %s5218_s0 = smov [#allocation4]   ;;  %s164_s26 = sshll.u32 %s5335_s27, 4  ;;  %s165_s26 = int_to_ptr.hbm [resolvable:$true] %s164_s26 }
  0x4b   :  { %s136_s23 = sshll.u32 %s5218_s0, 4  ;;  %s4627_s28 = sshra.s32 %s135_s22, 4  ;;  %s137_s23 = int_to_ptr.vmem [resolvable:$true] %s136_s23  ;;  %s4628_s28 = int_to_ptr.hbm [resolvable:$true] %s4627_s28 }
  0x4c   :  { %s4629_s1 = scalar_lea.hbm %s4628_s28, 16  ;;  %s4631_s2 = scalar_lea.hbm %s5315_s30, 16 }
  0x4d   :  { %p4630_p0 = scmp.ne.s32.totalorder %s4628_s28, %s4629_s1  ;;  %p4632_p1 = scmp.lt.s32.totalorder %s4628_s28, %s5315_s30 }
  0x4e   :  { %p4633_p2 = scmp.lt.s32.totalorder %s4631_s2, %s4629_s1 }
  0x50   :  { %p4634_p3 = por %p4633_p2, %p4632_p1 }
  0x52   :  { %p4635_p4 = pnand %p4634_p3, %p4630_p0 }
  0x54   :  { %4638 = shalt.err (!%p4635_p4)
}
  0x55   :  { %s5219_s7 = smov 128   ;;  %s5220_s10 = smov 8  }
  0x56   :  { %142 = dma.hbm_to_vmem [thread:$0]  %s135_s22, 256, %s137_s23, [#allocation5], %s5219_s7, %s5219_s7, %s5220_s10  }
  0x57   :  { %s5221_s11 = smov [#allocation7]   ;;  %s188_s16 = sshll.u32 %s5345_s19, 4  ;;  %s5460_s16 = int_to_ptr.hbm [resolvable:$true] %s188_s16 }
  0x58   :  { %s166_s15 = sshll.u32 %s5221_s11, 4  ;;  %s4651_s30 = sshra.s32 %s165_s26, 4  ;;  %s167_s15 = int_to_ptr.vmem [resolvable:$true] %s166_s15  ;;  %s4652_s30 = int_to_ptr.hbm [resolvable:$true] %s4651_s30 }
  0x59   :  { %s4653_s18 = scalar_lea.hbm %s4652_s30, 16  ;;  %s4655_s0 = scalar_lea.hbm %s5335_s27, 16 }
  0x5a   :  { %p4654_p5 = scmp.ne.s32.totalorder %s4652_s30, %s4653_s18  ;;  %p4656_p6 = scmp.lt.s32.totalorder %s4652_s30, %s5335_s27 }
  0x5b   :  { %p4657_p7 = scmp.lt.s32.totalorder %s4655_s0, %s4653_s18 }
  0x5d   :  { %p4658_p8 = por %p4657_p7, %p4656_p6 }
  0x5f   :  { %p4659_p9 = pnand %p4658_p8, %p4654_p5 }
  0x61   :  { %4662 = shalt.err (!%p4659_p9)
}
  0x62   :  { %172 = dma.hbm_to_vmem [thread:$0]  %s165_s26, 256, %s167_s15, [#allocation8], %s5219_s7, %s5219_s7, %s5220_s10  }
  0x63   :  { %s212_s22 = sshll.u32 %s5355_s24, 4  ;;  %s5222_s23 = smov [#allocation10]   ;;  %s5468_s22 = int_to_ptr.hbm [resolvable:$true] %s212_s22 }
  0x64   :  { %s190_s28 = sshll.u32 %s5222_s23, 4  ;;  %s4675_s1 = sshra.s32 %s5460_s16, 4  ;;  %s191_s28 = int_to_ptr.vmem [resolvable:$true] %s190_s28  ;;  %s4676_s1 = int_to_ptr.hbm [resolvable:$true] %s4675_s1 }
  0x65   :  { %s4677_s27 = scalar_lea.hbm %s4676_s1, 16  ;;  %s4679_s2 = scalar_lea.hbm %s5345_s19, 16 }
  0x66   :  { %p4678_p10 = scmp.ne.s32.totalorder %s4676_s1, %s4677_s27  ;;  %p4680_p11 = scmp.lt.s32.totalorder %s4676_s1, %s5345_s19 }
  0x67   :  { %p4681_p12 = scmp.lt.s32.totalorder %s4679_s2, %s4677_s27 }
  0x69   :  { %p4682_p13 = por %p4681_p12, %p4680_p11 }
  0x6b   :  { %p4683_p0 = pnand %p4682_p13, %p4678_p10 }
  0x6d   :  { %4686 = shalt.err (!%p4683_p0)
}
  0x6e   :  { %196 = dma.hbm_to_vmem [thread:$0]  %s5460_s16, 256, %s191_s28, [#allocation11], %s5219_s7, %s5219_s7, %s5220_s10  }
  0x6f   :  { %s5223_s26 = smov [#allocation13]   ;;  %s236_s15 = sshll.u32 %s5365_s14, 4  ;;  %s5478_s15 = int_to_ptr.hbm [resolvable:$true] %s236_s15 }
  0x70   :  { %s214_s11 = sshll.u32 %s5223_s26, 4  ;;  %s4699_s19 = sshra.s32 %s5468_s22, 4  ;;  %s215_s11 = int_to_ptr.vmem [resolvable:$true] %s214_s11  ;;  %s4700_s19 = int_to_ptr.hbm [resolvable:$true] %s4699_s19 }
  0x71   :  { %s4701_s30 = scalar_lea.hbm %s4700_s19, 16  ;;  %s4703_s18 = scalar_lea.hbm %s5355_s24, 16 }
  0x72   :  { %p4702_p1 = scmp.ne.s32.totalorder %s4700_s19, %s4701_s30  ;;  %p4704_p2 = scmp.lt.s32.totalorder %s4700_s19, %s5355_s24 }
  0x73   :  { %p4705_p3 = scmp.lt.s32.totalorder %s4703_s18, %s4701_s30 }
  0x75   :  { %p4706_p4 = por %p4705_p3, %p4704_p2 }
  0x77   :  { %p4707_p5 = pnand %p4706_p4, %p4702_p1 }
  0x79   :  { %4710 = shalt.err (!%p4707_p5)
}
  0x7a   :  { %220 = dma.hbm_to_vmem [thread:$0]  %s5468_s22, 256, %s215_s11, [#allocation14], %s5219_s7, %s5219_s7, %s5220_s10  }
  0x7b   :  { %s260_s16 = sshll.u32 %s5375_s3, 4  ;;  %s5224_s0 = smov [#allocation16]   ;;  %s5488_s16 = int_to_ptr.hbm [resolvable:$true] %s260_s16 }
  0x7c   :  { %s238_s23 = sshll.u32 %s5224_s0, 4  ;;  %s4723_s24 = sshra.s32 %s5478_s15, 4  ;;  %s239_s23 = int_to_ptr.vmem [resolvable:$true] %s238_s23  ;;  %s4724_s24 = int_to_ptr.hbm [resolvable:$true] %s4723_s24 }
  0x7d   :  { %s4725_s28 = scalar_lea.hbm %s4724_s24, 16  ;;  %s4727_s1 = scalar_lea.hbm %s5365_s14, 16 }
  0x7e   :  { %p4726_p6 = scmp.ne.s32.totalorder %s4724_s24, %s4725_s28  ;;  %p4728_p7 = scmp.lt.s32.totalorder %s4724_s24, %s5365_s14 }
  0x7f   :  { %p4729_p8 = scmp.lt.s32.totalorder %s4727_s1, %s4725_s28 }
  0x81   :  { %p4730_p9 = por %p4729_p8, %p4728_p7 }
  0x83   :  { %p4731_p10 = pnand %p4730_p9, %p4726_p6 }
  0x85   :  { %4734 = shalt.err (!%p4731_p10)
}
  0x86   :  { %244 = dma.hbm_to_vmem [thread:$0]  %s5478_s15, 256, %s239_s23, [#allocation17], %s5219_s7, %s5219_s7, %s5220_s10  }
  0x87   :  { %s5225_s22 = smov [#allocation19]   ;;  %s289_s2 = sshll.u32 %s5390_s21, 4  ;;  %s290_s2 = int_to_ptr.hbm [resolvable:$true] %s289_s2 }
  0x88   :  { %s262_s27 = sshll.u32 %s5225_s22, 4  ;;  %s4747_s26 = sshra.s32 %s5488_s16, 4  ;;  %s263_s27 = int_to_ptr.vmem [resolvable:$true] %s262_s27  ;;  %s4748_s26 = int_to_ptr.hbm [resolvable:$true] %s4747_s26 }
  0x89   :  { %s4749_s14 = scalar_lea.hbm %s4748_s26, 16  ;;  %s4751_s11 = scalar_lea.hbm %s5375_s3, 16 }
  0x8a   :  { %p4750_p11 = scmp.ne.s32.totalorder %s4748_s26, %s4749_s14  ;;  %p4752_p12 = scmp.lt.s32.totalorder %s4748_s26, %s5375_s3 }
  0x8b   :  { %p4753_p13 = scmp.lt.s32.totalorder %s4751_s11, %s4749_s14 }
  0x8d   :  { %p4754_p0 = por %p4753_p13, %p4752_p12 }
  0x8f   :  { %p4755_p1 = pnand %p4754_p0, %p4750_p11 }
  0x91   :  { %4758 = shalt.err (!%p4755_p1)
}
  0x92   :  { %268 = dma.hbm_to_vmem [thread:$0]  %s5488_s16, 256, %s263_s27, [#allocation20], %s5219_s7, %s5219_s7, %s5220_s10  }
  0x93   :  { %s313_s15 = sshll.u32 %s5400_s29, 4  ;;  %s5226_s19 = smov [#allocation22]   ;;  %s314_s15 = int_to_ptr.hbm [resolvable:$true] %s313_s15 }
  0x94   :  { %s291_s30 = sshll.u32 %s5226_s19, 4  ;;  %s4771_s18 = sshra.s32 %s290_s2, 4  ;;  %s292_s30 = int_to_ptr.vmem [resolvable:$true] %s291_s30  ;;  %s4772_s18 = int_to_ptr.hbm [resolvable:$true] %s4771_s18 }
  0x95   :  { %s4773_s3 = scalar_lea.hbm %s4772_s18, 1  ;;  %s4775_s0 = scalar_lea.hbm %s5390_s21, 1 }
  0x96   :  { %p4774_p2 = scmp.ne.s32.totalorder %s4772_s18, %s4773_s3  ;;  %p4776_p3 = scmp.lt.s32.totalorder %s4772_s18, %s5390_s21 }
  0x97   :  { %p4777_p4 = scmp.lt.s32.totalorder %s4775_s0, %s4773_s3 }
  0x99   :  { %p4778_p5 = por %p4777_p4, %p4776_p3 }
  0x9b   :  { %p4779_p6 = pnand %p4778_p5, %p4774_p2 }
  0x9d   :  { %4782 = shalt.err (!%p4779_p6)
}
  0x9e   :  { %294 = dma.hbm_to_vmem [thread:$0]  %s290_s2, 16, %s292_s30, [#allocation23]  }
  0x9f   :  { %s5227_s16 = smov [#allocation25]   ;;  %s337_s24 = sshll.u32 %s5410_s13, 4  ;;  %s338_s24 = int_to_ptr.hbm [resolvable:$true] %s337_s24 }
  0xa0   :  { %s315_s23 = sshll.u32 %s5227_s16, 4  ;;  %s4795_s28 = sshra.s32 %s314_s15, 4  ;;  %s316_s23 = int_to_ptr.vmem [resolvable:$true] %s315_s23  ;;  %s4796_s28 = int_to_ptr.hbm [resolvable:$true] %s4795_s28 }
  0xa1   :  { %s4797_s1 = scalar_lea.hbm %s4796_s28, 1  ;;  %s4799_s22 = scalar_lea.hbm %s5400_s29, 1 }
  0xa2   :  { %p4798_p7 = scmp.ne.s32.totalorder %s4796_s28, %s4797_s1  ;;  %p4800_p8 = scmp.lt.s32.totalorder %s4796_s28, %s5400_s29 }
  0xa3   :  { %p4801_p9 = scmp.lt.s32.totalorder %s4799_s22, %s4797_s1 }
  0xa5   :  { %p4802_p10 = por %p4801_p9, %p4800_p8 }
  0xa7   :  { %p4803_p11 = pnand %p4802_p10, %p4798_p7 }
  0xa9   :  { %4806 = shalt.err (!%p4803_p11)
}
  0xaa   :  { %318 = dma.hbm_to_vmem [thread:$0]  %s314_s15, 16, %s316_s23, [#allocation26]  }
  0xab   :  { %s361_s21 = sshll.u32 %s5420_s25, 4  ;;  %s5228_s27 = smov [#allocation28]   ;;  %s362_s21 = int_to_ptr.hbm [resolvable:$true] %s361_s21 }
  0xac   :  { %s339_s2 = sshll.u32 %s5228_s27, 4  ;;  %s4819_s26 = sshra.s32 %s338_s24, 4  ;;  %s340_s2 = int_to_ptr.vmem [resolvable:$true] %s339_s2  ;;  %s4820_s26 = int_to_ptr.hbm [resolvable:$true] %s4819_s26 }
  0xad   :  { %s4821_s14 = scalar_lea.hbm %s4820_s26, 1  ;;  %s4823_s11 = scalar_lea.hbm %s5410_s13, 1 }
  0xae   :  { %p4822_p12 = scmp.ne.s32.totalorder %s4820_s26, %s4821_s14  ;;  %p4824_p13 = scmp.lt.s32.totalorder %s4820_s26, %s5410_s13 }
  0xaf   :  { %p4825_p0 = scmp.lt.s32.totalorder %s4823_s11, %s4821_s14 }
  0xb1   :  { %p4826_p1 = por %p4825_p0, %p4824_p13 }
  0xb3   :  { %p4827_p2 = pnand %p4826_p1, %p4822_p12 }
  0xb5   :  { %4830 = shalt.err (!%p4827_p2)
}
  0xb6   :  { %342 = dma.hbm_to_vmem [thread:$0]  %s338_s24, 16, %s340_s2, [#allocation29]  }
  0xb7   :  { %s5229_s29 = smov [#allocation31]   ;;  %s108_s19 = sshll.u32 %s5270_s17, 4  ;;  %s109_s19 = int_to_ptr.hbm [resolvable:$true] %s108_s19 }
  0xb8   :  { %s363_s15 = sshll.u32 %s5229_s29, 4  ;;  %s4843_s30 = sshra.s32 %s362_s21, 4  ;;  %s364_s15 = int_to_ptr.vmem [resolvable:$true] %s363_s15  ;;  %s4844_s30 = int_to_ptr.hbm [resolvable:$true] %s4843_s30 }
  0xb9   :  { %s4845_s18 = scalar_lea.hbm %s4844_s30, 1  ;;  %s4847_s3 = scalar_lea.hbm %s5420_s25, 1 }
  0xba   :  { %p4846_p3 = scmp.ne.s32.totalorder %s4844_s30, %s4845_s18  ;;  %p4848_p4 = scmp.lt.s32.totalorder %s4844_s30, %s5420_s25 }
  0xbb   :  { %p4849_p5 = scmp.lt.s32.totalorder %s4847_s3, %s4845_s18 }
  0xbd   :  { %p4850_p6 = por %p4849_p5, %p4848_p4 }
  0xbf   :  { %p4851_p7 = pnand %p4850_p6, %p4846_p3 }
  0xc1   :  { %4854 = shalt.err (!%p4851_p7)
}
  0xc2   :  { %366 = dma.hbm_to_vmem [thread:$0]  %s362_s21, 16, %s364_s15, [#allocation32]  }
  0xc3   :  { %s149_s13 = sshll.u32 %s5325_s12, 4  ;;  %s5230_s0 = smov [#allocation2]   ;;  %s5518_s13 = int_to_ptr.hbm [resolvable:$true] %s149_s13 }
  0xc4   :  { %s110_s16 = sshll.u32 %s5230_s0, 4  ;;  %s4867_s23 = sshra.s32 %s109_s19, 4  ;;  %s111_s16 = int_to_ptr.vmem [resolvable:$true] %s110_s16  ;;  %s4868_s23 = int_to_ptr.hbm [resolvable:$true] %s4867_s23 }
  0xc5   :  { %s4869_s24 = scalar_lea.hbm %s4868_s23, 8  ;;  %s4871_s28 = scalar_lea.hbm %s5270_s17, 8 }
  0xc6   :  { %p4870_p8 = scmp.ne.s32.totalorder %s4868_s23, %s4869_s24  ;;  %p4872_p9 = scmp.lt.s32.totalorder %s4868_s23, %s5270_s17 }
  0xc7   :  { %p4873_p10 = scmp.lt.s32.totalorder %s4871_s28, %s4869_s24 }
  0xc9   :  { %p4874_p11 = por %p4873_p10, %p4872_p9 }
  0xcb   :  { %p4875_p12 = pnand %p4874_p11, %p4870_p8 }
  0xcd   :  { %4878 = shalt.err (!%p4875_p12)
}
  0xce   :  { %113 = dma.hbm_to_vmem [thread:$0]  %s109_s19, 128, %s111_s16, [#allocation3]  }
  0xcf   :  { %s5231_s25 = smov [#allocation6]   ;;  %s178_s22 = sshll.u32 %s5340_s4, 4  ;;  %s179_s22 = int_to_ptr.hbm [resolvable:$true] %s178_s22 }
  0xd0   :  { %s151_s1 = sshll.u32 %s5231_s25, 4  ;;  %s4891_s21 = sshra.s32 %s5518_s13, 4  ;;  %s152_s1 = int_to_ptr.vmem [resolvable:$true] %s151_s1  ;;  %s4892_s21 = int_to_ptr.hbm [resolvable:$true] %s4891_s21 }
  0xd1   :  { %s4893_s27 = scalar_lea.hbm %s4892_s21, 16  ;;  %s4895_s2 = scalar_lea.hbm %s5325_s12, 16 }
  0xd2   :  { %p4894_p13 = scmp.ne.s32.totalorder %s4892_s21, %s4893_s27  ;;  %p4896_p0 = scmp.lt.s32.totalorder %s4892_s21, %s5325_s12 }
  0xd3   :  { %p4897_p1 = scmp.lt.s32.totalorder %s4895_s2, %s4893_s27 }
  0xd5   :  { %p4898_p2 = por %p4897_p1, %p4896_p0 }
  0xd7   :  { %p4899_p3 = pnand %p4898_p2, %p4894_p13 }
  0xd9   :  { %4902 = shalt.err (!%p4899_p3)
}
  0xda   :  { %157 = dma.hbm_to_vmem [thread:$0]  %s5518_s13, 256, %s152_s1, [#allocation5], %s5219_s7, %s5219_s7, %s5220_s10  }
  0xdb   :  { %s202_s17 = sshll.u32 %s5350_s20, 4  ;;  %s5232_s26 = smov [#allocation9]   ;;  %s203_s17 = int_to_ptr.hbm [resolvable:$true] %s202_s17 }
  0xdc   :  { %s180_s14 = sshll.u32 %s5232_s26, 4  ;;  %s4915_s11 = sshra.s32 %s179_s22, 4  ;;  %s181_s14 = int_to_ptr.vmem [resolvable:$true] %s180_s14  ;;  %s4916_s11 = int_to_ptr.hbm [resolvable:$true] %s4915_s11 }
  0xdd   :  { %s4917_s12 = scalar_lea.hbm %s4916_s11, 1  ;;  %s4919_s29 = scalar_lea.hbm %s5340_s4, 1 }
  0xde   :  { %p4918_p4 = scmp.ne.s32.totalorder %s4916_s11, %s4917_s12  ;;  %p4920_p5 = scmp.lt.s32.totalorder %s4916_s11, %s5340_s4 }
  0xdf   :  { %p4921_p6 = scmp.lt.s32.totalorder %s4919_s29, %s4917_s12 }
  0xe1   :  { %p4922_p7 = por %p4921_p6, %p4920_p5 }
  0xe3   :  { %p4923_p8 = pnand %p4922_p7, %p4918_p4 }
  0xe5   :  { %4926 = shalt.err (!%p4923_p8)
}
  0xe6   :  { %183 = dma.hbm_to_vmem [thread:$0]  %s179_s22, 16, %s181_s14, [#allocation8]  }
  0xe7   :  { %s6688_s15 = sld [smem:[#allocation61_spill]]  ;;  %s5233_s19 = smov [#allocation12]  }
  0xe8   :  { %s204_s30 = sshll.u32 %s5233_s19, 4  ;;  %s4939_s3 = sshra.s32 %s203_s17, 4  ;;  %s205_s30 = int_to_ptr.vmem [resolvable:$true] %s204_s30  ;;  %s4940_s3 = int_to_ptr.hbm [resolvable:$true] %s4939_s3 }
  0xe9   :  { %s4941_s13 = scalar_lea.hbm %s4940_s3, 1  ;;  %s4943_s0 = scalar_lea.hbm %s5350_s20, 1 }
  0xea   :  { %p4942_p9 = scmp.ne.s32.totalorder %s4940_s3, %s4941_s13  ;;  %p4944_p10 = scmp.lt.s32.totalorder %s4940_s3, %s5350_s20 }
  0xeb   :  { %p4945_p11 = scmp.lt.s32.totalorder %s4943_s0, %s4941_s13 }
  0xed   :  { %s226_s18 = sshll.u32 %s6688_s15, 4  ;;  %p4946_p12 = por %p4945_p11, %p4944_p10  ;;  %s227_s18 = int_to_ptr.hbm [resolvable:$true] %s226_s18 }
  0xef   :  { %p4947_p13 = pnand %p4946_p12, %p4942_p9 }
  0xf1   :  { %4950 = shalt.err (!%p4947_p13)
}
  0xf2   :  { %207 = dma.hbm_to_vmem [thread:$0]  %s203_s17, 16, %s205_s30, [#allocation11]  }
  0xf3   :  { %s6689_s4 = sld [smem:[#allocation62_spill]]  ;;  %s5234_s23 = smov [#allocation15]  }
  0xf4   :  { %s228_s24 = sshll.u32 %s5234_s23, 4  ;;  %s4963_s28 = sshra.s32 %s227_s18, 4  ;;  %s229_s24 = int_to_ptr.vmem [resolvable:$true] %s228_s24  ;;  %s4964_s28 = int_to_ptr.hbm [resolvable:$true] %s4963_s28 }
  0xf5   :  { %s4965_s25 = scalar_lea.hbm %s4964_s28, 1  ;;  %s4967_s1 = scalar_lea.hbm %s6688_s15, 1 }
  0xf6   :  { %p4966_p0 = scmp.ne.s32.totalorder %s4964_s28, %s4965_s25  ;;  %p4968_p1 = scmp.lt.s32.totalorder %s4964_s28, %s6688_s15 }
  0xf7   :  { %p4969_p2 = scmp.lt.s32.totalorder %s4967_s1, %s4965_s25 }
  0xf9   :  { %s250_s16 = sshll.u32 %s6689_s4, 4  ;;  %p4970_p3 = por %p4969_p2, %p4968_p1  ;;  %s251_s16 = int_to_ptr.hbm [resolvable:$true] %s250_s16 }
  0xfb   :  { %p4971_p4 = pnand %p4970_p3, %p4966_p0 }
  0xfd   :  { %4974 = shalt.err (!%p4971_p4)
}
  0xfe   :  { %231 = dma.hbm_to_vmem [thread:$0]  %s227_s18, 16, %s229_s24, [#allocation14]  }
  0xff   :  { %s6690_s20 = sld [smem:[#allocation64_spill]]  ;;  %s5235_s22 = smov [#allocation18]  }
 0x100   :  { %s252_s21 = sshll.u32 %s5235_s22, 4  ;;  %s4987_s2 = sshra.s32 %s251_s16, 4  ;;  %s253_s21 = int_to_ptr.vmem [resolvable:$true] %s252_s21  ;;  %s4988_s2 = int_to_ptr.hbm [resolvable:$true] %s4987_s2 }
 0x101   :  { %s4989_s17 = scalar_lea.hbm %s4988_s2, 1  ;;  %s4991_s26 = scalar_lea.hbm %s6689_s4, 1 }
 0x102   :  { %p4990_p5 = scmp.ne.s32.totalorder %s4988_s2, %s4989_s17  ;;  %p4992_p6 = scmp.lt.s32.totalorder %s4988_s2, %s6689_s4 }
 0x103   :  { %p4993_p7 = scmp.lt.s32.totalorder %s4991_s26, %s4989_s17 }
 0x105   :  { %s275_s27 = sshll.u32 %s6690_s20, 4  ;;  %p4994_p8 = por %p4993_p7, %p4992_p6  ;;  %s5540_s27 = int_to_ptr.hbm [resolvable:$true] %s275_s27 }
 0x107   :  { %p4995_p9 = pnand %p4994_p8, %p4990_p5 }
 0x109   :  { %4998 = shalt.err (!%p4995_p9)
}
 0x10a   :  { %255 = dma.hbm_to_vmem [thread:$0]  %s251_s16, 16, %s253_s21, [#allocation17]  }
 0x10b   :  { %s6691_s14 = sld [smem:[#allocation65_spill]]  ;;  %s5236_s12 = smov [#allocation21]  }
 0x10c   :  { %s277_s29 = sshll.u32 %s5236_s12, 4  ;;  %s5011_s15 = sshra.s32 %s5540_s27, 4  ;;  %s278_s29 = int_to_ptr.vmem [resolvable:$true] %s277_s29  ;;  %s5012_s15 = int_to_ptr.hbm [resolvable:$true] %s5011_s15 }
 0x10d   :  { %s5013_s19 = scalar_lea.hbm %s5012_s15, 16  ;;  %s5015_s30 = scalar_lea.hbm %s6690_s20, 16 }
 0x10e   :  { %p5014_p10 = scmp.ne.s32.totalorder %s5012_s15, %s5013_s19  ;;  %p5016_p11 = scmp.lt.s32.totalorder %s5012_s15, %s6690_s20 }
 0x10f   :  { %p5017_p12 = scmp.lt.s32.totalorder %s5015_s30, %s5013_s19 }
 0x111   :  { %s299_s11 = sshll.u32 %s6691_s14, 4  ;;  %p5018_p13 = por %p5017_p12, %p5016_p11  ;;  %s5545_s11 = int_to_ptr.hbm [resolvable:$true] %s299_s11 }
 0x113   :  { %p5019_p0 = pnand %p5018_p13, %p5014_p10 }
 0x115   :  { %5022 = shalt.err (!%p5019_p0)
}
 0x116   :  { %s6692_s18 = sld [smem:[#allocation66_spill]]  ;;  %s5237_s3 = smov [#allocation24]  }
 0x117   :  { %283 = dma.hbm_to_vmem [thread:$0]  %s5540_s27, 256, %s278_s29, [#allocation20], %s5219_s7, %s5219_s7, %s5220_s10  }
 0x118   :  { %s301_s13 = sshll.u32 %s5237_s3, 4  ;;  %s5035_s4 = sshra.s32 %s5545_s11, 4  ;;  %s302_s13 = int_to_ptr.vmem [resolvable:$true] %s301_s13  ;;  %s5036_s4 = int_to_ptr.hbm [resolvable:$true] %s5035_s4 }
 0x119   :  { %s5037_s16 = scalar_lea.hbm %s5036_s4, 16  ;;  %s5039_s23 = scalar_lea.hbm %s6691_s14, 16 }
 0x11a   :  { %p5038_p1 = scmp.ne.s32.totalorder %s5036_s4, %s5037_s16  ;;  %p5040_p2 = scmp.lt.s32.totalorder %s5036_s4, %s6691_s14 }
 0x11b   :  { %p5041_p3 = scmp.lt.s32.totalorder %s5039_s23, %s5037_s16 }
 0x11c   :  { %s323_s0 = sshll.u32 %s6692_s18, 4  ;;  %s5555_s0 = int_to_ptr.hbm [resolvable:$true] %s323_s0 }
 0x11d   :  { %p5042_p4 = por %p5041_p3, %p5040_p2 }
 0x11f   :  { %p5043_p5 = pnand %p5042_p4, %p5038_p1 }
 0x121   :  { %5046 = shalt.err (!%p5043_p5)
}
 0x122   :  { %s6693_s24 = sld [smem:[#allocation67_spill]]  ;;  %s5238_s25 = smov [#allocation27]  }
 0x123   :  { %307 = dma.hbm_to_vmem [thread:$0]  %s5545_s11, 256, %s302_s13, [#allocation23], %s5219_s7, %s5219_s7, %s5220_s10  }
 0x124   :  { %s325_s1 = sshll.u32 %s5238_s25, 4  ;;  %s5059_s20 = sshra.s32 %s5555_s0, 4  ;;  %s326_s1 = int_to_ptr.vmem [resolvable:$true] %s325_s1  ;;  %s5060_s20 = int_to_ptr.hbm [resolvable:$true] %s5059_s20 }
 0x125   :  { %s5061_s22 = scalar_lea.hbm %s5060_s20, 16  ;;  %s5063_s21 = scalar_lea.hbm %s6692_s18, 16 }
 0x126   :  { %p5062_p6 = scmp.ne.s32.totalorder %s5060_s20, %s5061_s22  ;;  %p5064_p7 = scmp.lt.s32.totalorder %s5060_s20, %s6692_s18 }
 0x127   :  { %p5065_p8 = scmp.lt.s32.totalorder %s5063_s21, %s5061_s22 }
 0x128   :  { %s347_s28 = sshll.u32 %s6693_s24, 4  ;;  %s5565_s28 = int_to_ptr.hbm [resolvable:$true] %s347_s28 }
 0x129   :  { %p5066_p9 = por %p5065_p8, %p5064_p7 }
 0x12b   :  { %p5067_p10 = pnand %p5066_p9, %p5062_p6 }
 0x12d   :  { %5070 = shalt.err (!%p5067_p10)
}
 0x12e   :  { %s6694_s27 = sld [smem:[#allocation68_spill]]  ;;  %s5239_s2 = smov [#allocation30]  }
 0x12f   :  { %331 = dma.hbm_to_vmem [thread:$0]  %s5555_s0, 256, %s326_s1, [#allocation26], %s5219_s7, %s5219_s7, %s5220_s10  }
 0x130   :  { %s349_s17 = sshll.u32 %s5239_s2, 4  ;;  %s5083_s14 = sshra.s32 %s5565_s28, 4  ;;  %s350_s17 = int_to_ptr.vmem [resolvable:$true] %s349_s17  ;;  %s5084_s14 = int_to_ptr.hbm [resolvable:$true] %s5083_s14 }
 0x131   :  { %s5085_s11 = scalar_lea.hbm %s5084_s14, 16  ;;  %s5087_s12 = scalar_lea.hbm %s6693_s24, 16 }
 0x132   :  { %p5086_p11 = scmp.ne.s32.totalorder %s5084_s14, %s5085_s11  ;;  %p5088_p12 = scmp.lt.s32.totalorder %s5084_s14, %s6693_s24 }
 0x133   :  { %p5089_p13 = scmp.lt.s32.totalorder %s5087_s12, %s5085_s11 }
 0x134   :  { %s371_s26 = sshll.u32 %s6694_s27, 4  ;;  %s5575_s26 = int_to_ptr.hbm [resolvable:$true] %s371_s26 }
 0x135   :  { %p5090_p0 = por %p5089_p13, %p5088_p12 }
 0x137   :  { %p5091_p1 = pnand %p5090_p0, %p5086_p11 }
 0x139   :  { %5094 = shalt.err (!%p5091_p1)
}
 0x13a   :  { %s6695_s29 = sld [smem:[#allocation69_spill]]  ;;  %s5240_s19 = smov [#allocation33]  }
 0x13b   :  { %355 = dma.hbm_to_vmem [thread:$0]  %s5565_s28, 256, %s350_s17, [#allocation29], %s5219_s7, %s5219_s7, %s5220_s10  }
 0x13c   :  { %s373_s30 = sshll.u32 %s5240_s19, 4  ;;  %s5107_s18 = sshra.s32 %s5575_s26, 4  ;;  %s374_s30 = int_to_ptr.vmem [resolvable:$true] %s373_s30  ;;  %s5108_s18 = int_to_ptr.hbm [resolvable:$true] %s5107_s18 }
 0x13d   :  { %s5109_s3 = scalar_lea.hbm %s5108_s18, 16  ;;  %s5111_s13 = scalar_lea.hbm %s6694_s27, 16 }
 0x13e   :  { %p5110_p2 = scmp.ne.s32.totalorder %s5108_s18, %s5109_s3  ;;  %p5112_p3 = scmp.lt.s32.totalorder %s5108_s18, %s6694_s27 }
 0x13f   :  { %p5113_p4 = scmp.lt.s32.totalorder %s5111_s13, %s5109_s3 }
 0x140   :  { %s385_s15 = sshll.u32 %s6695_s29, 4  ;;  %s386_s15 = int_to_ptr.hbm [resolvable:$true] %s385_s15 }
 0x141   :  { %p5114_p5 = por %p5113_p4, %p5112_p3 }
 0x143   :  { %p5115_p6 = pnand %p5114_p5, %p5110_p2 }
 0x145   :  { %5118 = shalt.err (!%p5115_p6)
}
 0x146   :  { %379 = dma.hbm_to_vmem [thread:$0]  %s5575_s26, 256, %s374_s30, [#allocation32], %s5219_s7, %s5219_s7, %s5220_s10  }
 0x147   :  { %s5241_s0 = smov [#allocation34]   ;;  %s5131_s16 = sshra.s32 %s386_s15, 4  ;;  %s5132_s16 = int_to_ptr.hbm [resolvable:$true] %s5131_s16 }
 0x148   :  { %s387_s4 = sshll.u32 %s5241_s0, 4  ;;  %s5133_s23 = scalar_lea.hbm %s5132_s16, 1  ;;  %s388_s4 = int_to_ptr.vmem [resolvable:$true] %s387_s4 }
 0x149   :  { %p5134_p7 = scmp.ne.s32.totalorder %s5132_s16, %s5133_s23  ;;  %s5135_s24 = scalar_lea.hbm %s6695_s29, 1 }
 0x14a   :  { %p5136_p8 = scmp.lt.s32.totalorder %s5132_s16, %s6695_s29  ;;  %p5137_p9 = scmp.lt.s32.totalorder %s5135_s24, %s5133_s23 }
 0x14c   :  { %p5138_p10 = por %p5137_p9, %p5136_p8 }
 0x14e   :  { %p5139_p11 = pnand %p5138_p10, %p5134_p7 }
 0x150   :  { %5142 = shalt.err (!%p5139_p11)
}
 0x151   :  { %390 = dma.hbm_to_vmem [thread:$0]  %s386_s15, 16, %s388_s4, [#allocation35]  }
 0x152   :  { %5155 = dma.done.wait [#allocation3], 128  }
 0x153   :  { %5156 = vsyncadd [#allocation3], 4294967168 }
 0x154   :  { %5157 = dma.done.wait [#allocation5], 512  }
 0x155   :  { %5158 = vsyncadd [#allocation5], 4294966784 }
 0x156   :  { %5159 = dma.done.wait [#allocation8], 272  }
 0x157   :  { %5160 = vsyncadd [#allocation8], 4294967024 }
 0x158   :  { %5161 = dma.done.wait [#allocation11], 272  }
 0x159   :  { %5162 = vsyncadd [#allocation11], 4294967024 }
 0x15a   :  { %5163 = dma.done.wait [#allocation14], 272  }
 0x15b   :  { %5164 = vsyncadd [#allocation14], 4294967024 }
 0x15c   :  { %5165 = dma.done.wait [#allocation17], 272  }
 0x15d   :  { %5166 = vsyncadd [#allocation17], 4294967024 }
 0x15e   :  { %5167 = dma.done.wait [#allocation20], 512  }
 0x15f   :  { %5168 = vsyncadd [#allocation20], 4294966784 }
 0x160   :  { %5169 = dma.done.wait [#allocation23], 272  }
 0x161   :  { %5170 = vsyncadd [#allocation23], 4294967024 }
 0x162   :  { %5171 = dma.done.wait [#allocation26], 272  }
 0x163   :  { %5172 = vsyncadd [#allocation26], 4294967024 }
 0x164   :  { %5173 = dma.done.wait [#allocation29], 272  }
 0x165   :  { %5174 = vsyncadd [#allocation29], 4294967024 }
 0x166   :  { %5175 = dma.done.wait [#allocation32], 272  }
 0x167   :  { %5176 = vsyncadd [#allocation32], 4294967024 }
 0x168   :  { %5177 = dma.done.wait [#allocation35], 16  }
 0x169   :  { %5178 = vsyncadd [#allocation35], 4294967280  ;;  %s6696_s7 = sld [smem:[#allocation50_spill]]  ;;  %vm601_vm0 = vcmask 64512   ;;  %vm679_vm1 = vcmask 130048   ;;  %s5242_s20 = smov 112  }
 0x16a   :  { %s6697_s10 = sld [smem:[#allocation48_spill]]  ;;  %s5243_s22 = smov 104   ;;  %vm931_vm2 = vcmask 1041408   ;;  %vm863_vm3 = vcmask 80896   ;;  %vm867_vm4 = vcmask 74752   ;;  %vm1642_vm5 = vcmask 1041409  }
 0x16b   :  { %s6698_s28 = sld [smem:[#allocation49_spill]]  ;;  %s5244_s21 = smov 120   ;;  %vm1866_vm6 = vcmask 73728   ;;  %vm2368_vm15 = vcmask 58368  }
 0x16c   :  { %s6699_s25 = sld [smem:[#allocation51_spill]]  ;;  %s5245_s27 = smov 96  }
 0x16d   :  { %s6700_s1 = sld [smem:[#allocation52_spill]]  ;;  %s5246_s2 = smov 88  }
 0x16e   :  { %s6701_s17 = sld [smem:[#allocation53_spill]] }
 0x16f   :  { %v536_v0 = vld [vmem:[%s6696_s7] sm:$0xff]  ;;  %s6702_s26 = sld [smem:[#allocation54_spill]] }
 0x170   :  { %v5596_v1 = vld [vmem:[%s6697_s10] sm:$0xff]  ;;  %623 = vmatpush.msra.mxu0 %v536_v0  ;;  %v5603_v5 = vld [vmem:[%s6697_s10 + $0x10] sm:$0xff]  ;;  %v5606_v6 = vld [vmem:[%s6697_s10 + $0x8] sm:$0x3]  ;;  %s6703_s14 = sld [smem:[#allocation55_spill]] }
 0x171   :  { %v546_v2 = vrot.slane %v5596_v1, 2  ;;  %v547_v3 = vrot.slane %v5596_v1, 4  ;;  %v548_v4 = vrot.slane %v5596_v1, 6  ;;  %558 = vst [vmem:[#allocation1] ss:$4 sm:$0xff] %v5596_v1  ;;  %v549_v7 = vrot.slane %v5603_v5, 2 }
 0x172   :  { %v550_v8 = vrot.slane %v5603_v5, 4  ;;  %566 = vst [vmem:[#allocation1 + $0x20] ss:$4 sm:$0xff] %v5606_v6  ;;  %v551_v9 = vrot.slane %v5603_v5, 6  ;;  %v5614_v10 = vld [vmem:[%s6697_s10 + $0x18] sm:$0x3] }
 0x173   :  { %560 = vst [vmem:[#allocation1 + $0x1] ss:$4 sm:$0xff] %v546_v2  ;;  %v4497_v12 = vld [vmem:[%s6698_s28] ss:$0 sm:$0xff]  ;;  %v4498_v18 = vld [vmem:[%s6698_s28 + $0x1] ss:$0 sm:$0xff] }
 0x174   :  { %562 = vst [vmem:[#allocation1 + $0x2] ss:$4 sm:$0xff] %v547_v3  ;;  %v552_v14 = vrot.slane %v4497_v12, 2  ;;  %v553_v15 = vrot.slane %v4497_v12, 4  ;;  %v554_v16 = vrot.slane %v4497_v12, 6  ;;  %v484_v20 = vld [vmem:[%s6699_s25 + $0x8] sm:$0xff] }
 0x175   :  { %564 = vst [vmem:[#allocation1 + $0x3] ss:$4 sm:$0xff] %v548_v4  ;;  %v555_v21 = vrot.slane %v4498_v18, 2  ;;  %v556_v22 = vrot.slane %v4498_v18, 4  ;;  %700 = vmatpush.msra.mxu1 %v484_v20  ;;  %v483_v23 = vld [vmem:[%s6699_s25] sm:$0xff]  ;;  %v557_v24 = vrot.slane %v4498_v18, 6 }
 0x176   :  { %568 = vst [vmem:[#allocation1 + $0x21] ss:$4 sm:$0xff] %v5603_v5  ;;  %v5625_v25 = vld [vmem:[%s6700_s1] ss:$0 sm:$0xff]  ;;  %s6704_s11 = sld [smem:[#allocation56_spill]] }
 0x177   :  { %570 = vst [vmem:[#allocation1 + $0x22] ss:$4 sm:$0xff] %v549_v7  ;;  %701 = vmatpush.msra.mxu1 %v483_v23  ;;  %v5628_v28 = vrot.slane %v5625_v25, 2  ;;  %v5631_v29 = vrot.slane %v5625_v25, 4  ;;  %v5634_v30 = vrot.slane %v5625_v25, 6  ;;  %s6705_s12 = sld [smem:[#allocation59_spill]] }
 0x178   :  { %572 = vst [vmem:[#allocation1 + $0x23] ss:$4 sm:$0xff] %v550_v8  ;;  %s6706_s29 = sld [smem:[#allocation58_spill]] }
 0x179   :  { %s6707_s15 = sld [smem:[#allocation57_spill]] }
 0x17a   :  { %s6708_s19 = sld [smem:[#allocation60_spill]] }
 0x17c   :  { %v573_v11 = vld.sshfl [vmem:[#allocation1] sm:$0xff pattern:$0x73625140] }
 0x17d   :  { %4247 = vmatmul.msk.f32.vlgmr.msra.gmra.mxu0 %vm601_vm0, %v573_v11  ;;  %575 = vst [vmem:[#allocation1] ss:$4 sm:$0xff] %v551_v9 }
 0x17e   :  { %576 = vst [vmem:[#allocation1 + $0x1] ss:$4 sm:$0xff] %v5614_v10 }
 0x17f   :  { %v574_v13 = vld.sshfl [vmem:[#allocation1 + $0x20] sm:$0xff pattern:$0x73625140] }
 0x180   :  { %586 = vst [vmem:[#allocation1 + $0x20] ss:$4 sm:$0xff] %v4497_v12 }
 0x181   :  { %588 = vst [vmem:[#allocation1 + $0x21] ss:$4 sm:$0xff] %v4498_v18 }
 0x182   :  { %590 = vst [vmem:[#allocation1 + $0x22] ss:$4 sm:$0xff] %v555_v21 }
 0x183   :  { %592 = vst [vmem:[#allocation1 + $0x23] ss:$4 sm:$0xff] %v556_v22 }
 0x185   :  { %v577_v17 = vld.sshfl [vmem:[#allocation1] sm:$0xff pattern:$0x73625140]  ;;  %4248 = vmatmul.msk.f32.gmra.mxu0 %vm601_vm0, %v574_v13 }
 0x186   :  { %578 = vst [vmem:[#allocation1] ss:$4 sm:$0xff] %v4497_v12 }
 0x187   :  { %580 = vst [vmem:[#allocation1 + $0x1] ss:$4 sm:$0xff] %v552_v14 }
 0x188   :  { %582 = vst [vmem:[#allocation1 + $0x2] ss:$4 sm:$0xff] %v553_v15 }
 0x189   :  { %584 = vst [vmem:[#allocation1 + $0x3] ss:$4 sm:$0xff] %v554_v16 }
 0x18a   :  { %v594_v26 = vld.sshfl [vmem:[#allocation1 + $0x20] sm:$0xff pattern:$0x73625140] }
 0x18b   :  { %666 = vst [vmem:[#allocation1 + $0x21] ss:$4 sm:$0xff] %v5625_v25 }
 0x18c   :  { %668 = vst [vmem:[#allocation1 + $0x22] ss:$4 sm:$0xff] %v5628_v28 }
 0x18d   :  { %4249 = vmatmul.msk.f32.gmra.mxu0 %vm601_vm0, %v577_v17  ;;  %670 = vst [vmem:[#allocation1 + $0x23] ss:$4 sm:$0xff] %v5631_v29 }
 0x18e   :  { %664 = vst [vmem:[#allocation1 + $0x20] ss:$4 sm:$0xff] %v5625_v25 }
 0x190   :  { %v593_v19 = vld.sshfl [vmem:[#allocation1] sm:$0xff pattern:$0x73625140] }
 0x191   :  { %596 = vst [vmem:[#allocation1 + $0x1] ss:$4 sm:$0xff] %v4498_v18 }
 0x192   :  { %595 = vst [vmem:[#allocation1] ss:$4 sm:$0xff] %v557_v24 }
 0x195   :  { %v672_v48 = vld.sshfl [vmem:[#allocation1 + $0x20] sm:$0xff pattern:$0x73625140] }
 0x199   :  { %v597_v27 = vld.sshfl [vmem:[#allocation1] sm:$0xff pattern:$0x73625140] }
 0x19a   :  { %656 = vst [vmem:[#allocation1] ss:$4 sm:$0xff] %v5625_v25 }
 0x19b   :  { %658 = vst [vmem:[#allocation1 + $0x1] ss:$4 sm:$0xff] %v5628_v28 }
 0x19c   :  { %660 = vst [vmem:[#allocation1 + $0x2] ss:$4 sm:$0xff] %v5631_v29 }
 0x19d   :  { %662 = vst [vmem:[#allocation1 + $0x3] ss:$4 sm:$0xff] %v5634_v30 }
 0x1a4   :  { %v671_v32 = vld.sshfl [vmem:[#allocation1] sm:$0xff pattern:$0x73625140] }
 0x1a5   :  { %673 = vst [vmem:[#allocation1] ss:$4 sm:$0xff] %v5634_v30 }
 0x1a6   :  { %674 = vst [vmem:[#allocation1 + $0x1] ss:$4 sm:$0xff] %v5625_v25 }
 0x1ad   :  { %v675_v40 = vld.sshfl [vmem:[#allocation1] sm:$0xff pattern:$0x73625140] }
 0x1fa   :  { %v625_v31 = vpop.f32.mrf.mxu0 }
 0x1fb   :  { %v5644_v33 = vadd.f32 %v625_v31, %v593_v19 }
 0x1fd   :  { %4250 = vmatmul.msk.f32.vlgmr.msra.gmra.mxu1 %vm679_vm1, %v5644_v33 }
 0x202   :  { %v628_v34 = vpop.f32.mrf.mxu0 }
 0x203   :  { %v5650_v35 = vadd.f32 %v628_v34, %v594_v26 }
 0x205   :  { %4251 = vmatmul.msk.f32.gmra.mxu1 %vm679_vm1, %v5650_v35 }
 0x20a   :  { %v631_v36 = vpop.f32.mrf.mxu0 }
 0x20b   :  { %v5654_v37 = vadd.f32 %v631_v36, %v597_v27 }
 0x20d   :  { %4252 = vmatmul.msk.f32.gmra.mxu1 %vm679_vm1, %v5654_v37 }
 0x27a   :  { %v703_v38 = vpop.f32.mrf.mxu1 }
 0x27b   :  { %v5658_v39 = vadd.f32 %v703_v38, %v671_v32 }
 0x27d   :  { %v5661_v41 = vrot.slane %v5658_v39, 2  ;;  %v5664_v42 = vrot.slane %v5658_v39, 4  ;;  %v5667_v43 = vrot.slane %v5658_v39, 6  ;;  %v5670_v44 = vmul.f32 0.35355338, %v5658_v39 }
 0x27f   :  { %v5673_v45 = vmul.f32 0.35355338, %v5661_v41  ;;  %v5676_v46 = vmul.f32 0.35355338, %v5664_v42  ;;  %v5679_v47 = vmul.f32 0.35355338, %v5667_v43 }
 0x280   :  { %744 = vst [vmem:[#allocation1] ss:$4 sm:$0xff] %v5670_v44 }
 0x281   :  { %746 = vst [vmem:[#allocation1 + $0x1] ss:$4 sm:$0xff] %v5673_v45 }
 0x282   :  { %748 = vst [vmem:[#allocation1 + $0x2] ss:$4 sm:$0xff] %v5676_v46  ;;  %v706_v49 = vpop.f32.mrf.mxu1 }
 0x283   :  { %750 = vst [vmem:[#allocation1 + $0x3] ss:$4 sm:$0xff] %v5679_v47  ;;  %v5685_v50 = vadd.f32 %v706_v49, %v672_v48 }
 0x285   :  { %v733_v51 = vmul.f32 0.35355338, %v5685_v50  ;;  %v5697_v55 = vrot.slane %v5685_v50, 2  ;;  %v5700_v56 = vrot.slane %v5685_v50, 4  ;;  %v5706_v58 = vrot.slane %v5685_v50, 6 }
 0x287   :  { %752 = vst [vmem:[#allocation1 + $0x20] ss:$4 sm:$0xff] %v733_v51  ;;  %v734_v60 = vmul.f32 0.35355338, %v5697_v55  ;;  %v735_v61 = vmul.f32 0.35355338, %v5700_v56 }
 0x288   :  { %v736_v0 = vmul.f32 0.35355338, %v5706_v58 }
 0x28a   :  { %v5688_v52 = vld.sshfl [vmem:[#allocation1] sm:$0xff pattern:$0x73625140]  ;;  %v709_v53 = vpop.f32.mrf.mxu1 }
 0x28b   :  { %755 = vst [vmem:[#allocation1] ss:$4 sm:$0xff] %v5658_v39  ;;  %v5703_v57 = vadd.f32 %v709_v53, %v675_v40 }
 0x28c   :  { %757 = vst [vmem:[#allocation1 + $0x1] ss:$4 sm:$0xff] %v5661_v41 }
 0x28d   :  { %759 = vst [vmem:[#allocation1 + $0x2] ss:$4 sm:$0xff] %v5664_v42  ;;  %v5709_v59 = vrot.slane %v5703_v57, 2  ;;  %v737_v63 = vmul.f32 0.35355338, %v5703_v57 }
 0x28e   :  { %761 = vst [vmem:[#allocation1 + $0x3] ss:$4 sm:$0xff] %v5667_v43  ;;  %v5694_v54 = vld.sshfl [vmem:[#allocation1 + $0x20] sm:$0xff pattern:$0x73625140] }
 0x28f   :  { %763 = vst [vmem:[#allocation1 + $0x20] ss:$4 sm:$0xff] %v5685_v50  ;;  %v738_v2 = vmul.f32 0.35355338, %v5709_v59 }
 0x295   :  { %v764_v62 = vld.sshfl [vmem:[#allocation1] sm:$0xff pattern:$0x73625140] }
 0x296   :  { %806 = vst [vmem:[#allocation1] ss:$4 sm:$0xff] %v734_v60  ;;  %766 = vrot.lane.b32.xlu1 %v764_v62, %s5242_s20  ;;  %v765_v3 = vld.sshfl [vmem:[#allocation1 + $0x20] sm:$0xff pattern:$0x73625140] }
 0x297   :  { %808 = vst [vmem:[#allocation1 + $0x1] ss:$4 sm:$0xff] %v735_v61  ;;  %768 = vrot.lane.b32.xlu0 %v765_v3, %s5242_s20 }
 0x298   :  { %810 = vst [vmem:[#allocation1 + $0x2] ss:$4 sm:$0xff] %v736_v0 }
 0x299   :  { %812 = vst [vmem:[#allocation1 + $0x3] ss:$4 sm:$0xff] %v737_v63 }
 0x29a   :  { %814 = vst [vmem:[#allocation1 + $0x20] ss:$4 sm:$0xff] %v738_v2 }
 0x2a0   :  { %v5718_v4 = vld.sshfl [vmem:[#allocation1] sm:$0xff pattern:$0x73625140] }
 0x2a1   :  { %817 = vst [vmem:[#allocation1] ss:$4 sm:$0xff] %v5697_v55  ;;  %v5721_v7 = vld.sshfl [vmem:[#allocation1 + $0x20] sm:$0xff pattern:$0x73625140] }
 0x2a2   :  { %819 = vst [vmem:[#allocation1 + $0x1] ss:$4 sm:$0xff] %v5700_v56 }
 0x2a3   :  { %821 = vst [vmem:[#allocation1 + $0x2] ss:$4 sm:$0xff] %v5706_v58 }
 0x2a4   :  { %823 = vst [vmem:[#allocation1 + $0x3] ss:$4 sm:$0xff] %v5703_v57 }
 0x2a5   :  { %825 = vst [vmem:[#allocation1 + $0x20] ss:$4 sm:$0xff] %v5709_v59 }
 0x2ab   :  { %v826_v8 = vld.sshfl [vmem:[#allocation1] sm:$0xff pattern:$0x73625140] }
 0x2ac   :  { %v827_v9 = vld.sshfl [vmem:[#allocation1 + $0x20] sm:$0xff pattern:$0x73625140]  ;;  %909 = vst [vmem:[#allocation1] ss:$4 sm:$0xff] %v5658_v39  ;;  %828 = vrot.lane.b32.xlu1 %v826_v8, %s5242_s20 }
 0x2ad   :  { %911 = vst [vmem:[#allocation1 + $0x1] ss:$4 sm:$0xff] %v5661_v41  ;;  %830 = vrot.lane.b32.xlu0 %v827_v9, %s5242_s20 }
 0x2ae   :  { %913 = vst [vmem:[#allocation1 + $0x2] ss:$4 sm:$0xff] %v5664_v42 }
 0x2af   :  { %915 = vst [vmem:[#allocation1 + $0x3] ss:$4 sm:$0xff] %v5667_v43 }
 0x2b0   :  { %917 = vst [vmem:[#allocation1 + $0x20] ss:$4 sm:$0xff] %v5685_v50 }
 0x2b6   :  { %v918_v11 = vld.sshfl [vmem:[#allocation1] sm:$0xff pattern:$0x73625140] }
 0x2b7   :  { %957 = vst [vmem:[#allocation1] ss:$4 sm:$0xff] %v5697_v55  ;;  %v919_v12 = vld.sshfl [vmem:[#allocation1 + $0x20] sm:$0xff pattern:$0x73625140] }
 0x2b8   :  { %959 = vst [vmem:[#allocation1 + $0x1] ss:$4 sm:$0xff] %v5700_v56 }
 0x2b9   :  { %961 = vst [vmem:[#allocation1 + $0x2] ss:$4 sm:$0xff] %v5706_v58 }
 0x2ba   :  { %963 = vst [vmem:[#allocation1 + $0x3] ss:$4 sm:$0xff] %v5703_v57 }
 0x2bb   :  { %965 = vst [vmem:[#allocation1 + $0x20] ss:$4 sm:$0xff] %v5709_v59 }
 0x2c1   :  { %v966_v13 = vld.sshfl [vmem:[#allocation1] sm:$0xff pattern:$0x73625140] }
 0x2c2   :  { %1004 = vst [vmem:[#allocation1] ss:$4 sm:$0xff] %v5670_v44  ;;  %v5740_v14 = vld.sshfl [vmem:[#allocation1 + $0x20] sm:$0xff pattern:$0x73625140]  ;;  %v4467_v26 = vpack.i.bf16 %v966_v13, %v918_v11 }
 0x2c3   :  { %1006 = vst [vmem:[#allocation1 + $0x1] ss:$4 sm:$0xff] %v5673_v45 }
 0x2c4   :  { %1008 = vst [vmem:[#allocation1 + $0x2] ss:$4 sm:$0xff] %v5676_v46 }
 0x2c5   :  { %1010 = vst [vmem:[#allocation1 + $0x3] ss:$4 sm:$0xff] %v5679_v47 }
 0x2c6   :  { %1012 = vst [vmem:[#allocation1 + $0x20] ss:$4 sm:$0xff] %v733_v51 }
 0x2cc   :  { %v1013_v15 = vld.sshfl [vmem:[#allocation1] sm:$0xff pattern:$0x73625140] }
 0x2cd   :  { %1019 = vst [vmem:[#allocation1] ss:$4 sm:$0xff] %v5658_v39  ;;  %v1014_v16 = vld.sshfl [vmem:[#allocation1 + $0x20] sm:$0xff pattern:$0x73625140] }
 0x2ce   :  { %1021 = vst [vmem:[#allocation1 + $0x1] ss:$4 sm:$0xff] %v5661_v41 }
 0x2cf   :  { %1023 = vst [vmem:[#allocation1 + $0x2] ss:$4 sm:$0xff] %v5664_v42 }
 0x2d0   :  { %1025 = vst [vmem:[#allocation1 + $0x3] ss:$4 sm:$0xff] %v5667_v43 }
 0x2d1   :  { %1027 = vst [vmem:[#allocation1 + $0x20] ss:$4 sm:$0xff] %v5685_v50 }
 0x2d7   :  { %v1028_v17 = vld.sshfl [vmem:[#allocation1] sm:$0xff pattern:$0x73625140] }
 0x2d8   :  { %v1029_v18 = vld.sshfl [vmem:[#allocation1 + $0x20] sm:$0xff pattern:$0x73625140]  ;;  %1065 = vst [vmem:[#allocation1] ss:$4 sm:$0xff] %v734_v60  ;;  %1030 = vrot.lane.b32.xlu0 %v1028_v17, %s5243_s22 }
 0x2d9   :  { %1067 = vst [vmem:[#allocation1 + $0x1] ss:$4 sm:$0xff] %v735_v61  ;;  %1032 = vrot.lane.b32.xlu2 %v1029_v18, %s5243_s22 }
 0x2da   :  { %1069 = vst [vmem:[#allocation1 + $0x2] ss:$4 sm:$0xff] %v736_v0 }
 0x2db   :  { %1071 = vst [vmem:[#allocation1 + $0x3] ss:$4 sm:$0xff] %v737_v63 }
 0x2dc   :  { %1073 = vst [vmem:[#allocation1 + $0x20] ss:$4 sm:$0xff] %v738_v2 }
 0x2e2   :  { %v1074_v19 = vld.sshfl [vmem:[#allocation1] sm:$0xff pattern:$0x73625140] }
 0x2e3   :  { %1080 = vst [vmem:[#allocation1] ss:$4 sm:$0xff] %v5697_v55  ;;  %1076 = vrot.lane.b32.xlu0 %v1074_v19, %s5244_s21  ;;  %v1075_v20 = vld.sshfl [vmem:[#allocation1 + $0x20] sm:$0xff pattern:$0x73625140] }
 0x2e4   :  { %1082 = vst [vmem:[#allocation1 + $0x1] ss:$4 sm:$0xff] %v5700_v56 }
 0x2e5   :  { %1084 = vst [vmem:[#allocation1 + $0x2] ss:$4 sm:$0xff] %v5706_v58 }
 0x2e6   :  { %1086 = vst [vmem:[#allocation1 + $0x3] ss:$4 sm:$0xff] %v5703_v57 }
 0x2e7   :  { %1088 = vst [vmem:[#allocation1 + $0x20] ss:$4 sm:$0xff] %v5709_v59 }
 0x2eb   :  { %922 = vrot.lane.b32.xlu0 %v919_v12, %s5245_s27 }
 0x2ed   :  { %v1089_v21 = vld.sshfl [vmem:[#allocation1] sm:$0xff pattern:$0x73625140] }
 0x2ee   :  { %v1090_v22 = vld.sshfl [vmem:[#allocation1 + $0x20] sm:$0xff pattern:$0x73625140]  ;;  %1170 = vst [vmem:[#allocation1] ss:$4 sm:$0xff] %v5658_v39  ;;  %1091 = vrot.lane.b32.xlu1 %v1089_v21, %s5243_s22 }
 0x2ef   :  { %1172 = vst [vmem:[#allocation1 + $0x1] ss:$4 sm:$0xff] %v5661_v41  ;;  %1093 = vrot.lane.b32.xlu2 %v1090_v22, %s5243_s22 }
 0x2f0   :  { %1174 = vst [vmem:[#allocation1 + $0x2] ss:$4 sm:$0xff] %v5664_v42 }
 0x2f1   :  { %1176 = vst [vmem:[#allocation1 + $0x3] ss:$4 sm:$0xff] %v5667_v43 }
 0x2f2   :  { %1178 = vst [vmem:[#allocation1 + $0x20] ss:$4 sm:$0xff] %v5685_v50 }
 0x2f6   :  { %1078 = vrot.lane.b32.xlu1 %v1075_v20, %s5244_s21 }
 0x2f7   :  { %1015 = vrot.lane.b32.xlu2 %v1013_v15, %s5244_s21 }
 0x2f8   :  { %v5768_v23 = vld.sshfl [vmem:[#allocation1] sm:$0xff pattern:$0x73625140] }
 0x2f9   :  { %1217 = vst [vmem:[#allocation1] ss:$4 sm:$0xff] %v5697_v55  ;;  %v5771_v24 = vld.sshfl [vmem:[#allocation1 + $0x20] sm:$0xff pattern:$0x73625140] }
 0x2fa   :  { %1219 = vst [vmem:[#allocation1 + $0x1] ss:$4 sm:$0xff] %v5700_v56 }
 0x2fb   :  { %1221 = vst [vmem:[#allocation1 + $0x2] ss:$4 sm:$0xff] %v5706_v58 }
 0x2fc   :  { %1223 = vst [vmem:[#allocation1 + $0x3] ss:$4 sm:$0xff] %v5703_v57 }
 0x2fd   :  { %1225 = vst [vmem:[#allocation1 + $0x20] ss:$4 sm:$0xff] %v5709_v59 }
 0x2ff   :  { %1017 = vrot.lane.b32.xlu2 %v1014_v16, %s5244_s21 }
 0x307   :  { %4468 = vrot.lane.b32.xlu2 %v4467_v26, %s5245_s27 }
 0x308   :  { %v767_v31 = vpop.permute.xlu1 %766 }
 0x309   :  { %v769_v27 = vpop.permute.xlu0 %768 }
 0x30a   :  { %4253 = vmatpush.xpose.msk.msra.mxu2 %vm601_vm0, %v769_v27 }
 0x30e   :  { %4254 = vmatpush.xpose.msk.msra.mxu2 %vm601_vm0, %v767_v31 }
 0x311   :  { %4255 = vmatmul.msk.f32.vlgmr.msra.gmra.mxu2 %vm601_vm0, %v5688_v52 }
 0x319   :  { %4256 = vmatmul.msk.f32.gmra.mxu2 %vm601_vm0, %v5694_v54 }
 0x31e   :  { %v829_v34 = vpop.permute.xlu1 %828 }
 0x31f   :  { %v831_v32 = vpop.permute.xlu0 %830 }
 0x320   :  { %4257 = vmatpush.xpose.msk.msra.mxu3 %vm601_vm0, %v831_v32 }
 0x324   :  { %4258 = vmatpush.xpose.msk.msra.mxu3 %vm601_vm0, %v829_v34 }
 0x327   :  { %4259 = vmatmul.msk.f32.vlgmr.msra.gmra.mxu3 %vm601_vm0, %v5718_v4 }
 0x32f   :  { %4260 = vmatmul.msk.f32.gmra.mxu3 %vm601_vm0, %v5721_v7 }
 0x333   :  { %v1033_v36 = vpop.permute.xlu2 %1032 }
 0x334   :  { %4267 = vmatpush.xpose.msk.msrb.mxu0 %vm601_vm0, %v1033_v36 }
 0x349   :  { %v1094_v38 = vpop.permute.xlu2 %1093 }
 0x34a   :  { %4271 = vmatpush.xpose.msk.msrb.mxu1 %vm601_vm0, %v1094_v38  ;;  %v1031_v39 = vpop.permute.xlu0 %1030 }
 0x34b   :  { %4268 = vmatpush.xpose.msk.msrb.mxu0 %vm601_vm0, %v1031_v39 }
 0x351   :  { %v1016_v40 = vpop.permute.xlu2 %1015 }
 0x352   :  { %4269 = vmatmul.msk.f32.vlgmr.msrb.gmra.mxu0 %vm601_vm0, %v1016_v40 }
 0x355   :  { %v1077_v41 = vpop.permute.xlu0 %1076 }
 0x359   :  { %v1018_v42 = vpop.permute.xlu2 %1017 }
 0x35a   :  { %4270 = vmatmul.msk.f32.gmra.mxu0 %vm601_vm0, %v1018_v42 }
 0x35d   :  { %v923_v43 = vpop.permute.xlu0 %922 }
 0x35e   :  { %4261 = vmatpush.msk.msrb.mxu2 %vm931_vm2, %v923_v43 }
 0x360   :  { %v1092_v44 = vpop.permute.xlu1 %1091 }
 0x361   :  { %4272 = vmatpush.xpose.msk.msrb.mxu1 %vm601_vm0, %v1092_v44  ;;  %v5798_v45 = vpop.permute.xlu2 %4468  ;;  %v1226_v44 = vld.sshfl [vmem:[#allocation1] sm:$0xff pattern:$0x73625140] }
 0x362   :  { %v4470_v46 = vunpack.i.l.bf16 %v5798_v45  ;;  %v4471_v31 = vunpack.i.h.bf16 %v5798_v45 }
 0x364   :  { %4273 = vmatmul.msk.f32.vlgmr.msrb.gmra.mxu1 %vm601_vm0, %v1077_v41  ;;  %949 = vmatpush.msrb.mxu2 %v4470_v46 }
 0x368   :  { %v1079_v47 = vpop.permute.xlu1 %1078 }
 0x36c   :  { %4274 = vmatmul.msk.f32.gmra.mxu1 %vm601_vm0, %v1079_v47  ;;  %v4472_v47 = vpack.i.bf16 %v1226_v44, %v5768_v23 }
 0x394   :  { %v795_v48 = vpop.f32.mrf.mxu2 }
 0x395   :  { %v864_v49 = vsel %vm863_vm3, %v795_v48, -inf }
 0x396   :  { %865 = vmax.xlane.f32.xlu0 %v864_v49 }
 0x39c   :  { %v798_v50 = vpop.f32.mrf.mxu2 }
 0x39d   :  { %v868_v51 = vsel %vm867_vm4, %v798_v50, -inf }
 0x39e   :  { %869 = vmax.xlane.f32.xlu2 %v868_v51 }
 0x3aa   :  { %v857_v52 = vpop.f32.mrf.mxu3 }
 0x3ab   :  { %v871_v53 = vsel %vm863_vm3, %v857_v52, -inf }
 0x3ac   :  { %872 = vmax.xlane.f32.xlu1 %v871_v53 }
 0x3b2   :  { %v860_v54 = vpop.f32.mrf.mxu3 }
 0x3b3   :  { %v874_v55 = vsel %vm867_vm4, %v860_v54, -inf }
 0x3b4   :  { %875 = vmax.xlane.f32.xlu2 %v874_v55 }
 0x3c5   :  { %970 = vrot.lane.b32.xlu1 %v5740_v14, %s5245_s27 }
 0x3cf   :  { %v1059_v56 = vpop.f32.mrf.mxu0 }
 0x3d0   :  { %v1126_v57 = vsel %vm863_vm3, %v1059_v56, -inf }
 0x3d1   :  { %1127 = vmax.xlane.f32.xlu0 %v1126_v57 }
 0x3d7   :  { %v5810_v58 = vpop.f32.mrf.mxu0 }
 0x3d8   :  { %v1129_v59 = vsel %vm867_vm4, %v5810_v58, -inf }
 0x3d9   :  { %1130 = vmax.xlane.f32.xlu0 %v1129_v59 }
 0x3e1   :  { %v1120_v60 = vpop.f32.mrf.mxu1 }
 0x3e2   :  { %v1132_v63 = vsel %vm863_vm3, %v1120_v60, -inf }
 0x3e9   :  { %v1123_v61 = vpop.f32.mrf.mxu1 }
 0x3ea   :  { %v1135_v62 = vsel %vm867_vm4, %v1123_v61, -inf }
 0x3eb   :  { %1136 = vmax.xlane.f32.xlu2 %v1135_v62 }
 0x3ef   :  { %1133 = vmax.xlane.f32.xlu1 %v1132_v63 }
 0x409   :  { %v866_v0 = vpop.xlane.xlu0 %865 }
 0x40a   :  { %v877_v2 = vsub.f32 %v795_v48, %v866_v0 }
 0x40c   :  { %v881_v3 = vmul.f32 1.442695, %v877_v2 }
 0x40e   :  { %4504 = vpow2.f32 %v881_v3 }
 0x411   :  { %v870_v4 = vpop.xlane.xlu2 %869 }
 0x412   :  { %v878_v7 = vsub.f32 %v798_v50, %v870_v4 }
 0x414   :  { %v5816_v8 = vpop.eup %4504  ;;  %v883_v9 = vmul.f32 1.442695, %v878_v7 }
 0x415   :  { %v889_v11 = vsel %vm863_vm3, %v5816_v8, 0.0 }
 0x416   :  { %4506 = vpow2.f32 %v883_v9  ;;  %890 = vadd.xlane.f32.xlu1 %v889_v11 }
 0x41c   :  { %v5820_v12 = vpop.eup %4506 }
 0x41d   :  { %v892_v13 = vsel %vm867_vm4, %v5820_v12, 0.0 }
 0x41e   :  { %893 = vadd.xlane.f32.xlu1 %v892_v13 }
 0x41f   :  { %v873_v14 = vpop.xlane.xlu1 %872 }
 0x420   :  { %v879_v15 = vsub.f32 %v857_v52, %v873_v14 }
 0x422   :  { %v885_v16 = vmul.f32 1.442695, %v879_v15 }
 0x424   :  { %4508 = vpow2.f32 %v885_v16 }
 0x427   :  { %v876_v17 = vpop.xlane.xlu2 %875 }
 0x428   :  { %v880_v18 = vsub.f32 %v860_v54, %v876_v17  ;;  %v1227_v54 = vld.sshfl [vmem:[#allocation1 + $0x20] sm:$0xff pattern:$0x73625140] }
 0x42a   :  { %v4509_v19 = vpop.eup %4508  ;;  %v887_v20 = vmul.f32 1.442695, %v880_v18 }
 0x42b   :  { %v895_v21 = vsel %vm863_vm3, %v4509_v19, 0.0 }
 0x42c   :  { %4510 = vpow2.f32 %v887_v20  ;;  %896 = vadd.xlane.f32.xlu2 %v895_v21 }
 0x432   :  { %v4511_v22 = vpop.eup %4510 }
 0x433   :  { %v898_v26 = vsel %vm867_vm4, %v4511_v22, 0.0 }
 0x434   :  { %899 = vadd.xlane.f32.xlu0 %v898_v26 }
 0x437   :  { %v971_v27 = vpop.permute.xlu1 %970 }
 0x438   :  { %4264 = vmatpush.msk.msrb.mxu3 %vm931_vm2, %v971_v27 }
 0x43a   :  { %996 = vmatpush.msrb.mxu3 %v4471_v31  ;;  %v487_v31 = vld [vmem:[%s6701_s17 + $0x8] sm:$0xff] }
 0x43b   :  { %1315 = vmatpush.msra.mxu0 %v487_v31 }
 0x444   :  { %v1128_v32 = vpop.xlane.xlu0 %1127 }
 0x445   :  { %v1138_v34 = vsub.f32 %v1059_v56, %v1128_v32 }
 0x447   :  { %v1142_v36 = vmul.f32 1.442695, %v1138_v34 }
 0x448   :  { %1183 = vrot.lane.b32.xlu0 %v5771_v24, %s5246_s2 }
 0x449   :  { %4512 = vpow2.f32 %v1142_v36 }
 0x44c   :  { %v1131_v51 = vpop.xlane.xlu0 %1130 }
 0x44d   :  { %v1139_v52 = vsub.f32 %v5810_v58, %v1131_v51 }
 0x44f   :  { %v4513_v38 = vpop.eup %4512  ;;  %v1144_v53 = vmul.f32 1.442695, %v1139_v52 }
 0x450   :  { %v1150_v39 = vsel %vm863_vm3, %v4513_v38, 0.0 }
 0x451   :  { %1151 = vadd.xlane.f32.xlu2 %v1150_v39 }
 0x45e   :  { %v1137_v40 = vpop.xlane.xlu2 %1136 }
 0x45f   :  { %v1141_v41 = vsub.f32 %v1123_v61, %v1137_v40 }
 0x461   :  { %v1148_v46 = vmul.f32 1.442695, %v1141_v41 }
 0x462   :  { %v1134_v42 = vpop.xlane.xlu1 %1133 }
 0x463   :  { %v1140_v43 = vsub.f32 %v1120_v60, %v1134_v42 }
 0x465   :  { %v1146_v45 = vmul.f32 1.442695, %v1140_v43 }
 0x467   :  { %4514 = vpow2.f32 %v1146_v45 }
 0x468   :  { %4516 = vpow2.f32 %v1148_v46 }
 0x469   :  { %4473 = vrot.lane.b32.xlu2 %v4472_v47, %s5246_s2  ;;  %4518 = vpow2.f32 %v1144_v53 }
 0x46d   :  { %v4515_v48 = vpop.eup %4514 }
 0x46e   :  { %v4517_v24 = vpop.eup %4516  ;;  %v1156_v49 = vsel %vm863_vm3, %v4515_v48, 0.0 }
 0x46f   :  { %1157 = vadd.xlane.f32.xlu1 %v1156_v49  ;;  %v1159_v50 = vsel %vm867_vm4, %v4517_v24, 0.0  ;;  %v4519_v55 = vpop.eup %4518 }
 0x470   :  { %v1153_v57 = vsel %vm867_vm4, %v4519_v55, 0.0 }
 0x472   :  { %1160 = vadd.xlane.f32.xlu0 %v1159_v50 }
 0x488   :  { %1230 = vrot.lane.b32.xlu1 %v1227_v54, %s5246_s2 }
 0x489   :  { %v891_v23 = vpop.xlane.xlu1 %890 }
 0x48a   :  { %4520 = vrcp.f32 %v891_v23 }
 0x490   :  { %v4521_v56 = vpop.eup %4520 }
 0x491   :  { %v894_v59 = vpop.xlane.xlu1 %893  ;;  %v905_v60 = vmul.f32 %v4521_v56, %v5816_v8 }
 0x492   :  { %1154 = vadd.xlane.f32.xlu2 %v1153_v57  ;;  %4522 = vrcp.f32 %v894_v59 }
 0x493   :  { %4262 = vmatmul.msk.f32.vlgmr.msrb.gmra.mxu2 %vm863_vm3, %v905_v60 }
 0x498   :  { %v4523_v61 = vpop.eup %4522 }
 0x499   :  { %v906_v58 = vmul.f32 %v4523_v61, %v5820_v12  ;;  %v4500_v61 = vld [vmem:[%s6702_s26] ss:$0 sm:$0xff] }
 0x49b   :  { %4263 = vmatmul.msk.f32.gmra.mxu2 %vm863_vm3, %v906_v58 }
 0x49f   :  { %v897_v62 = vpop.xlane.xlu2 %896 }
 0x4a0   :  { %4524 = vrcp.f32 %v897_v62 }
 0x4a6   :  { %v4525_v63 = vpop.eup %4524 }
 0x4a7   :  { %v900_v0 = vpop.xlane.xlu0 %899  ;;  %v907_v2 = vmul.f32 %v4525_v63, %v4509_v19 }
 0x4a8   :  { %4526 = vrcp.f32 %v900_v0  ;;  %v5859_v0 = vrot.slane %v4500_v61, 2 }
 0x4a9   :  { %4265 = vmatmul.msk.f32.vlgmr.msrb.gmra.mxu3 %vm863_vm3, %v907_v2  ;;  %v5861_v2 = vrot.slane %v4500_v61, 4 }
 0x4ae   :  { %v4527_v3 = vpop.eup %4526 }
 0x4af   :  { %v908_v4 = vmul.f32 %v4527_v3, %v4511_v22  ;;  %v5863_v3 = vrot.slane %v4500_v61, 6 }
 0x4b1   :  { %4266 = vmatmul.msk.f32.gmra.mxu3 %vm863_vm3, %v908_v4 }
 0x4ba   :  { %v1184_v7 = vpop.permute.xlu0 %1183 }
 0x4bb   :  { %4275 = vmatpush.msk.msra.mxu2 %vm931_vm2, %v1184_v7 }
 0x4c4   :  { %v1152_v8 = vpop.xlane.xlu2 %1151 }
 0x4c5   :  { %4528 = vrcp.f32 %v1152_v8 }
 0x4cb   :  { %v4529_v9 = vpop.eup %4528 }
 0x4cc   :  { %v4474_v11 = vpop.permute.xlu2 %4473  ;;  %v1166_v13 = vmul.f32 %v4529_v9, %v4513_v38 }
 0x4cd   :  { %v4475_v12 = vunpack.i.l.bf16 %v4474_v11  ;;  %v4476_v18 = vunpack.i.h.bf16 %v4474_v11  ;;  %v637_v11 = vrot.slane %v5644_v33, 2 }
 0x4cf   :  { %1209 = vmatpush.msra.mxu2 %v4475_v12  ;;  %v638_v12 = vrot.slane %v5644_v33, 4 }
 0x4d0   :  { %4276 = vmatmul.msk.f32.vlgmr.msra.gmra.mxu2 %vm863_vm3, %v1166_v13  ;;  %v639_v13 = vrot.slane %v5644_v33, 6 }
 0x4e2   :  { %v1158_v14 = vpop.xlane.xlu1 %1157 }
 0x4e3   :  { %4530 = vrcp.f32 %v1158_v14 }
 0x4e5   :  { %v1161_v15 = vpop.xlane.xlu0 %1160 }
 0x4e6   :  { %4532 = vrcp.f32 %v1161_v15 }
 0x4e9   :  { %v4531_v16 = vpop.eup %4530 }
 0x4ea   :  { %v1168_v19 = vmul.f32 %v4531_v16, %v4515_v48  ;;  %v486_v48 = vld [vmem:[%s6701_s17] sm:$0xff] }
 0x4eb   :  { %1377 = vmatpush.msra.mxu1 %v486_v48 }
 0x4ec   :  { %v4533_v20 = vpop.eup %4532 }
 0x4ed   :  { %v1169_v21 = vmul.f32 %v4533_v20, %v4517_v24 }
 0x4fa   :  { %v1231_v17 = vpop.permute.xlu1 %1230 }
 0x4fb   :  { %4278 = vmatpush.msk.msra.mxu3 %vm931_vm2, %v1231_v17 }
 0x4fd   :  { %1256 = vmatpush.msra.mxu3 %v4476_v18 }
 0x4fe   :  { %4279 = vmatmul.msk.f32.vlgmr.msra.gmra.mxu3 %vm863_vm3, %v1168_v19  ;;  %v490_v19 = vld [vmem:[%s6703_s14 + $0x8] sm:$0xff] }
 0x4ff   :  { %1512 = vmatpush.msrb.mxu2 %v490_v19  ;;  %v493_v19 = vld [vmem:[%s6707_s15 + $0x8] sm:$0xff] }
 0x500   :  { %1575 = vmatpush.msrb.mxu3 %v493_v19 }
 0x505   :  { %v1155_v22 = vpop.xlane.xlu2 %1154 }
 0x506   :  { %4534 = vrcp.f32 %v1155_v22  ;;  %4280 = vmatmul.msk.f32.gmra.mxu3 %vm863_vm3, %v1169_v21 }
 0x50c   :  { %v4535_v26 = vpop.eup %4534 }
 0x50d   :  { %v1167_v27 = vmul.f32 %v4535_v26, %v4519_v55 }
 0x50f   :  { %4277 = vmatmul.msk.f32.gmra.mxu2 %vm863_vm3, %v1167_v27  ;;  %v489_v27 = vld [vmem:[%s6703_s14] sm:$0xff] }
 0x510   :  { %1513 = vmatpush.msrb.mxu2 %v489_v27  ;;  %v499_v27 = vld [vmem:[#allocation7] sm:$0xff] }
 0x516   :  { %v951_v32 = vpop.f32.mrf.mxu2 }
 0x517   :  { %v1330_v50 = vrot.slane %v951_v32, 2  ;;  %v1331_v52 = vrot.slane %v951_v32, 4  ;;  %v1332_v53 = vrot.slane %v951_v32, 6 }
 0x51e   :  { %v954_v34 = vpop.f32.mrf.mxu2 }
 0x52c   :  { %v998_v42 = vpop.f32.mrf.mxu3 }
 0x52d   :  { %v1333_v23 = vrot.slane %v998_v42, 2  ;;  %v1334_v55 = vrot.slane %v998_v42, 4  ;;  %v1335_v56 = vrot.slane %v998_v42, 6 }
 0x534   :  { %v1001_v43 = vpop.f32.mrf.mxu3 }
 0x553   :  { %v1211_v36 = vpop.f32.mrf.mxu2 }
 0x554   :  { %v1268_v38 = vrot.slane %v1211_v36, 2  ;;  %v1269_v39 = vrot.slane %v1211_v36, 4  ;;  %v1270_v40 = vrot.slane %v1211_v36, 6  ;;  %1274 = vst [vmem:[#allocation1] ss:$4 sm:$0xff] %v1211_v36 }
 0x556   :  { %1276 = vst [vmem:[#allocation1 + $0x1] ss:$4 sm:$0xff] %v1268_v38 }
 0x557   :  { %1278 = vst [vmem:[#allocation1 + $0x2] ss:$4 sm:$0xff] %v1269_v39  ;;  %v640_v39 = vrot.slane %v5650_v35, 2 }
 0x558   :  { %1280 = vst [vmem:[#allocation1 + $0x3] ss:$4 sm:$0xff] %v1270_v40  ;;  %v641_v40 = vrot.slane %v5650_v35, 4 }
 0x55f   :  { %v1289_v41 = vld.sshfl [vmem:[#allocation1] sm:$0xff pattern:$0x73625140] }
 0x560   :  { %4281 = vmatmul.msk.f32.vlgmr.msra.gmra.mxu0 %vm601_vm0, %v1289_v41  ;;  %v642_v41 = vrot.slane %v5650_v35, 6 }
 0x581   :  { %v1258_v44 = vpop.f32.mrf.mxu3 }
 0x582   :  { %v1271_v46 = vrot.slane %v1258_v44, 2  ;;  %v1272_v45 = vrot.slane %v1258_v44, 4  ;;  %v1273_v47 = vrot.slane %v1258_v44, 6  ;;  %1284 = vst [vmem:[#allocation1 + $0x21] ss:$4 sm:$0xff] %v1258_v44 }
 0x584   :  { %1286 = vst [vmem:[#allocation1 + $0x22] ss:$4 sm:$0xff] %v1271_v46 }
 0x585   :  { %1288 = vst [vmem:[#allocation1 + $0x23] ss:$4 sm:$0xff] %v1272_v45 }
 0x586   :  { %1291 = vst [vmem:[#allocation1] ss:$4 sm:$0xff] %v1273_v47 }
 0x589   :  { %v1261_v24 = vpop.f32.mrf.mxu3 }
 0x58a   :  { %1292 = vst [vmem:[#allocation1 + $0x1] ss:$4 sm:$0xff] %v1261_v24 }
 0x591   :  { %v1293_v49 = vld.sshfl [vmem:[#allocation1] sm:$0xff pattern:$0x73625140] }
 0x592   :  { %v1214_v51 = vpop.f32.mrf.mxu2  ;;  %1336 = vst [vmem:[#allocation1] ss:$4 sm:$0xff] %v951_v32 }
 0x593   :  { %1282 = vst [vmem:[#allocation1 + $0x20] ss:$4 sm:$0xff] %v1214_v51 }
 0x594   :  { %1338 = vst [vmem:[#allocation1 + $0x1] ss:$4 sm:$0xff] %v1330_v50 }
 0x595   :  { %1340 = vst [vmem:[#allocation1 + $0x2] ss:$4 sm:$0xff] %v1331_v52 }
 0x596   :  { %1342 = vst [vmem:[#allocation1 + $0x3] ss:$4 sm:$0xff] %v1332_v53 }
 0x59a   :  { %v1290_v54 = vld.sshfl [vmem:[#allocation1 + $0x20] sm:$0xff pattern:$0x73625140] }
 0x59b   :  { %1344 = vst [vmem:[#allocation1 + $0x20] ss:$4 sm:$0xff] %v954_v34  ;;  %4282 = vmatmul.msk.f32.gmra.mxu0 %vm601_vm0, %v1290_v54  ;;  %v643_v54 = vrot.slane %v5654_v37, 2 }
 0x59c   :  { %1346 = vst [vmem:[#allocation1 + $0x21] ss:$4 sm:$0xff] %v998_v42 }
 0x59d   :  { %1348 = vst [vmem:[#allocation1 + $0x22] ss:$4 sm:$0xff] %v1333_v23  ;;  %v1351_v57 = vld.sshfl [vmem:[#allocation1] sm:$0xff pattern:$0x73625140] }
 0x59e   :  { %1350 = vst [vmem:[#allocation1 + $0x23] ss:$4 sm:$0xff] %v1334_v55  ;;  %4284 = vmatmul.msk.f32.vlgmr.msra.gmra.mxu1 %vm601_vm0, %v1351_v57 }
 0x59f   :  { %1353 = vst [vmem:[#allocation1] ss:$4 sm:$0xff] %v1335_v56  ;;  %v5923_v56 = vld [vmem:[%s6704_s11] ss:$0 sm:$0xff] }
 0x5a0   :  { %1354 = vst [vmem:[#allocation1 + $0x1] ss:$4 sm:$0xff] %v1001_v43 }
 0x5a3   :  { %4283 = vmatmul.msk.f32.gmra.mxu0 %vm601_vm0, %v1293_v49 }
 0x5a5   :  { %v1352_v59 = vld.sshfl [vmem:[#allocation1 + $0x20] sm:$0xff pattern:$0x73625140] }
 0x5a6   :  { %4285 = vmatmul.msk.f32.gmra.mxu1 %vm601_vm0, %v1352_v59  ;;  %v4502_v59 = vld [vmem:[%s6705_s12] ss:$0 sm:$0xff] }
 0x5a7   :  { %v1355_v60 = vld.sshfl [vmem:[#allocation1] sm:$0xff pattern:$0x73625140]  ;;  %1616 = vrot.lane.b32.xlu1 %v4502_v59, %s5245_s27 }
 0x5ae   :  { %4286 = vmatmul.msk.f32.gmra.mxu1 %vm601_vm0, %v1355_v60 }
 0x5dd   :  { %v1317_v58 = vpop.f32.mrf.mxu0 }
 0x618   :  { %v1320_v18 = vpop.f32.mrf.mxu0 }
 0x61b   :  { %v1379_v62 = vpop.f32.mrf.mxu1 }
 0x61c   :  { %v1380_v63 = vadd.f32 %v1379_v62, %v1317_v58  ;;  %v5934_v58 = vrot.slane %v5923_v56, 2  ;;  %v494_v62 = vld [vmem:[%s6706_s29] sm:$0x1] }
 0x61e   :  { %v1391_v4 = vrot.slane %v1380_v63, 2  ;;  %v1392_v7 = vrot.slane %v1380_v63, 4  ;;  %v1393_v8 = vrot.slane %v1380_v63, 6  ;;  %v1414_v9 = vadd.f32 %v4500_v61, %v1380_v63 }
 0x61f   :  { %v5946_v63 = vrot.slane %v5923_v56, 6 }
 0x620   :  { %v1415_v14 = vadd.f32 %v5859_v0, %v1391_v4  ;;  %v1416_v15 = vadd.f32 %v5861_v2, %v1392_v7  ;;  %v1417_v16 = vadd.f32 %v5863_v3, %v1393_v8  ;;  %v5872_v17 = vadd.f32 %v1414_v9, %v5644_v33  ;;  %v1323_v24 = vpop.f32.mrf.mxu0 }
 0x621   :  { %v5948_v7 = vperm.slane %v494_v62, 0 }
 0x622   :  { %v5877_v20 = vadd.f32 %v1415_v14, %v637_v11  ;;  %v5881_v21 = vadd.f32 %v1416_v15, %v638_v12  ;;  %v5885_v22 = vadd.f32 %v1417_v16, %v639_v13  ;;  %1449 = vst [vmem:[#allocation1] ss:$4 sm:$0xff] %v5872_v17 }
 0x623   :  { %v1382_v26 = vpop.f32.mrf.mxu1  ;;  %v5956_v9 = vrot.slane %v5948_v7, 2  ;;  %v5959_v14 = vrot.slane %v5948_v7, 4  ;;  %v5968_v16 = vrot.slane %v5948_v7, 6 }
 0x624   :  { %1451 = vst [vmem:[#allocation1 + $0x1] ss:$4 sm:$0xff] %v5877_v20  ;;  %v1383_v31 = vadd.f32 %v1382_v26, %v1320_v18  ;;  %v492_v26 = vld [vmem:[%s6707_s15] sm:$0xff] }
 0x625   :  { %1453 = vst [vmem:[#allocation1 + $0x2] ss:$4 sm:$0xff] %v5881_v21  ;;  %1576 = vmatpush.msrb.mxu3 %v492_v26 }
 0x626   :  { %1455 = vst [vmem:[#allocation1 + $0x3] ss:$4 sm:$0xff] %v5885_v22  ;;  %v1394_v32 = vrot.slane %v1383_v31, 2  ;;  %v1395_v34 = vrot.slane %v1383_v31, 4  ;;  %v1396_v36 = vrot.slane %v1383_v31, 6  ;;  %v1418_v38 = vadd.f32 %v4500_v61, %v1383_v31  ;;  %v500_v31 = vld [vmem:[#allocation7 + $0x8] sm:$0xff] }
 0x627   :  { %1666 = vmatpush.msrb.mxu1 %v500_v31 }
 0x628   :  { %v1419_v42 = vadd.f32 %v4500_v61, %v1394_v32  ;;  %v1420_v43 = vadd.f32 %v5859_v0, %v1395_v34  ;;  %v1421_v44 = vadd.f32 %v5861_v2, %v1396_v36  ;;  %v5898_v46 = vadd.f32 %v1418_v38, %v5650_v35  ;;  %v497_v32 = vld [vmem:[#allocation6 + $0x8] sm:$0xff]  ;;  %v496_v36 = vld [vmem:[#allocation6] sm:$0xff] }
 0x629   :  { %v4477_v34 = vpack.i.bf16 %v499_v27, %v500_v31  ;;  %1634 = vmatpush.msrb.mxu0 %v497_v32  ;;  %1667 = vmatpush.msrb.mxu1 %v499_v27 }
 0x62a   :  { %v5902_v45 = vadd.f32 %v1419_v42, %v640_v39  ;;  %v5906_v47 = vadd.f32 %v1420_v43, %v641_v40  ;;  %v5910_v48 = vadd.f32 %v1421_v44, %v642_v41  ;;  %1457 = vst [vmem:[#allocation1 + $0x20] ss:$4 sm:$0xff] %v5898_v46  ;;  %v1617_v42 = vpop.permute.xlu1 %1616 }
 0x62b   :  { %v1385_v49 = vpop.f32.mrf.mxu1  ;;  %4478 = vrot.lane.b32.xlu1 %v4477_v34, %s5242_s20  ;;  %1635 = vmatpush.msrb.mxu0 %v496_v36 }
 0x62c   :  { %1459 = vst [vmem:[#allocation1 + $0x21] ss:$4 sm:$0xff] %v5902_v45  ;;  %v1386_v50 = vadd.f32 %v1385_v49, %v1323_v24  ;;  %4293 = vmatmul.msk.f32.vlgmr.msrb.gmra.mxu0 %vm679_vm1, %v1617_v42 }
 0x62d   :  { %v1464_v51 = vld.sshfl [vmem:[#allocation1] sm:$0xff pattern:$0x73625140]  ;;  %1461 = vst [vmem:[#allocation1 + $0x22] ss:$4 sm:$0xff] %v5906_v47 }
 0x62e   :  { %1463 = vst [vmem:[#allocation1 + $0x23] ss:$4 sm:$0xff] %v5910_v48  ;;  %v1397_v52 = vrot.slane %v1386_v50, 2  ;;  %v1422_v53 = vadd.f32 %v5863_v3, %v1386_v50  ;;  %4287 = vmatmul.msk.f32.vlgmr.msrb.gmra.mxu2 %vm679_vm1, %v1464_v51 }
 0x630   :  { %v1423_v23 = vadd.f32 %v4500_v61, %v1397_v52  ;;  %v5920_v55 = vadd.f32 %v1422_v53, %v5654_v37  ;;  %v5939_v61 = vrot.slane %v5923_v56, 4  ;;  %v501_v52 = vld [vmem:[#allocation9] sm:$0x1] }
 0x632   :  { %v5927_v57 = vadd.f32 %v1423_v23, %v643_v54  ;;  %1466 = vst [vmem:[#allocation1] ss:$4 sm:$0xff] %v5920_v55 }
 0x634   :  { %1467 = vst [vmem:[#allocation1 + $0x1] ss:$4 sm:$0xff] %v5927_v57 }
 0x635   :  { %v1465_v60 = vld.sshfl [vmem:[#allocation1 + $0x20] sm:$0xff pattern:$0x73625140] }
 0x636   :  { %1477 = vst [vmem:[#allocation1 + $0x20] ss:$4 sm:$0xff] %v5923_v56  ;;  %4288 = vmatmul.msk.f32.gmra.mxu2 %vm679_vm1, %v1465_v60 }
 0x637   :  { %1479 = vst [vmem:[#allocation1 + $0x21] ss:$4 sm:$0xff] %v5923_v56 }
 0x638   :  { %1481 = vst [vmem:[#allocation1 + $0x22] ss:$4 sm:$0xff] %v5934_v58 }
 0x639   :  { %1483 = vst [vmem:[#allocation1 + $0x23] ss:$4 sm:$0xff] %v5939_v61 }
 0x63b   :  { %v1468_v4 = vld.sshfl [vmem:[#allocation1] sm:$0xff pattern:$0x73625140] }
 0x63c   :  { %1469 = vst [vmem:[#allocation1] ss:$4 sm:$0xff] %v5923_v56 }
 0x63d   :  { %1471 = vst [vmem:[#allocation1 + $0x1] ss:$4 sm:$0xff] %v5934_v58 }
 0x63e   :  { %1473 = vst [vmem:[#allocation1 + $0x2] ss:$4 sm:$0xff] %v5939_v61  ;;  %4289 = vmatmul.msk.f32.gmra.mxu2 %vm679_vm1, %v1468_v4 }
 0x63f   :  { %1475 = vst [vmem:[#allocation1 + $0x3] ss:$4 sm:$0xff] %v5946_v63 }
 0x640   :  { %v1485_v8 = vld.sshfl [vmem:[#allocation1 + $0x20] sm:$0xff pattern:$0x73625140] }
 0x641   :  { %1539 = vst [vmem:[#allocation1 + $0x21] ss:$4 sm:$0xff] %v5948_v7 }
 0x642   :  { %1541 = vst [vmem:[#allocation1 + $0x22] ss:$4 sm:$0xff] %v5956_v9 }
 0x643   :  { %1543 = vst [vmem:[#allocation1 + $0x23] ss:$4 sm:$0xff] %v5959_v14 }
 0x644   :  { %1537 = vst [vmem:[#allocation1 + $0x20] ss:$4 sm:$0xff] %v5948_v7 }
 0x646   :  { %v1484_v15 = vld.sshfl [vmem:[#allocation1] sm:$0xff pattern:$0x73625140] }
 0x647   :  { %1486 = vst [vmem:[#allocation1] ss:$4 sm:$0xff] %v5946_v63 }
 0x648   :  { %1487 = vst [vmem:[#allocation1 + $0x1] ss:$4 sm:$0xff] %v5923_v56 }
 0x64b   :  { %v1545_v53 = vld.sshfl [vmem:[#allocation1 + $0x20] sm:$0xff pattern:$0x73625140] }
 0x64f   :  { %v1488_v18 = vld.sshfl [vmem:[#allocation1] sm:$0xff pattern:$0x73625140] }
 0x650   :  { %1529 = vst [vmem:[#allocation1] ss:$4 sm:$0xff] %v5948_v7 }
 0x651   :  { %1531 = vst [vmem:[#allocation1 + $0x1] ss:$4 sm:$0xff] %v5956_v9 }
 0x652   :  { %1533 = vst [vmem:[#allocation1 + $0x2] ss:$4 sm:$0xff] %v5959_v14 }
 0x653   :  { %1535 = vst [vmem:[#allocation1 + $0x3] ss:$4 sm:$0xff] %v5968_v16 }
 0x65a   :  { %v1544_v38 = vld.sshfl [vmem:[#allocation1] sm:$0xff pattern:$0x73625140] }
 0x65b   :  { %1546 = vst [vmem:[#allocation1] ss:$4 sm:$0xff] %v5968_v16 }
 0x65c   :  { %1547 = vst [vmem:[#allocation1 + $0x1] ss:$4 sm:$0xff] %v5948_v7 }
 0x663   :  { %v1548_v23 = vld.sshfl [vmem:[#allocation1] sm:$0xff pattern:$0x73625140] }
 0x664   :  { %1645 = vst [vmem:[#allocation1] ss:$9 sm:$0xff] %v501_v52 }
 0x665   :  { %1647 = vst [vmem:[#allocation1 + $0x1] ss:$9 sm:$0xff] %v501_v52 }
 0x69d   :  { %v4479_v60 = vpop.permute.xlu1 %4478 }
 0x69e   :  { %v4480_v4 = vunpack.i.l.bf16 %v4479_v60 }
 0x6a0   :  { %1766 = vmatpush.msra.mxu0 %v4480_v4 }
 0x6b1   :  { %v1515_v43 = vpop.f32.mrf.mxu2 }
 0x6b2   :  { %v1516_v44 = vadd.f32 %v1515_v43, %v1484_v15  ;;  %v5983_v15 = vld [vmem:[#allocation1] sm:$0xff] }
 0x6b4   :  { %4290 = vmatmul.msk.f32.vlgmr.msrb.gmra.mxu3 %vm679_vm1, %v1516_v44 }
 0x6b9   :  { %v1518_v24 = vpop.f32.mrf.mxu2 }
 0x6ba   :  { %v1519_v49 = vadd.f32 %v1518_v24, %v1485_v8 }
 0x6bc   :  { %4291 = vmatmul.msk.f32.gmra.mxu3 %vm679_vm1, %v1519_v49 }
 0x6c1   :  { %v1521_v50 = vpop.f32.mrf.mxu2 }
 0x6c2   :  { %v1522_v51 = vadd.f32 %v1521_v50, %v1488_v18  ;;  %v4481_v18 = vunpack.i.h.bf16 %v4479_v60 }
 0x6c4   :  { %4292 = vmatmul.msk.f32.gmra.mxu3 %vm679_vm1, %v1522_v51  ;;  %1767 = vmatpush.msra.mxu0 %v4481_v18  ;;  %v498_v51 = vld [vmem:[%s6708_s19] sm:$0x1] }
 0x737   :  { %v1578_v59 = vpop.f32.mrf.mxu3 }
 0x738   :  { %v1579_v62 = vadd.f32 %v1578_v59, %v1544_v38  ;;  %v1675_v59 = vperm.slane %v501_v52, 0 }
 0x73a   :  { %v1590_v19 = vrot.slane %v1579_v62, 2  ;;  %v1591_v26 = vrot.slane %v1579_v62, 4  ;;  %v1592_v8 = vrot.slane %v1579_v62, 6  ;;  %v1604_v27 = vadd.f32 %v1579_v62, %v5872_v17 }
 0x73b   :  { %v1676_v62 = vrot.slane %v1675_v59, 2 }
 0x73c   :  { %v1605_v31 = vadd.f32 %v1590_v19, %v5877_v20  ;;  %v1606_v32 = vadd.f32 %v1591_v26, %v5881_v21  ;;  %v1607_v34 = vadd.f32 %v1592_v8, %v5885_v22  ;;  %1689 = vst [vmem:[#allocation1] ss:$4 sm:$0xff] %v1604_v27 }
 0x73e   :  { %1691 = vst [vmem:[#allocation1 + $0x1] ss:$4 sm:$0xff] %v1605_v31 }
 0x73f   :  { %v1581_v36 = vpop.f32.mrf.mxu3  ;;  %1693 = vst [vmem:[#allocation1 + $0x2] ss:$4 sm:$0xff] %v1606_v32 }
 0x740   :  { %v1582_v38 = vadd.f32 %v1581_v36, %v1545_v53  ;;  %1695 = vst [vmem:[#allocation1 + $0x3] ss:$4 sm:$0xff] %v1607_v34  ;;  %v1637_v53 = vpop.f32.mrf.mxu0 }
 0x742   :  { %v1593_v42 = vrot.slane %v1582_v38, 2  ;;  %v1594_v43 = vrot.slane %v1582_v38, 4  ;;  %v1595_v44 = vrot.slane %v1582_v38, 6  ;;  %v1608_v17 = vadd.f32 %v1582_v38, %v5898_v46 }
 0x744   :  { %v1609_v24 = vadd.f32 %v1593_v42, %v5902_v45  ;;  %v1610_v20 = vadd.f32 %v1594_v43, %v5906_v47  ;;  %v1611_v21 = vadd.f32 %v1595_v44, %v5910_v48  ;;  %1697 = vst [vmem:[#allocation1 + $0x20] ss:$4 sm:$0xff] %v1608_v17  ;;  %v5996_v45 = vadd.f32 %v1637_v53, %v498_v51 }
 0x746   :  { %1699 = vst [vmem:[#allocation1 + $0x21] ss:$4 sm:$0xff] %v1609_v24  ;;  %v1641_v48 = vrot.slane %v5996_v45, 7 }
 0x747   :  { %1701 = vst [vmem:[#allocation1 + $0x22] ss:$4 sm:$0xff] %v1610_v20  ;;  %v1704_v22 = vld.sshfl [vmem:[#allocation1] sm:$0xff pattern:$0x73625140]  ;;  %v1584_v49 = vpop.f32.mrf.mxu3 }
 0x748   :  { %1703 = vst [vmem:[#allocation1 + $0x23] ss:$4 sm:$0xff] %v1611_v21  ;;  %4295 = vmatmul.msk.f32.vlgmr.msra.gmra.mxu0 %vm679_vm1, %v1704_v22  ;;  %v1585_v50 = vadd.f32 %v1584_v49, %v1548_v23  ;;  %v1643_v4 = vsel %vm1642_vm5, %v1641_v48, %v5996_v45  ;;  %v1677_v23 = vrot.slane %v1675_v59, 4 }
 0x749   :  { %4294 = vmatmul.msk.f32.vlgmr.msrb.gmra.mxu1 %vm679_vm1, %v1643_v4 }
 0x74a   :  { %v1596_v60 = vrot.slane %v1585_v50, 2  ;;  %v1612_v46 = vadd.f32 %v1585_v50, %v5920_v55  ;;  %v1678_v55 = vrot.slane %v1675_v59, 6 }
 0x74c   :  { %v1613_v47 = vadd.f32 %v1596_v60, %v5927_v57  ;;  %1706 = vst [vmem:[#allocation1] ss:$4 sm:$0xff] %v1612_v46 }
 0x74e   :  { %1707 = vst [vmem:[#allocation1 + $0x1] ss:$4 sm:$0xff] %v1613_v47 }
 0x74f   :  { %v1705_v19 = vld.sshfl [vmem:[#allocation1 + $0x20] sm:$0xff pattern:$0x73625140] }
 0x750   :  { %1725 = vst [vmem:[#allocation1 + $0x20] ss:$4 sm:$0xff] %v1675_v59  ;;  %4296 = vmatmul.msk.f32.gmra.mxu0 %vm679_vm1, %v1705_v19 }
 0x751   :  { %1727 = vst [vmem:[#allocation1 + $0x21] ss:$4 sm:$0xff] %v1675_v59 }
 0x752   :  { %1729 = vst [vmem:[#allocation1 + $0x22] ss:$4 sm:$0xff] %v1676_v62 }
 0x753   :  { %1731 = vst [vmem:[#allocation1 + $0x23] ss:$4 sm:$0xff] %v1677_v23 }
 0x755   :  { %v1708_v57 = vld.sshfl [vmem:[#allocation1] sm:$0xff pattern:$0x73625140] }
 0x756   :  { %1717 = vst [vmem:[#allocation1] ss:$4 sm:$0xff] %v1675_v59 }
 0x757   :  { %1719 = vst [vmem:[#allocation1 + $0x1] ss:$4 sm:$0xff] %v1676_v62 }
 0x758   :  { %1721 = vst [vmem:[#allocation1 + $0x2] ss:$4 sm:$0xff] %v1677_v23  ;;  %4297 = vmatmul.msk.f32.gmra.mxu0 %vm679_vm1, %v1708_v57 }
 0x759   :  { %1723 = vst [vmem:[#allocation1 + $0x3] ss:$4 sm:$0xff] %v1678_v55 }
 0x75a   :  { %v1733_v52 = vld.sshfl [vmem:[#allocation1 + $0x20] sm:$0xff pattern:$0x73625140] }
 0x75b   :  { %1739 = vrot.lane.b32.xlu1 %v1733_v52, %s5242_s20 }
 0x760   :  { %v1732_v26 = vld.sshfl [vmem:[#allocation1] sm:$0xff pattern:$0x73625140] }
 0x761   :  { %1734 = vst [vmem:[#allocation1] ss:$4 sm:$0xff] %v1678_v55  ;;  %1737 = vrot.lane.b32.xlu0 %v1732_v26, %s5242_s20 }
 0x762   :  { %1735 = vst [vmem:[#allocation1 + $0x1] ss:$4 sm:$0xff] %v1675_v59 }
 0x769   :  { %v1736_v8 = vld.sshfl [vmem:[#allocation1] sm:$0xff pattern:$0x73625140] }
 0x76a   :  { %1741 = vrot.lane.b32.xlu1 %v1736_v8, %s5242_s20 }
 0x7c5   :  { %v1769_v27 = vpop.f32.mrf.mxu0 }
 0x7c6   :  { %v1669_v20 = vpop.f32.mrf.mxu1 }
 0x7c7   :  { %v1670_v49 = vadd.f32 %v1669_v20, %v5983_v15 }
 0x7c9   :  { %v1788_v60 = vmul.f32 0.35355338, %v1670_v49  ;;  %v1673_v15 = vrot.slane %v1670_v49, 1 }
 0x7cb   :  { %v1789_v48 = vmul.f32 0.35355338, %v1673_v15 }
 0x7cd   :  { %v1740_v18 = vpop.permute.xlu1 %1739  ;;  %v1772_v31 = vpop.f32.mrf.mxu0 }
 0x7ce   :  { %v6008_v32 = vadd.f32 %v1772_v31, %v1740_v18  ;;  %v1971_v31 = vperm.slane %v1788_v60, 0 }
 0x7d0   :  { %1798 = vst [vmem:[#allocation1 + $0x20] ss:$4 sm:$0xff] %v6008_v32  ;;  %v1784_v50 = vrot.slane %v6008_v32, 2  ;;  %v1785_v51 = vrot.slane %v6008_v32, 4  ;;  %v1786_v59 = vrot.slane %v6008_v32, 6 }
 0x7d3   :  { %v1738_v34 = vpop.permute.xlu0 %1737 }
 0x7d4   :  { %v6011_v36 = vadd.f32 %v1769_v27, %v1738_v34  ;;  %v2015_v27 = vperm.slane %v1789_v48, 0 }
 0x7d5   :  { %v1775_v17 = vpop.f32.mrf.mxu0 }
 0x7d6   :  { %v6014_v38 = vrot.slane %v6011_v36, 2  ;;  %v6017_v42 = vrot.slane %v6011_v36, 4  ;;  %v6020_v43 = vrot.slane %v6011_v36, 6  ;;  %1790 = vst [vmem:[#allocation1] ss:$4 sm:$0xff] %v6011_v36 }
 0x7d7   :  { %v1800_v44 = vld.sshfl [vmem:[#allocation1 + $0x20] sm:$0xff pattern:$0x73625140] }
 0x7d8   :  { %1792 = vst [vmem:[#allocation1 + $0x1] ss:$4 sm:$0xff] %v6014_v38  ;;  %4298 = vmatpush.xpose.msk.msra.mxu1 %vm601_vm0, %v1800_v44 }
 0x7d9   :  { %1794 = vst [vmem:[#allocation1 + $0x2] ss:$4 sm:$0xff] %v6017_v42 }
 0x7da   :  { %1796 = vst [vmem:[#allocation1 + $0x3] ss:$4 sm:$0xff] %v6020_v43 }
 0x7dc   :  { %v1742_v24 = vpop.permute.xlu1 %1741 }
 0x7dd   :  { %v6027_v21 = vadd.f32 %v1775_v17, %v1742_v24 }
 0x7df   :  { %v1787_v22 = vrot.slane %v6027_v21, 2 }
 0x7e1   :  { %v1799_v53 = vld.sshfl [vmem:[#allocation1] sm:$0xff pattern:$0x73625140]  ;;  %1836 = vst [vmem:[#allocation1 + $0x20] ss:$4 sm:$0xff] %v1787_v22 }
 0x7e2   :  { %1828 = vst [vmem:[#allocation1] ss:$4 sm:$0xff] %v1784_v50  ;;  %4299 = vmatpush.xpose.msk.msra.mxu1 %vm601_vm0, %v1799_v53 }
 0x7e3   :  { %1830 = vst [vmem:[#allocation1 + $0x1] ss:$4 sm:$0xff] %v1785_v51 }
 0x7e4   :  { %1832 = vst [vmem:[#allocation1 + $0x2] ss:$4 sm:$0xff] %v1786_v59 }
 0x7e5   :  { %1834 = vst [vmem:[#allocation1 + $0x3] ss:$4 sm:$0xff] %v6027_v21  ;;  %4300 = vmatmul.msk.f32.vlgmr.msra.gmra.mxu1 %vm601_vm0, %v1788_v60 }
 0x7e8   :  { %v1838_v46 = vld.sshfl [vmem:[#allocation1 + $0x20] sm:$0xff pattern:$0x73625140] }
 0x7e9   :  { %1897 = vst [vmem:[#allocation1 + $0x20] ss:$4 sm:$0xff] %v6008_v32  ;;  %4301 = vmatpush.xpose.msk.msra.mxu2 %vm601_vm0, %v1838_v46 }
 0x7ec   :  { %v1837_v47 = vld.sshfl [vmem:[#allocation1] sm:$0xff pattern:$0x73625140] }
 0x7ed   :  { %1889 = vst [vmem:[#allocation1] ss:$4 sm:$0xff] %v6011_v36  ;;  %4302 = vmatpush.xpose.msk.msra.mxu2 %vm601_vm0, %v1837_v47 }
 0x7ee   :  { %1891 = vst [vmem:[#allocation1 + $0x1] ss:$4 sm:$0xff] %v6014_v38 }
 0x7ef   :  { %1893 = vst [vmem:[#allocation1 + $0x2] ss:$4 sm:$0xff] %v6017_v42 }
 0x7f0   :  { %1895 = vst [vmem:[#allocation1 + $0x3] ss:$4 sm:$0xff] %v6020_v43  ;;  %v1899_v62 = vld.sshfl [vmem:[#allocation1 + $0x20] sm:$0xff pattern:$0x73625140]  ;;  %4303 = vmatmul.msk.f32.vlgmr.msra.gmra.mxu2 %vm601_vm0, %v1789_v48 }
 0x7f1   :  { %1938 = vst [vmem:[#allocation1 + $0x20] ss:$4 sm:$0xff] %v1787_v22  ;;  %1902 = vrot.lane.b32.xlu0 %v1899_v62, %s5242_s20 }
 0x7f7   :  { %v1898_v4 = vld.sshfl [vmem:[#allocation1] sm:$0xff pattern:$0x73625140] }
 0x7f8   :  { %1930 = vst [vmem:[#allocation1] ss:$4 sm:$0xff] %v1784_v50  ;;  %1900 = vrot.lane.b32.xlu2 %v1898_v4, %s5242_s20  ;;  %v6047_v23 = vld.sshfl [vmem:[#allocation1 + $0x20] sm:$0xff pattern:$0x73625140] }
 0x7f9   :  { %1932 = vst [vmem:[#allocation1 + $0x1] ss:$4 sm:$0xff] %v1785_v51 }
 0x7fa   :  { %1934 = vst [vmem:[#allocation1 + $0x2] ss:$4 sm:$0xff] %v1786_v59 }
 0x7fb   :  { %1936 = vst [vmem:[#allocation1 + $0x3] ss:$4 sm:$0xff] %v6027_v21 }
 0x7fc   :  { %1982 = vst [vmem:[#allocation1 + $0x20] ss:$4 sm:$0xff] %v6008_v32 }
 0x802   :  { %v6051_v19 = vld.sshfl [vmem:[#allocation1] sm:$0xff pattern:$0x73625140] }
 0x803   :  { %1974 = vst [vmem:[#allocation1] ss:$4 sm:$0xff] %v6011_v36  ;;  %v1984_v55 = vld.sshfl [vmem:[#allocation1 + $0x20] sm:$0xff pattern:$0x73625140] }
 0x804   :  { %1976 = vst [vmem:[#allocation1 + $0x1] ss:$4 sm:$0xff] %v6014_v38 }
 0x805   :  { %1978 = vst [vmem:[#allocation1 + $0x2] ss:$4 sm:$0xff] %v6017_v42 }
 0x806   :  { %1980 = vst [vmem:[#allocation1 + $0x3] ss:$4 sm:$0xff] %v6020_v43 }
 0x807   :  { %2026 = vst [vmem:[#allocation1 + $0x20] ss:$4 sm:$0xff] %v1787_v22 }
 0x80d   :  { %v1983_v57 = vld.sshfl [vmem:[#allocation1] sm:$0xff pattern:$0x73625140] }
 0x80e   :  { %2018 = vst [vmem:[#allocation1] ss:$4 sm:$0xff] %v1784_v50  ;;  %v2028_v52 = vld.sshfl [vmem:[#allocation1 + $0x20] sm:$0xff pattern:$0x73625140] }
 0x80f   :  { %2020 = vst [vmem:[#allocation1 + $0x1] ss:$4 sm:$0xff] %v1785_v51  ;;  %2031 = vrot.lane.b32.xlu0 %v2028_v52, %s5244_s21 }
 0x810   :  { %2022 = vst [vmem:[#allocation1 + $0x2] ss:$4 sm:$0xff] %v1786_v59 }
 0x811   :  { %2024 = vst [vmem:[#allocation1 + $0x3] ss:$4 sm:$0xff] %v6027_v21 }
 0x812   :  { %2089 = vst [vmem:[#allocation1 + $0x20] ss:$4 sm:$0xff] %v6008_v32  ;;  %v507_v32 = vld [vmem:[#allocation15] sm:$0x1] }
 0x818   :  { %v2027_v26 = vld.sshfl [vmem:[#allocation1] sm:$0xff pattern:$0x73625140] }
 0x819   :  { %2081 = vst [vmem:[#allocation1] ss:$4 sm:$0xff] %v6011_v36  ;;  %2029 = vrot.lane.b32.xlu0 %v2027_v26, %s5244_s21  ;;  %v6063_v8 = vld.sshfl [vmem:[#allocation1 + $0x20] sm:$0xff pattern:$0x73625140] }
 0x81a   :  { %2083 = vst [vmem:[#allocation1 + $0x1] ss:$4 sm:$0xff] %v6014_v38  ;;  %v510_v38 = vld [vmem:[#allocation18] sm:$0x1] }
 0x81b   :  { %2085 = vst [vmem:[#allocation1 + $0x2] ss:$4 sm:$0xff] %v6017_v42 }
 0x81c   :  { %2087 = vst [vmem:[#allocation1 + $0x3] ss:$4 sm:$0xff] %v6020_v43  ;;  %v6077_v43 = vld [vmem:[%s5440_s6] sm:$0x1] }
 0x81d   :  { %2130 = vst [vmem:[#allocation1 + $0x20] ss:$4 sm:$0xff] %v1787_v22 }
 0x821   :  { %2016 = vrot.lane.b32.xlu0 %v2015_v27, %s5244_s21 }
 0x823   :  { %v6068_v18 = vld.sshfl [vmem:[#allocation1] sm:$0xff pattern:$0x73625140] }
 0x824   :  { %2122 = vst [vmem:[#allocation1] ss:$4 sm:$0xff] %v1784_v50  ;;  %v6072_v34 = vld.sshfl [vmem:[#allocation1 + $0x20] sm:$0xff pattern:$0x73625140] }
 0x825   :  { %2124 = vst [vmem:[#allocation1 + $0x1] ss:$4 sm:$0xff] %v1785_v51 }
 0x826   :  { %2126 = vst [vmem:[#allocation1 + $0x2] ss:$4 sm:$0xff] %v1786_v59 }
 0x827   :  { %2128 = vst [vmem:[#allocation1 + $0x3] ss:$4 sm:$0xff] %v6027_v21 }
 0x829   :  { %1972 = vrot.lane.b32.xlu0 %v1971_v31, %s5244_s21 }
 0x82e   :  { %v2131_v36 = vld.sshfl [vmem:[#allocation1] sm:$0xff pattern:$0x73625140] }
 0x82f   :  { %2227 = vst [vmem:[#allocation1] ss:$9 sm:$0xff] %v507_v32 }
 0x830   :  { %2229 = vst [vmem:[#allocation1 + $0x1] ss:$9 sm:$0xff] %v507_v32 }
 0x837   :  { %v6074_v42 = vld [vmem:[#allocation1] sm:$0xff] }
 0x838   :  { %2255 = vst [vmem:[#allocation1] ss:$9 sm:$0xff] %v510_v38 }
 0x839   :  { %2257 = vst [vmem:[#allocation1 + $0x1] ss:$9 sm:$0xff] %v510_v38 }
 0x840   :  { %v6079_v44 = vld [vmem:[#allocation1] sm:$0xff] }
 0x841   :  { %2293 = vst [vmem:[#allocation1] ss:$9 sm:$0xff] %v6077_v43 }
 0x842   :  { %2295 = vst [vmem:[#allocation1 + $0x1] ss:$9 sm:$0xff] %v6077_v43 }
 0x852   :  { %v1901_v21 = vpop.permute.xlu2 %1900 }
 0x862   :  { %v1825_v17 = vpop.f32.mrf.mxu1 }
 0x863   :  { %v1903_v24 = vpop.permute.xlu0 %1902  ;;  %v1867_v20 = vsel %vm1866_vm6, %v1825_v17, -inf }
 0x864   :  { %1868 = vmax.xlane.f32.xlu1 %v1867_v20  ;;  %4304 = vmatpush.msk.msra.mxu3 %vm931_vm2, %v1903_v24 }
 0x866   :  { %1925 = vmatpush.msra.mxu3 %v1901_v21 }
 0x873   :  { %v1863_v46 = vpop.f32.mrf.mxu2 }
 0x874   :  { %v1870_v15 = vsel %vm1866_vm6, %v1863_v46, -inf }
 0x87d   :  { %1985 = vrot.lane.b32.xlu1 %v1983_v57, %s5244_s21 }
 0x881   :  { %v2032_v22 = vpop.permute.xlu0 %2031 }
 0x882   :  { %4311 = vmatpush.xpose.msk.msrb.mxu3 %vm601_vm0, %v2032_v22 }
 0x88b   :  { %v2030_v49 = vpop.permute.xlu0 %2029 }
 0x88c   :  { %4312 = vmatpush.xpose.msk.msrb.mxu3 %vm601_vm0, %v2030_v49 }
 0x893   :  { %v2017_v48 = vpop.permute.xlu0 %2016 }
 0x89b   :  { %v1973_v26 = vpop.permute.xlu0 %1972 }
 0x8d7   :  { %v1869_v50 = vpop.xlane.xlu1 %1868 }
 0x8d8   :  { %v1873_v51 = vsub.f32 %v1825_v17, %v1869_v50 }
 0x8da   :  { %v1875_v53 = vmul.f32 1.442695, %v1873_v51 }
 0x8dc   :  { %4536 = vpow2.f32 %v1875_v53 }
 0x8e2   :  { %v4537_v59 = vpop.eup %4536 }
 0x8e3   :  { %v1879_v60 = vsel %vm1866_vm6, %v4537_v59, 0.0 }
 0x8e4   :  { %1880 = vadd.xlane.f32.xlu2 %v1879_v60 }
 0x8ef   :  { %v1986_v52 = vpop.permute.xlu1 %1985 }
 0x8fc   :  { %1987 = vrot.lane.b32.xlu2 %v1984_v55, %s5244_s21 }
 0x925   :  { %1871 = vmax.xlane.f32.xlu2 %v1870_v15 }
 0x957   :  { %v1881_v47 = vpop.xlane.xlu2 %1880 }
 0x958   :  { %4538 = vrcp.f32 %v1881_v47 }
 0x95e   :  { %v4539_v62 = vpop.eup %4538 }
 0x95f   :  { %v1887_v4 = vmul.f32 %v4539_v62, %v4537_v59  ;;  %v1988_v57 = vpop.permute.xlu2 %1987 }
 0x960   :  { %4308 = vmatpush.xpose.msk.msrb.mxu2 %vm601_vm0, %v1988_v57 }
 0x961   :  { %4305 = vmatmul.msk.f32.vlgmr.msra.gmra.mxu3 %vm863_vm3, %v1887_v4 }
 0x964   :  { %4309 = vmatpush.xpose.msk.msrb.mxu2 %vm601_vm0, %v1986_v52 }
 0x967   :  { %4310 = vmatmul.msk.f32.vlgmr.msrb.gmra.mxu2 %vm601_vm0, %v1973_v26 }
 0x969   :  { %4313 = vmatmul.msk.f32.vlgmr.msrb.gmra.mxu3 %vm601_vm0, %v2017_v48 }
 0x998   :  { %v1872_v55 = vpop.xlane.xlu2 %1871 }
 0x999   :  { %v1874_v27 = vsub.f32 %v1863_v46, %v1872_v55 }
 0x99b   :  { %v1877_v31 = vmul.f32 1.442695, %v1874_v27 }
 0x99d   :  { %4540 = vpow2.f32 %v1877_v31 }
 0x9a3   :  { %v4541_v32 = vpop.eup %4540 }
 0x9a4   :  { %v1882_v38 = vsel %vm1866_vm6, %v4541_v32, 0.0 }
 0x9a5   :  { %1883 = vadd.xlane.f32.xlu2 %v1882_v38 }
 0x9bd   :  { %1943 = vrot.lane.b32.xlu2 %v6047_v23, %s5242_s20 }
 0x9c5   :  { %2133 = vrot.lane.b32.xlu2 %v2131_v36, %s5243_s22 }
 0x9cd   :  { %2092 = vrot.lane.b32.xlu2 %v6068_v18, %s5243_s22 }
 0x9e4   :  { %v1927_v17 = vpop.f32.mrf.mxu3 }
 0x9ea   :  { %v2012_v24 = vpop.f32.mrf.mxu2 }
 0x9eb   :  { %v2059_v20 = vsel %vm1866_vm6, %v2012_v24, -inf }
 0x9ec   :  { %v2056_v21 = vpop.f32.mrf.mxu3  ;;  %2060 = vmax.xlane.f32.xlu1 %v2059_v20  ;;  %v503_v20 = vld [vmem:[#allocation10 + $0x8] sm:$0xff] }
 0x9ed   :  { %v2062_v22 = vsel %vm1866_vm6, %v2056_v21, -inf  ;;  %2184 = vmatpush.msra.mxu3 %v503_v20 }
 0x9ee   :  { %2063 = vmax.xlane.f32.xlu0 %v2062_v22 }
 0xa02   :  { %2135 = vrot.lane.b32.xlu0 %v6072_v34, %s5243_s22 }
 0xa18   :  { %v1884_v49 = vpop.xlane.xlu2 %1883 }
 0xa20   :  { %v1944_v50 = vpop.permute.xlu2 %1943 }
 0xa21   :  { %4306 = vmatpush.msk.msrb.mxu1 %vm931_vm2, %v1944_v50 }
 0xa28   :  { %v2134_v48 = vpop.permute.xlu2 %2133 }
 0xa5f   :  { %v2061_v23 = vpop.xlane.xlu1 %2060 }
 0xa60   :  { %v2065_v36 = vsub.f32 %v2012_v24, %v2061_v23  ;;  %v502_v24 = vld [vmem:[#allocation10] sm:$0xff] }
 0xa61   :  { %v2064_v51 = vpop.xlane.xlu0 %2063  ;;  %2210 = vmatpush.msrb.mxu0 %v502_v24 }
 0xa62   :  { %v2067_v18 = vmul.f32 1.442695, %v2065_v36  ;;  %v2066_v53 = vsub.f32 %v2056_v21, %v2064_v51  ;;  %v506_v51 = vld [vmem:[#allocation13 + $0x8] sm:$0xff] }
 0xa64   :  { %4542 = vpow2.f32 %v2067_v18  ;;  %v2069_v59 = vmul.f32 1.442695, %v2066_v53  ;;  %v505_v18 = vld [vmem:[#allocation13] sm:$0xff]  ;;  %v4616_v53 = vld [vmem:[%s6699_s25 + $0x8] sm:$0xff] }
 0xa66   :  { %4544 = vpow2.f32 %v2069_v59  ;;  %v4617_v59 = vld [vmem:[%s6699_s25] sm:$0xff] }
 0xa6a   :  { %v4543_v60 = vpop.eup %4542 }
 0xa6b   :  { %v2071_v46 = vsel %vm1866_vm6, %v4543_v60, 0.0 }
 0xa6c   :  { %v4545_v15 = vpop.eup %4544  ;;  %2072 = vadd.xlane.f32.xlu1 %v2071_v46 }
 0xa6d   :  { %v2074_v47 = vsel %vm1866_vm6, %v4545_v15, 0.0 }
 0xa6e   :  { %2075 = vadd.xlane.f32.xlu0 %v2074_v47 }
 0xa74   :  { %v2136_v34 = vpop.permute.xlu0 %2135 }
 0xa75   :  { %4316 = vmatpush.msk.msra.mxu2 %vm931_vm2, %v2136_v34 }
 0xa77   :  { %2158 = vmatpush.msra.mxu2 %v2134_v48  ;;  %v504_v48 = vld [vmem:[#allocation12] sm:$0x1] }
 0xa82   :  { %2094 = vrot.lane.b32.xlu0 %v6063_v8, %s5243_s22  ;;  %v2093_v8 = vpop.permute.xlu2 %2092 }
 0xa85   :  { %1941 = vrot.lane.b32.xlu1 %v6051_v19, %s5242_s20 }
 0xadf   :  { %v2073_v52 = vpop.xlane.xlu1 %2072 }
 0xae1   :  { %v2076_v62 = vpop.xlane.xlu0 %2075 }
 0xae2   :  { %4546 = vrcp.f32 %v2076_v62 }
 0xae3   :  { %4548 = vrcp.f32 %v1884_v49 }
 0xae4   :  { %4550 = vrcp.f32 %v2073_v52 }
 0xae8   :  { %v4547_v4 = vpop.eup %4546 }
 0xae9   :  { %v2080_v57 = vmul.f32 %v4547_v4, %v4545_v15  ;;  %v4549_v26 = vpop.eup %4548 }
 0xaea   :  { %v1888_v55 = vmul.f32 %v4549_v26, %v4541_v32  ;;  %v4551_v19 = vpop.eup %4550  ;;  %v509_v26 = vld [vmem:[#allocation16 + $0x8] sm:$0xff] }
 0xaeb   :  { %4317 = vmatmul.msk.f32.vlgmr.msra.gmra.mxu2 %vm863_vm3, %v2080_v57  ;;  %v2079_v38 = vmul.f32 %v4551_v19, %v4543_v60  ;;  %v527_v19 = vld [vmem:[%s5435_s9] sm:$0xff] }
 0xaec   :  { %2277 = vmatpush.msrb.mxu2 %v509_v26  ;;  %v537_v26 = vld [vmem:[#allocation2] sm:$0xff] }
 0xaed   :  { %2431 = vmatpush.msra.mxu0 %v537_v26 }
 0xaf4   :  { %v2095_v31 = vpop.permute.xlu0 %2094 }
 0xaf7   :  { %v1942_v27 = vpop.permute.xlu1 %1941 }
 0xaf8   :  { %1966 = vmatpush.msrb.mxu1 %v1942_v27 }
 0xaf9   :  { %4307 = vmatmul.msk.f32.vlgmr.msrb.gmra.mxu1 %vm863_vm3, %v1888_v55  ;;  %v508_v55 = vld [vmem:[#allocation16] sm:$0xff] }
 0xafa   :  { %4314 = vmatpush.msk.msra.mxu1 %vm931_vm2, %v2095_v31  ;;  %2278 = vmatpush.msrb.mxu2 %v508_v55 }
 0xafc   :  { %2117 = vmatpush.msra.mxu1 %v2093_v8  ;;  %v528_v8 = vld [vmem:[%s5435_s9 + $0x8] sm:$0xff] }
 0xafd   :  { %2314 = vmatpush.msrb.mxu3 %v528_v8 }
 0xafe   :  { %2248 = vmatpush.msrb.mxu1 %v506_v51 }
 0xaff   :  { %2315 = vmatpush.msrb.mxu3 %v527_v19 }
 0xb00   :  { %2249 = vmatpush.msrb.mxu1 %v505_v18 }
 0xb01   :  { %4315 = vmatmul.msk.f32.vlgmr.msra.gmra.mxu1 %vm863_vm3, %v2079_v38 }
 0xb02   :  { %2542 = vmatpush.msra.mxu1 %v4616_v53 }
 0xb04   :  { %2543 = vmatpush.msra.mxu1 %v4617_v59 }
 0xb6e   :  { %v2160_v49 = vpop.f32.mrf.mxu2 }
 0xb6f   :  { %v2165_v50 = vrot.slane %v2160_v49, 7  ;;  %v2296_v49 = vld [vmem:[#allocation1] sm:$0xff] }
 0xb76   :  { %v1968_v32 = vpop.f32.mrf.mxu1 }
 0xb77   :  { %v2191_v21 = vrot.slane %v1968_v32, 7 }
 0xb79   :  { %v2192_v22 = vsel %vm1642_vm5, %v2191_v21, %v1927_v17 }
 0xb7a   :  { %4319 = vmatmul.msk.f32.vlgmr.msrb.gmra.mxu0 %vm601_vm0, %v2192_v22 }
 0xb7e   :  { %v2119_v23 = vpop.f32.mrf.mxu1 }
 0xb7f   :  { %v2166_v36 = vsel %vm1642_vm5, %v2165_v50, %v2119_v23 }
 0xb80   :  { %4318 = vmatmul.msk.f32.vlgmr.msra.gmra.mxu3 %vm601_vm0, %v2166_v36 }
 0xbf7   :  { %v2212_v60 = vpop.f32.mrf.mxu0 }
 0xc03   :  { %v2186_v46 = vpop.f32.mrf.mxu3 }
 0xc04   :  { %v2213_v17 = vadd.f32 %v2212_v60, %v2186_v46 }
 0xc06   :  { %v2216_v15 = vrot.slane %v2213_v17, 1  ;;  %v2218_v47 = vadd.f32 %v2213_v17, %v5996_v45 }
 0xc08   :  { %v2219_v34 = vadd.f32 %v2216_v15, %v5996_v45  ;;  %v2220_v4 = vadd.f32 %v2218_v47, %v504_v48 }
 0xc0a   :  { %v2221_v62 = vadd.f32 %v2219_v34, %v504_v48 }
 0xc0c   :  { %v2224_v57 = vrot.slane %v2221_v62, 7 }
 0xc0e   :  { %v2225_v52 = vsel %vm1642_vm5, %v2224_v57, %v2220_v4 }
 0xc0f   :  { %4320 = vmatmul.msk.f32.vlgmr.msrb.gmra.mxu1 %vm679_vm1, %v2225_v52 }
 0xc8c   :  { %v2251_v27 = vpop.f32.mrf.mxu1 }
 0xc8d   :  { %v2252_v31 = vadd.f32 %v2251_v27, %v6074_v42 }
 0xc8f   :  { %4321 = vmatmul.msk.f32.vlgmr.msrb.gmra.mxu2 %vm679_vm1, %v2252_v31 }
 0xd12   :  { %v2280_v45 = vpop.f32.mrf.mxu2 }
 0xd13   :  { %v2281_v38 = vadd.f32 %v2280_v45, %v6079_v44 }
 0xd15   :  { %v2284_v24 = vrot.slane %v2281_v38, 1  ;;  %v2286_v32 = vadd.f32 %v2281_v38, %v2220_v4 }
 0xd17   :  { %v2287_v20 = vadd.f32 %v2284_v24, %v2221_v62 }
 0xd19   :  { %v2290_v21 = vrot.slane %v2287_v20, 7 }
 0xd1b   :  { %v2291_v22 = vsel %vm1642_vm5, %v2290_v21, %v2286_v32 }
 0xd1c   :  { %4322 = vmatmul.msk.f32.vlgmr.msrb.gmra.mxu3 %vm679_vm1, %v2291_v22 }
 0xd9f   :  { %v2317_v50 = vpop.f32.mrf.mxu3 }
 0xda0   :  { %v2318_v42 = vadd.f32 %v2317_v50, %v2296_v49 }
 0xda2   :  { %v2321_v23 = vrot.slane %v2318_v42, 1  ;;  %v2323_v36 = vsub.f32 0.0, %v2318_v42 }
 0xda4   :  { %v2324_v51 = vsub.f32 0.0, %v2321_v23  ;;  %v2325_v18 = vmul.f32 1.442695, %v2323_v36 }
 0xda6   :  { %4552 = vpow2.f32 %v2325_v18  ;;  %v2327_v53 = vmul.f32 1.442695, %v2324_v51 }
 0xda8   :  { %4554 = vpow2.f32 %v2327_v53 }
 0xdac   :  { %v4553_v59 = vpop.eup %4552 }
 0xdad   :  { %v2329_v44 = vadd.f32 1.0, %v4553_v59 }
 0xdae   :  { %v4555_v60 = vpop.eup %4554 }
 0xdaf   :  { %v2330_v46 = vadd.f32 1.0, %v4555_v60  ;;  %4556 = vrcp.f32 %v2329_v44  ;;  %v2342_v62 = vand.u32 2147483648, %v2329_v44  ;;  %v2340_v57 = vand.u32 2147483647, %v2329_v44 }
 0xdb0   :  { %vm2336_vm8 = vweird.f32 %v2329_v44 }
 0xdb1   :  { %4558 = vrcp.f32 %v2330_v46  ;;  %v2357_v55 = vand.u32 2147483648, %v2330_v46  ;;  %v2355_v8 = vand.u32 2147483647, %v2330_v46  ;;  %v2343_v19 = vor.u32 1.1754944e-38, %v2342_v62 }
 0xdb2   :  { %vm2341_vm11 = vcmp.eq.f32.partialorder %v2340_v57, 8.507059e+37  ;;  %vm2351_vm12 = vweird.f32 %v2330_v46 }
 0xdb3   :  { %v2358_v20 = vor.u32 1.1754944e-38, %v2357_v55  ;;  %vm2356_vm14 = vcmp.eq.f32.partialorder %v2355_v8, 8.507059e+37 }
 0xdb5   :  { %v4557_v17 = vpop.eup %4556 }
 0xdb6   :  { %v2332_v15 = vmul.f32 %v4557_v17, %v2329_v44  ;;  %vm2337_vm7 = vweird.f32 %v4557_v17 }
 0xdb7   :  { %v4559_v47 = vpop.eup %4558  ;;  %vm2338_vm10 = vmor %vm2336_vm8, %vm2337_vm7 }
 0xdb8   :  { %v2333_v34 = vsub.f32 1.0, %v2332_v15  ;;  %v2347_v48 = vmul.f32 %v4559_v47, %v2330_v46  ;;  %vm2352_vm9 = vweird.f32 %v4559_v47 }
 0xdb9   :  { %vm2353_vm13 = vmor %vm2351_vm12, %vm2352_vm9 }
 0xdba   :  { %v2334_v4 = vmul.f32 %v4557_v17, %v2333_v34  ;;  %v2348_v52 = vsub.f32 1.0, %v2347_v48 }
 0xdbc   :  { %v2335_v27 = vadd.f32 %v4557_v17, %v2334_v4  ;;  %v2349_v31 = vmul.f32 %v4559_v47, %v2348_v52 }
 0xdbe   :  { %v2339_v45 = vsel %vm2338_vm10, %v4557_v17, %v2335_v27  ;;  %v2350_v38 = vadd.f32 %v4559_v47, %v2349_v31 }
 0xdbf   :  { %v2344_v24 = vsel %vm2341_vm11, %v2343_v19, %v2339_v45 }
 0xdc0   :  { %v2354_v32 = vsel %vm2353_vm13, %v4559_v47, %v2350_v38  ;;  %v2363_v21 = vperm.slane %v2344_v24, 0 }
 0xdc1   :  { %v2359_v22 = vsel %vm2356_vm14, %v2358_v20, %v2354_v32 }
 0xdc2   :  { %v2364_v49 = vperm.slane %v2359_v22, 0  ;;  %2367 = vst.msk [vmem:[%s5445_s5] sm:$0xff] %vm601_vm0, %v2363_v21  ;;  %v2372_v50 = vsub.f32 %v2363_v21, %v5596_v1  ;;  %v2373_v42 = vsub.f32 %v2363_v21, %v5606_v6 }
 0xdc3   :  { %2369 = vst.msk [vmem:[%s5445_s5 + $0x8] sm:$0x3] %vm2368_vm15, %v2363_v21 }
 0xdc4   :  { %2370 = vst.msk [vmem:[%s5445_s5 + $0x10] sm:$0xff] %vm601_vm0, %v2364_v49  ;;  %v2374_v23 = vsub.f32 %v2364_v49, %v5603_v5  ;;  %v2376_v36 = vmul.f32 %v2372_v50, %v2372_v50  ;;  %v2377_v51 = vmul.f32 %v2373_v42, %v2373_v42  ;;  %v2375_v6 = vsub.f32 %v2364_v49, %v5614_v10 }
 0xdc5   :  { %2371 = vst.msk [vmem:[%s5445_s5 + $0x18] sm:$0x3] %vm2368_vm15, %v2364_v49  ;;  %s6709_s5 = sld [smem:[#allocation63_spill]] }
 0xdc6   :  { %v2378_v18 = vmul.f32 %v2374_v23, %v2374_v23  ;;  %v2384_v53 = vrot.slane %v2376_v36, 2  ;;  %v2385_v59 = vrot.slane %v2376_v36, 4  ;;  %2390 = vst [vmem:[#allocation1] ss:$4 sm:$0xff] %v2376_v36  ;;  %v2386_v44 = vrot.slane %v2376_v36, 6 }
 0xdc7   :  { %2398 = vst [vmem:[#allocation1 + $0x20] ss:$4 sm:$0xff] %v2377_v51  ;;  %v2379_v46 = vmul.f32 %v2375_v6, %v2375_v6 }
 0xdc8   :  { %v2387_v60 = vrot.slane %v2378_v18, 2  ;;  %2392 = vst [vmem:[#allocation1 + $0x1] ss:$4 sm:$0xff] %v2384_v53  ;;  %v2388_v1 = vrot.slane %v2378_v18, 4  ;;  %v2389_v5 = vrot.slane %v2378_v18, 6 }
 0xdc9   :  { %2394 = vst [vmem:[#allocation1 + $0x2] ss:$4 sm:$0xff] %v2385_v59 }
 0xdca   :  { %2396 = vst [vmem:[#allocation1 + $0x3] ss:$4 sm:$0xff] %v2386_v44 }
 0xdcb   :  { %2400 = vst [vmem:[#allocation1 + $0x21] ss:$4 sm:$0xff] %v2378_v18 }
 0xdcc   :  { %2402 = vst [vmem:[#allocation1 + $0x22] ss:$4 sm:$0xff] %v2387_v60 }
 0xdcd   :  { %2404 = vst [vmem:[#allocation1 + $0x23] ss:$4 sm:$0xff] %v2388_v1 }
 0xdd1   :  { %v2405_v17 = vld.sshfl [vmem:[#allocation1] sm:$0xff pattern:$0x73625140] }
 0xdd2   :  { %2407 = vst [vmem:[#allocation1] ss:$4 sm:$0xff] %v2389_v5  ;;  %4323 = vmatmul.msk.f32.vlgmr.msra.gmra.mxu0 %vm601_vm0, %v2405_v17 }
 0xdd3   :  { %2408 = vst [vmem:[#allocation1 + $0x1] ss:$4 sm:$0xff] %v2379_v46 }
 0xdd4   :  { %v2406_v15 = vld.sshfl [vmem:[#allocation1 + $0x20] sm:$0xff pattern:$0x73625140] }
 0xdda   :  { %4324 = vmatmul.msk.f32.gmra.mxu0 %vm601_vm0, %v2406_v15  ;;  %v2409_v47 = vld.sshfl [vmem:[#allocation1] sm:$0xff pattern:$0x73625140] }
 0xde2   :  { %4325 = vmatmul.msk.f32.gmra.mxu0 %vm601_vm0, %v2409_v47 }
 0xe4f   :  { %v2433_v34 = vpop.f32.mrf.mxu0 }
 0xe50   :  { %v2445_v48 = vrot.slane %v2433_v34, 2  ;;  %v2446_v62 = vrot.slane %v2433_v34, 4  ;;  %v2447_v4 = vrot.slane %v2433_v34, 6  ;;  %v6151_v10 = vadd.f32 %v2433_v34, %v5644_v33 }
 0xe52   :  { %v6155_v57 = vadd.f32 %v2445_v48, %v637_v11  ;;  %v6159_v52 = vadd.f32 %v2446_v62, %v638_v12  ;;  %v6163_v26 = vadd.f32 %v2447_v4, %v639_v13  ;;  %2479 = vst [vmem:[#allocation1] ss:$4 sm:$0xff] %v6151_v10 }
 0xe54   :  { %2481 = vst [vmem:[#allocation1 + $0x1] ss:$4 sm:$0xff] %v6155_v57 }
 0xe55   :  { %2483 = vst [vmem:[#allocation1 + $0x2] ss:$4 sm:$0xff] %v6159_v52 }
 0xe56   :  { %2485 = vst [vmem:[#allocation1 + $0x3] ss:$4 sm:$0xff] %v6163_v26 }
 0xe57   :  { %v2436_v55 = vpop.f32.mrf.mxu0 }
 0xe58   :  { %v2448_v27 = vrot.slane %v2436_v55, 2  ;;  %v2449_v11 = vrot.slane %v2436_v55, 4  ;;  %v2450_v31 = vrot.slane %v2436_v55, 6  ;;  %v6170_v8 = vadd.f32 %v2436_v55, %v5650_v35 }
 0xe5a   :  { %v6174_v33 = vadd.f32 %v2448_v27, %v640_v39  ;;  %v6178_v12 = vadd.f32 %v2449_v11, %v641_v40  ;;  %v6182_v13 = vadd.f32 %v2450_v31, %v642_v41  ;;  %2487 = vst [vmem:[#allocation1 + $0x20] ss:$4 sm:$0xff] %v6170_v8 }
 0xe5c   :  { %2489 = vst [vmem:[#allocation1 + $0x21] ss:$4 sm:$0xff] %v6174_v33 }
 0xe5d   :  { %v2494_v19 = vld.sshfl [vmem:[#allocation1] sm:$0xff pattern:$0x73625140]  ;;  %2491 = vst [vmem:[#allocation1 + $0x22] ss:$4 sm:$0xff] %v6178_v12 }
 0xe5e   :  { %2493 = vst [vmem:[#allocation1 + $0x23] ss:$4 sm:$0xff] %v6182_v13  ;;  %4326 = vmatmul.msk.f32.vlgmr.msra.gmra.mxu1 %vm679_vm1, %v2494_v19 }
 0xe5f   :  { %v2439_v39 = vpop.f32.mrf.mxu0 }
 0xe60   :  { %v2451_v45 = vrot.slane %v2439_v39, 2  ;;  %v6190_v40 = vadd.f32 %v2439_v39, %v5654_v37 }
 0xe62   :  { %v6194_v35 = vadd.f32 %v2451_v45, %v643_v54  ;;  %2496 = vst [vmem:[#allocation1] ss:$4 sm:$0xff] %v6190_v40 }
 0xe64   :  { %2497 = vst [vmem:[#allocation1 + $0x1] ss:$4 sm:$0xff] %v6194_v35 }
 0xe65   :  { %v2495_v41 = vld.sshfl [vmem:[#allocation1 + $0x20] sm:$0xff pattern:$0x73625140] }
 0xe66   :  { %2507 = vst [vmem:[#allocation1 + $0x20] ss:$4 sm:$0xff] %v5625_v25  ;;  %4327 = vmatmul.msk.f32.gmra.mxu1 %vm679_vm1, %v2495_v41 }
 0xe67   :  { %2509 = vst [vmem:[#allocation1 + $0x21] ss:$4 sm:$0xff] %v5625_v25 }
 0xe68   :  { %2511 = vst [vmem:[#allocation1 + $0x22] ss:$4 sm:$0xff] %v5628_v28 }
 0xe69   :  { %2513 = vst [vmem:[#allocation1 + $0x23] ss:$4 sm:$0xff] %v5631_v29 }
 0xe6b   :  { %v2498_v38 = vld.sshfl [vmem:[#allocation1] sm:$0xff pattern:$0x73625140] }
 0xe6c   :  { %2499 = vst [vmem:[#allocation1] ss:$4 sm:$0xff] %v5625_v25 }
 0xe6d   :  { %2501 = vst [vmem:[#allocation1 + $0x1] ss:$4 sm:$0xff] %v5628_v28 }
 0xe6e   :  { %2503 = vst [vmem:[#allocation1 + $0x2] ss:$4 sm:$0xff] %v5631_v29  ;;  %4328 = vmatmul.msk.f32.gmra.mxu1 %vm679_vm1, %v2498_v38 }
 0xe6f   :  { %2505 = vst [vmem:[#allocation1 + $0x3] ss:$4 sm:$0xff] %v5634_v30 }
 0xe70   :  { %v2515_v49 = vld.sshfl [vmem:[#allocation1 + $0x20] sm:$0xff pattern:$0x73625140] }
 0xe76   :  { %v2514_v37 = vld.sshfl [vmem:[#allocation1] sm:$0xff pattern:$0x73625140] }
 0xe77   :  { %2516 = vst [vmem:[#allocation1] ss:$4 sm:$0xff] %v5634_v30 }
 0xe78   :  { %2517 = vst [vmem:[#allocation1 + $0x1] ss:$4 sm:$0xff] %v5625_v25 }
 0xe7f   :  { %v2518_v20 = vld.sshfl [vmem:[#allocation1] sm:$0xff pattern:$0x73625140] }
 0xedb   :  { %v2545_v54 = vpop.f32.mrf.mxu1 }
 0xedc   :  { %v6210_v24 = vadd.f32 %v2545_v54, %v2514_v37 }
 0xede   :  { %v6213_v32 = vrot.slane %v6210_v24, 2  ;;  %v6216_v28 = vrot.slane %v6210_v24, 4  ;;  %v6219_v29 = vrot.slane %v6210_v24, 6  ;;  %v6222_v21 = vmul.f32 0.35355338, %v6210_v24 }
 0xee0   :  { %v6225_v30 = vmul.f32 0.35355338, %v6213_v32  ;;  %v6228_v25 = vmul.f32 0.35355338, %v6216_v28  ;;  %v6231_v22 = vmul.f32 0.35355338, %v6219_v29 }
 0xee1   :  { %2586 = vst [vmem:[#allocation1] ss:$4 sm:$0xff] %v6222_v21 }
 0xee2   :  { %2588 = vst [vmem:[#allocation1 + $0x1] ss:$4 sm:$0xff] %v6225_v30 }
 0xee3   :  { %2590 = vst [vmem:[#allocation1 + $0x2] ss:$4 sm:$0xff] %v6228_v25  ;;  %v2548_v50 = vpop.f32.mrf.mxu1 }
 0xee4   :  { %2592 = vst [vmem:[#allocation1 + $0x3] ss:$4 sm:$0xff] %v6231_v22  ;;  %v6237_v42 = vadd.f32 %v2548_v50, %v2515_v49  ;;  %v4618_v50 = vld [vmem:[%s6701_s17 + $0x8] sm:$0xff] }
 0xee6   :  { %v2575_v23 = vmul.f32 0.35355338, %v6237_v42  ;;  %v6249_v53 = vrot.slane %v6237_v42, 2  ;;  %v6255_v44 = vrot.slane %v6237_v42, 4  ;;  %v6258_v60 = vrot.slane %v6237_v42, 6 }
 0xee8   :  { %2594 = vst [vmem:[#allocation1 + $0x20] ss:$4 sm:$0xff] %v2575_v23  ;;  %v2576_v1 = vmul.f32 0.35355338, %v6249_v53  ;;  %v2577_v46 = vmul.f32 0.35355338, %v6255_v44 }
 0xee9   :  { %v2578_v17 = vmul.f32 0.35355338, %v6258_v60 }
 0xeeb   :  { %v6240_v36 = vld.sshfl [vmem:[#allocation1] sm:$0xff pattern:$0x73625140]  ;;  %v2551_v51 = vpop.f32.mrf.mxu1 }
 0xeec   :  { %2597 = vst [vmem:[#allocation1] ss:$4 sm:$0xff] %v6210_v24  ;;  %v6252_v59 = vadd.f32 %v2551_v51, %v2518_v20 }
 0xeed   :  { %2599 = vst [vmem:[#allocation1 + $0x1] ss:$4 sm:$0xff] %v6213_v32 }
 0xeee   :  { %2601 = vst [vmem:[#allocation1 + $0x2] ss:$4 sm:$0xff] %v6216_v28  ;;  %v6262_v6 = vrot.slane %v6252_v59, 2  ;;  %v2579_v15 = vmul.f32 0.35355338, %v6252_v59 }
 0xeef   :  { %2603 = vst [vmem:[#allocation1 + $0x3] ss:$4 sm:$0xff] %v6219_v29  ;;  %v6246_v18 = vld.sshfl [vmem:[#allocation1 + $0x20] sm:$0xff pattern:$0x73625140] }
 0xef0   :  { %2605 = vst [vmem:[#allocation1 + $0x20] ss:$4 sm:$0xff] %v6237_v42  ;;  %v2580_v34 = vmul.f32 0.35355338, %v6262_v6 }
 0xef6   :  { %v2606_v5 = vld.sshfl [vmem:[#allocation1] sm:$0xff pattern:$0x73625140] }
 0xef7   :  { %2648 = vst [vmem:[#allocation1] ss:$4 sm:$0xff] %v2576_v1  ;;  %v2607_v47 = vld.sshfl [vmem:[#allocation1 + $0x20] sm:$0xff pattern:$0x73625140] }
 0xef8   :  { %2650 = vst [vmem:[#allocation1 + $0x1] ss:$4 sm:$0xff] %v2577_v46  ;;  %2610 = vrot.lane.b32.xlu0 %v2607_v47, %s5242_s20 }
 0xef9   :  { %2652 = vst [vmem:[#allocation1 + $0x2] ss:$4 sm:$0xff] %v2578_v17 }
 0xefa   :  { %2654 = vst [vmem:[#allocation1 + $0x3] ss:$4 sm:$0xff] %v2579_v15 }
 0xefb   :  { %2656 = vst [vmem:[#allocation1 + $0x20] ss:$4 sm:$0xff] %v2580_v34 }
 0xf00   :  { %2608 = vrot.lane.b32.xlu0 %v2606_v5, %s5242_s20 }
 0xf01   :  { %v6269_v48 = vld.sshfl [vmem:[#allocation1] sm:$0xff pattern:$0x73625140] }
 0xf02   :  { %2659 = vst [vmem:[#allocation1] ss:$4 sm:$0xff] %v6249_v53  ;;  %v6273_v62 = vld.sshfl [vmem:[#allocation1 + $0x20] sm:$0xff pattern:$0x73625140] }
 0xf03   :  { %2661 = vst [vmem:[#allocation1 + $0x1] ss:$4 sm:$0xff] %v6255_v44 }
 0xf04   :  { %2663 = vst [vmem:[#allocation1 + $0x2] ss:$4 sm:$0xff] %v6258_v60 }
 0xf05   :  { %2665 = vst [vmem:[#allocation1 + $0x3] ss:$4 sm:$0xff] %v6252_v59 }
 0xf06   :  { %2667 = vst [vmem:[#allocation1 + $0x20] ss:$4 sm:$0xff] %v6262_v6 }
 0xf0c   :  { %v2668_v4 = vld.sshfl [vmem:[#allocation1] sm:$0xff pattern:$0x73625140] }
 0xf0d   :  { %2749 = vst [vmem:[#allocation1] ss:$4 sm:$0xff] %v6210_v24  ;;  %2670 = vrot.lane.b32.xlu1 %v2668_v4, %s5242_s20  ;;  %v2669_v55 = vld.sshfl [vmem:[#allocation1 + $0x20] sm:$0xff pattern:$0x73625140] }
 0xf0e   :  { %2751 = vst [vmem:[#allocation1 + $0x1] ss:$4 sm:$0xff] %v6213_v32  ;;  %2672 = vrot.lane.b32.xlu2 %v2669_v55, %s5242_s20 }
 0xf0f   :  { %2753 = vst [vmem:[#allocation1 + $0x2] ss:$4 sm:$0xff] %v6216_v28 }
 0xf10   :  { %2755 = vst [vmem:[#allocation1 + $0x3] ss:$4 sm:$0xff] %v6219_v29 }
 0xf11   :  { %2757 = vst [vmem:[#allocation1 + $0x20] ss:$4 sm:$0xff] %v6237_v42 }
 0xf17   :  { %v6286_v27 = vld.sshfl [vmem:[#allocation1] sm:$0xff pattern:$0x73625140] }
 0xf18   :  { %2796 = vst [vmem:[#allocation1] ss:$4 sm:$0xff] %v6249_v53  ;;  %v2759_v11 = vld.sshfl [vmem:[#allocation1 + $0x20] sm:$0xff pattern:$0x73625140] }
 0xf19   :  { %2798 = vst [vmem:[#allocation1 + $0x1] ss:$4 sm:$0xff] %v6255_v44 }
 0xf1a   :  { %2800 = vst [vmem:[#allocation1 + $0x2] ss:$4 sm:$0xff] %v6258_v60 }
 0xf1b   :  { %2802 = vst [vmem:[#allocation1 + $0x3] ss:$4 sm:$0xff] %v6252_v59 }
 0xf1c   :  { %2804 = vst [vmem:[#allocation1 + $0x20] ss:$4 sm:$0xff] %v6262_v6 }
 0xf22   :  { %v6293_v31 = vld.sshfl [vmem:[#allocation1] sm:$0xff pattern:$0x73625140] }
 0xf23   :  { %2843 = vst [vmem:[#allocation1] ss:$4 sm:$0xff] %v6222_v21  ;;  %v6297_v19 = vld.sshfl [vmem:[#allocation1 + $0x20] sm:$0xff pattern:$0x73625140] }
 0xf24   :  { %2845 = vst [vmem:[#allocation1 + $0x1] ss:$4 sm:$0xff] %v6225_v30 }
 0xf25   :  { %2847 = vst [vmem:[#allocation1 + $0x2] ss:$4 sm:$0xff] %v6228_v25 }
 0xf26   :  { %2849 = vst [vmem:[#allocation1 + $0x3] ss:$4 sm:$0xff] %v6231_v22 }
 0xf27   :  { %2851 = vst [vmem:[#allocation1 + $0x20] ss:$4 sm:$0xff] %v2575_v23 }
 0xf2d   :  { %v2852_v39 = vld.sshfl [vmem:[#allocation1] sm:$0xff pattern:$0x73625140] }
 0xf2e   :  { %2858 = vst [vmem:[#allocation1] ss:$4 sm:$0xff] %v6210_v24  ;;  %v2853_v45 = vld.sshfl [vmem:[#allocation1 + $0x20] sm:$0xff pattern:$0x73625140] }
 0xf2f   :  { %2860 = vst [vmem:[#allocation1 + $0x1] ss:$4 sm:$0xff] %v6213_v32 }
 0xf30   :  { %2862 = vst [vmem:[#allocation1 + $0x2] ss:$4 sm:$0xff] %v6216_v28 }
 0xf31   :  { %2864 = vst [vmem:[#allocation1 + $0x3] ss:$4 sm:$0xff] %v6219_v29 }
 0xf32   :  { %2866 = vst [vmem:[#allocation1 + $0x20] ss:$4 sm:$0xff] %v6237_v42 }
 0xf38   :  { %v2867_v41 = vld.sshfl [vmem:[#allocation1] sm:$0xff pattern:$0x73625140] }
 0xf39   :  { %2904 = vst [vmem:[#allocation1] ss:$4 sm:$0xff] %v2576_v1  ;;  %2869 = vrot.lane.b32.xlu1 %v2867_v41, %s5243_s22  ;;  %v2868_v38 = vld.sshfl [vmem:[#allocation1 + $0x20] sm:$0xff pattern:$0x73625140] }
 0xf3a   :  { %2906 = vst [vmem:[#allocation1 + $0x1] ss:$4 sm:$0xff] %v2577_v46  ;;  %2871 = vrot.lane.b32.xlu2 %v2868_v38, %s5243_s22 }
 0xf3b   :  { %2908 = vst [vmem:[#allocation1 + $0x2] ss:$4 sm:$0xff] %v2578_v17 }
 0xf3c   :  { %2910 = vst [vmem:[#allocation1 + $0x3] ss:$4 sm:$0xff] %v2579_v15 }
 0xf3d   :  { %2912 = vst [vmem:[#allocation1 + $0x20] ss:$4 sm:$0xff] %v2580_v34  ;;  %v4482_v34 = vpack.i.bf16 %v6293_v31, %v6286_v27 }
 0xf43   :  { %v2913_v37 = vld.sshfl [vmem:[#allocation1] sm:$0xff pattern:$0x73625140] }
 0xf44   :  { %2919 = vst [vmem:[#allocation1] ss:$4 sm:$0xff] %v6249_v53  ;;  %2915 = vrot.lane.b32.xlu1 %v2913_v37, %s5244_s21  ;;  %v2914_v54 = vld.sshfl [vmem:[#allocation1 + $0x20] sm:$0xff pattern:$0x73625140] }
 0xf45   :  { %2921 = vst [vmem:[#allocation1 + $0x1] ss:$4 sm:$0xff] %v6255_v44 }
 0xf46   :  { %2923 = vst [vmem:[#allocation1 + $0x2] ss:$4 sm:$0xff] %v6258_v60 }
 0xf47   :  { %2925 = vst [vmem:[#allocation1 + $0x3] ss:$4 sm:$0xff] %v6252_v59 }
 0xf48   :  { %2927 = vst [vmem:[#allocation1 + $0x20] ss:$4 sm:$0xff] %v6262_v6 }
 0xf4c   :  { %2762 = vrot.lane.b32.xlu1 %v2759_v11, %s5245_s27 }
 0xf4e   :  { %v2928_v20 = vld.sshfl [vmem:[#allocation1] sm:$0xff pattern:$0x73625140] }
 0xf4f   :  { %3009 = vst [vmem:[#allocation1] ss:$4 sm:$0xff] %v6210_v24  ;;  %2930 = vrot.lane.b32.xlu2 %v2928_v20, %s5243_s22  ;;  %v2929_v21 = vld.sshfl [vmem:[#allocation1 + $0x20] sm:$0xff pattern:$0x73625140] }
 0xf50   :  { %3011 = vst [vmem:[#allocation1 + $0x1] ss:$4 sm:$0xff] %v6213_v32  ;;  %2932 = vrot.lane.b32.xlu0 %v2929_v21, %s5243_s22 }
 0xf51   :  { %3013 = vst [vmem:[#allocation1 + $0x2] ss:$4 sm:$0xff] %v6216_v28 }
 0xf52   :  { %3015 = vst [vmem:[#allocation1 + $0x3] ss:$4 sm:$0xff] %v6219_v29 }
 0xf53   :  { %3017 = vst [vmem:[#allocation1 + $0x20] ss:$4 sm:$0xff] %v6237_v42 }
 0xf57   :  { %2917 = vrot.lane.b32.xlu2 %v2914_v54, %s5244_s21 }
 0xf58   :  { %2854 = vrot.lane.b32.xlu0 %v2852_v39, %s5244_s21 }
 0xf59   :  { %v6324_v30 = vld.sshfl [vmem:[#allocation1] sm:$0xff pattern:$0x73625140] }
 0xf5a   :  { %v6326_v24 = vld.sshfl [vmem:[#allocation1 + $0x20] sm:$0xff pattern:$0x73625140]  ;;  %3056 = vst [vmem:[#allocation1] ss:$4 sm:$0xff] %v6249_v53 }
 0xf5b   :  { %3064 = vst [vmem:[#allocation1 + $0x20] ss:$4 sm:$0xff] %v6262_v6 }
 0xf5c   :  { %3058 = vst [vmem:[#allocation1 + $0x1] ss:$4 sm:$0xff] %v6255_v44 }
 0xf5d   :  { %3060 = vst [vmem:[#allocation1 + $0x2] ss:$4 sm:$0xff] %v6258_v60 }
 0xf5e   :  { %3062 = vst [vmem:[#allocation1 + $0x3] ss:$4 sm:$0xff] %v6252_v59 }
 0xf60   :  { %2856 = vrot.lane.b32.xlu0 %v2853_v45, %s5244_s21 }
 0xf68   :  { %v2673_v32 = vpop.permute.xlu2 %2672 }
 0xf69   :  { %4333 = vmatpush.xpose.msk.msra.mxu3 %vm601_vm0, %v2673_v32 }
 0xf6a   :  { %v2611_v28 = vpop.permute.xlu0 %2610 }
 0xf6b   :  { %4329 = vmatpush.xpose.msk.msra.mxu2 %vm601_vm0, %v2611_v28 }
 0xf72   :  { %v2609_v29 = vpop.permute.xlu0 %2608 }
 0xf73   :  { %4330 = vmatpush.xpose.msk.msra.mxu2 %vm601_vm0, %v2609_v29 }
 0xf76   :  { %4331 = vmatmul.msk.f32.vlgmr.msra.gmra.mxu2 %vm601_vm0, %v6240_v36 }
 0xf7e   :  { %4332 = vmatmul.msk.f32.gmra.mxu2 %vm601_vm0, %v6246_v18  ;;  %v4619_v18 = vld [vmem:[%s6701_s17] sm:$0xff] }
 0xf7f   :  { %v2671_v25 = vpop.permute.xlu1 %2670 }
 0xf80   :  { %4334 = vmatpush.xpose.msk.msra.mxu3 %vm601_vm0, %v2671_v25 }
 0xf83   :  { %4335 = vmatmul.msk.f32.vlgmr.msra.gmra.mxu3 %vm601_vm0, %v6269_v48 }
 0xf8b   :  { %4336 = vmatmul.msk.f32.gmra.mxu3 %vm601_vm0, %v6273_v62 }
 0xf94   :  { %v2872_v22 = vpop.permute.xlu2 %2871 }
 0xf95   :  { %4343 = vmatpush.xpose.msk.msrb.mxu0 %vm601_vm0, %v2872_v22 }
 0xfa9   :  { %v2931_v51 = vpop.permute.xlu2 %2930 }
 0xfab   :  { %v2870_v49 = vpop.permute.xlu1 %2869 }
 0xfac   :  { %4344 = vmatpush.xpose.msk.msrb.mxu0 %vm601_vm0, %v2870_v49 }
 0xfb0   :  { %3154 = vmatpush.msra.mxu0 %v4618_v50 }
 0xfb1   :  { %v2918_v59 = vpop.permute.xlu2 %2917 }
 0xfb6   :  { %v2916_v42 = vpop.permute.xlu1 %2915 }
 0xfbe   :  { %v2763_v23 = vpop.permute.xlu1 %2762 }
 0xfbf   :  { %4337 = vmatpush.msk.msrb.mxu2 %vm931_vm2, %v2763_v23 }
 0xfc2   :  { %v2933_v36 = vpop.permute.xlu0 %2932 }
 0xfc3   :  { %4347 = vmatpush.xpose.msk.msrb.mxu1 %vm601_vm0, %v2933_v36 }
 0xfc7   :  { %4348 = vmatpush.xpose.msk.msrb.mxu1 %vm601_vm0, %v2931_v51 }
 0xfca   :  { %4349 = vmatmul.msk.f32.vlgmr.msrb.gmra.mxu1 %vm601_vm0, %v2916_v42  ;;  %v2855_v53 = vpop.permute.xlu0 %2854 }
 0xfcb   :  { %3216 = vmatpush.msra.mxu1 %v4619_v18  ;;  %4345 = vmatmul.msk.f32.vlgmr.msrb.gmra.mxu0 %vm601_vm0, %v2855_v53 }
 0xfd2   :  { %4350 = vmatmul.msk.f32.gmra.mxu1 %vm601_vm0, %v2918_v59  ;;  %v2857_v44 = vpop.permute.xlu0 %2856 }
 0xfd3   :  { %4346 = vmatmul.msk.f32.gmra.mxu0 %vm601_vm0, %v2857_v44 }
 0xff9   :  { %v2637_v60 = vpop.f32.mrf.mxu2 }
 0xffa   :  { %v2705_v1 = vsel %vm863_vm3, %v2637_v60, -inf }
 0xffb   :  { %2706 = vmax.xlane.f32.xlu1 %v2705_v1 }
0x1001   :  { %v2640_v6 = vpop.f32.mrf.mxu2 }
0x1002   :  { %v2708_v5 = vsel %vm867_vm4, %v2640_v6, -inf }
0x1003   :  { %2709 = vmax.xlane.f32.xlu0 %v2708_v5 }
0x1006   :  { %v2699_v46 = vpop.f32.mrf.mxu3 }
0x1007   :  { %v2711_v17 = vsel %vm863_vm3, %v2699_v46, -inf }
0x1008   :  { %2712 = vmax.xlane.f32.xlu2 %v2711_v17 }
0x100e   :  { %v2702_v15 = vpop.f32.mrf.mxu3 }
0x100f   :  { %v2714_v47 = vsel %vm867_vm4, %v2702_v15, -inf }
0x1010   :  { %2715 = vmax.xlane.f32.xlu2 %v2714_v47 }
0x1017   :  { %2809 = vrot.lane.b32.xlu0 %v6297_v19, %s5245_s27 }
0x1028   :  { %4483 = vrot.lane.b32.xlu2 %v4482_v34, %s5245_s27 }
0x1047   :  { %v2959_v48 = vpop.f32.mrf.mxu1 }
0x1048   :  { %v2898_v62 = vpop.f32.mrf.mxu0  ;;  %v2971_v4 = vsel %vm863_vm3, %v2959_v48, -inf }
0x1049   :  { %v2965_v55 = vsel %vm863_vm3, %v2898_v62, -inf  ;;  %2972 = vmax.xlane.f32.xlu0 %v2971_v4 }
0x104a   :  { %2966 = vmax.xlane.f32.xlu1 %v2965_v55 }
0x104f   :  { %v2962_v11 = vpop.f32.mrf.mxu1 }
0x1050   :  { %v6368_v39 = vpop.f32.mrf.mxu0  ;;  %v2974_v45 = vsel %vm867_vm4, %v2962_v11, -inf }
0x1051   :  { %v2968_v19 = vsel %vm867_vm4, %v6368_v39, -inf  ;;  %2975 = vmax.xlane.f32.xlu2 %v2974_v45 }
0x1052   :  { %2969 = vmax.xlane.f32.xlu1 %v2968_v19 }
0x106e   :  { %v2707_v27 = vpop.xlane.xlu1 %2706 }
0x106f   :  { %v2717_v31 = vsub.f32 %v2637_v60, %v2707_v27 }
0x1071   :  { %v2721_v41 = vmul.f32 1.442695, %v2717_v31 }
0x1073   :  { %4560 = vpow2.f32 %v2721_v41 }
0x1076   :  { %v2710_v38 = vpop.xlane.xlu0 %2709 }
0x1077   :  { %v2718_v37 = vsub.f32 %v2640_v6, %v2710_v38 }
0x1079   :  { %v4561_v54 = vpop.eup %4560  ;;  %v2723_v20 = vmul.f32 1.442695, %v2718_v37 }
0x107a   :  { %v2729_v32 = vsel %vm863_vm3, %v4561_v54, 0.0 }
0x107b   :  { %v2713_v21 = vpop.xlane.xlu2 %2712  ;;  %4562 = vpow2.f32 %v2723_v20  ;;  %2730 = vadd.xlane.f32.xlu0 %v2729_v32 }
0x107c   :  { %v2719_v28 = vsub.f32 %v2699_v46, %v2713_v21 }
0x107e   :  { %v2725_v29 = vmul.f32 1.442695, %v2719_v28 }
0x1080   :  { %4564 = vpow2.f32 %v2725_v29 }
0x1081   :  { %v4563_v25 = vpop.eup %4562 }
0x1082   :  { %v2732_v49 = vsel %vm867_vm4, %v4563_v25, 0.0 }
0x1083   :  { %v2716_v22 = vpop.xlane.xlu2 %2715  ;;  %2733 = vadd.xlane.f32.xlu0 %v2732_v49 }
0x1084   :  { %v2720_v50 = vsub.f32 %v2702_v15, %v2716_v22 }
0x1086   :  { %v4565_v42 = vpop.eup %4564  ;;  %v2727_v23 = vmul.f32 1.442695, %v2720_v50 }
0x1087   :  { %v2735_v36 = vsel %vm863_vm3, %v4565_v42, 0.0 }
0x1088   :  { %4566 = vpow2.f32 %v2727_v23  ;;  %2736 = vadd.xlane.f32.xlu2 %v2735_v36 }
0x1089   :  { %v2810_v51 = vpop.permute.xlu0 %2809 }
0x108a   :  { %4340 = vmatpush.msk.msrb.mxu3 %vm931_vm2, %v2810_v51 }
0x108b   :  { %v4484_v18 = vpop.permute.xlu2 %4483 }
0x108c   :  { %v4486_v53 = vunpack.i.h.bf16 %v4484_v18  ;;  %v4485_v59 = vunpack.i.l.bf16 %v4484_v18 }
0x108e   :  { %v4567_v44 = vpop.eup %4566  ;;  %2788 = vmatpush.msrb.mxu2 %v4485_v59  ;;  %2835 = vmatpush.msrb.mxu3 %v4486_v53 }
0x108f   :  { %v2738_v60 = vsel %vm867_vm4, %v4567_v44, 0.0 }
0x1090   :  { %2739 = vadd.xlane.f32.xlu1 %v2738_v60 }
0x10a9   :  { %3022 = vrot.lane.b32.xlu1 %v6326_v24, %s5246_s2 }
0x10bc   :  { %v2973_v1 = vpop.xlane.xlu0 %2972 }
0x10bd   :  { %v2967_v6 = vpop.xlane.xlu1 %2966  ;;  %v2979_v5 = vsub.f32 %v2959_v48, %v2973_v1 }
0x10be   :  { %v2977_v46 = vsub.f32 %v2898_v62, %v2967_v6  ;;  %v3066_v62 = vld.sshfl [vmem:[#allocation1 + $0x20] sm:$0xff pattern:$0x73625140]  ;;  %v4620_v6 = vld [vmem:[%s6703_s14 + $0x8] sm:$0xff] }
0x10bf   :  { %v2985_v17 = vmul.f32 1.442695, %v2979_v5 }
0x10c0   :  { %v2981_v15 = vmul.f32 1.442695, %v2977_v46 }
0x10c1   :  { %4568 = vpow2.f32 %v2985_v17 }
0x10c2   :  { %4570 = vpow2.f32 %v2981_v15 }
0x10c4   :  { %v2976_v47 = vpop.xlane.xlu2 %2975 }
0x10c5   :  { %v2980_v34 = vsub.f32 %v2962_v11, %v2976_v47  ;;  %v3065_v11 = vld.sshfl [vmem:[#allocation1] sm:$0xff pattern:$0x73625140]  ;;  %v2970_v38 = vpop.xlane.xlu1 %2969 }
0x10c6   :  { %v4487_v31 = vpack.i.bf16 %v3065_v11, %v6324_v30  ;;  %v2978_v37 = vsub.f32 %v6368_v39, %v2970_v38 }
0x10c7   :  { %v6380_v4 = vpop.eup %4568  ;;  %v2987_v55 = vmul.f32 1.442695, %v2980_v34  ;;  %v4622_v34 = vld [vmem:[%s6707_s15 + $0x8] sm:$0xff] }
0x10c8   :  { %v4571_v45 = vpop.eup %4570  ;;  %v2995_v19 = vsel %vm863_vm3, %v6380_v4, 0.0  ;;  %v2983_v28 = vmul.f32 1.442695, %v2978_v37 }
0x10c9   :  { %v2989_v27 = vsel %vm863_vm3, %v4571_v45, 0.0  ;;  %4572 = vpow2.f32 %v2987_v55  ;;  %2996 = vadd.xlane.f32.xlu0 %v2995_v19 }
0x10ca   :  { %2990 = vadd.xlane.f32.xlu2 %v2989_v27 }
0x10cf   :  { %v6385_v24 = vpop.eup %4572 }
0x10d0   :  { %v2998_v48 = vsel %vm867_vm4, %v6385_v24, 0.0 }
0x10d3   :  { %2999 = vadd.xlane.f32.xlu1 %v2998_v48 }
0x10dd   :  { %3069 = vrot.lane.b32.xlu0 %v3066_v62, %s5246_s2 }
0x10e2   :  { %4488 = vrot.lane.b32.xlu2 %v4487_v31, %s5246_s2 }
0x10ee   :  { %v2731_v41 = vpop.xlane.xlu0 %2730 }
0x10ef   :  { %4574 = vrcp.f32 %v2731_v41 }
0x10f5   :  { %v4575_v20 = vpop.eup %4574 }
0x10f6   :  { %v2745_v21 = vmul.f32 %v4575_v20, %v4561_v54  ;;  %v2734_v32 = vpop.xlane.xlu0 %2733 }
0x10f7   :  { %4576 = vrcp.f32 %v2734_v32 }
0x10f8   :  { %4338 = vmatmul.msk.f32.vlgmr.msrb.gmra.mxu2 %vm863_vm3, %v2745_v21 }
0x10fb   :  { %v2737_v29 = vpop.xlane.xlu2 %2736 }
0x10fc   :  { %4578 = vrcp.f32 %v2737_v29 }
0x10fd   :  { %4580 = vpow2.f32 %v2983_v28  ;;  %v4577_v22 = vpop.eup %4576 }
0x10fe   :  { %v2746_v49 = vmul.f32 %v4577_v22, %v4563_v25 }
0x1100   :  { %4339 = vmatmul.msk.f32.gmra.mxu2 %vm863_vm3, %v2746_v49 }
0x1102   :  { %v4579_v30 = vpop.eup %4578 }
0x1103   :  { %v4581_v50 = vpop.eup %4580  ;;  %v2747_v23 = vmul.f32 %v4579_v30, %v4565_v42  ;;  %v2740_v36 = vpop.xlane.xlu1 %2739 }
0x1104   :  { %4582 = vrcp.f32 %v2740_v36  ;;  %v2992_v39 = vsel %vm867_vm4, %v4581_v50, 0.0 }
0x1105   :  { %4341 = vmatmul.msk.f32.vlgmr.msrb.gmra.mxu3 %vm863_vm3, %v2747_v23 }
0x1107   :  { %2993 = vadd.xlane.f32.xlu0 %v2992_v39 }
0x110a   :  { %v4583_v54 = vpop.eup %4582 }
0x110b   :  { %v2748_v51 = vmul.f32 %v4583_v54, %v4567_v44  ;;  %v4621_v44 = vld [vmem:[%s6703_s14] sm:$0xff] }
0x110d   :  { %4342 = vmatmul.msk.f32.gmra.mxu3 %vm863_vm3, %v2748_v51 }
0x111b   :  { %v3023_v18 = vpop.permute.xlu1 %3022 }
0x111c   :  { %4351 = vmatpush.msk.msra.mxu2 %vm931_vm2, %v3023_v18 }
0x113c   :  { %v2997_v59 = vpop.xlane.xlu0 %2996 }
0x113d   :  { %v2991_v25 = vpop.xlane.xlu2 %2990 }
0x113e   :  { %4584 = vrcp.f32 %v2991_v25 }
0x113f   :  { %4586 = vrcp.f32 %v2997_v59 }
0x1144   :  { %v4585_v53 = vpop.eup %4584 }
0x1145   :  { %v4489_v42 = vpop.permute.xlu2 %4488  ;;  %v3005_v1 = vmul.f32 %v4585_v53, %v4571_v45  ;;  %v4587_v46 = vpop.eup %4586  ;;  %v4623_v45 = vld [vmem:[%s6707_s15] sm:$0xff] }
0x1146   :  { %v4490_v60 = vunpack.i.l.bf16 %v4489_v42  ;;  %v3000_v5 = vpop.xlane.xlu1 %2999  ;;  %v4491_v15 = vunpack.i.h.bf16 %v4489_v42  ;;  %v3007_v47 = vmul.f32 %v4587_v46, %v6380_v4 }
0x1147   :  { %4588 = vrcp.f32 %v3000_v5 }
0x1148   :  { %3048 = vmatpush.msra.mxu2 %v4490_v60 }
0x1149   :  { %4352 = vmatmul.msk.f32.vlgmr.msra.gmra.mxu2 %vm863_vm3, %v3005_v1 }
0x114a   :  { %3337 = vmatpush.msrb.mxu2 %v4620_v6 }
0x114c   :  { %3338 = vmatpush.msrb.mxu2 %v4621_v44 }
0x114d   :  { %v4589_v55 = vpop.eup %4588 }
0x114e   :  { %v3008_v19 = vmul.f32 %v4589_v55, %v6385_v24 }
0x114f   :  { %v3070_v17 = vpop.permute.xlu0 %3069 }
0x1150   :  { %4354 = vmatpush.msk.msra.mxu3 %vm931_vm2, %v3070_v17  ;;  %v4624_v17 = vld [vmem:[%s6702_s26] ss:$0 sm:$0xff] }
0x1152   :  { %3095 = vmatpush.msra.mxu3 %v4491_v15 }
0x1153   :  { %4355 = vmatmul.msk.f32.vlgmr.msra.gmra.mxu3 %vm863_vm3, %v3007_v47 }
0x1154   :  { %3395 = vmatpush.msrb.mxu3 %v4622_v34 }
0x1156   :  { %3396 = vmatpush.msrb.mxu3 %v4623_v45 }
0x115b   :  { %4356 = vmatmul.msk.f32.gmra.mxu3 %vm863_vm3, %v3008_v19 }
0x117a   :  { %v2994_v27 = vpop.xlane.xlu0 %2993 }
0x117b   :  { %4590 = vrcp.f32 %v2994_v27  ;;  %v2790_v11 = vpop.f32.mrf.mxu2 }
0x117c   :  { %v3169_v30 = vrot.slane %v2790_v11, 2  ;;  %v3170_v23 = vrot.slane %v2790_v11, 4  ;;  %v3171_v36 = vrot.slane %v2790_v11, 6 }
0x1181   :  { %v4591_v48 = vpop.eup %4590 }
0x1182   :  { %v3006_v62 = vmul.f32 %v4591_v48, %v4581_v50 }
0x1183   :  { %v2793_v31 = vpop.f32.mrf.mxu2 }
0x1184   :  { %4353 = vmatmul.msk.f32.gmra.mxu2 %vm863_vm3, %v3006_v62 }
0x1188   :  { %v2837_v4 = vpop.f32.mrf.mxu3 }
0x1189   :  { %v3174_v39 = vrot.slane %v2837_v4, 6  ;;  %v3172_v25 = vrot.slane %v2837_v4, 2  ;;  %v3173_v53 = vrot.slane %v2837_v4, 4 }
0x1190   :  { %v2840_v21 = vpop.f32.mrf.mxu3 }
0x11cc   :  { %v3050_v41 = vpop.f32.mrf.mxu2 }
0x11cd   :  { %v3107_v38 = vrot.slane %v3050_v41, 2  ;;  %v3108_v37 = vrot.slane %v3050_v41, 4  ;;  %v3109_v20 = vrot.slane %v3050_v41, 6  ;;  %3113 = vst [vmem:[#allocation1] ss:$4 sm:$0xff] %v3050_v41 }
0x11cf   :  { %3115 = vst [vmem:[#allocation1 + $0x1] ss:$4 sm:$0xff] %v3107_v38 }
0x11d0   :  { %3117 = vst [vmem:[#allocation1 + $0x2] ss:$4 sm:$0xff] %v3108_v37 }
0x11d1   :  { %3119 = vst [vmem:[#allocation1 + $0x3] ss:$4 sm:$0xff] %v3109_v20 }
0x11d6   :  { %v3097_v24 = vpop.f32.mrf.mxu3 }
0x11d7   :  { %v3110_v32 = vrot.slane %v3097_v24, 2  ;;  %v3111_v28 = vrot.slane %v3097_v24, 4  ;;  %v3112_v29 = vrot.slane %v3097_v24, 6  ;;  %3123 = vst [vmem:[#allocation1 + $0x21] ss:$4 sm:$0xff] %v3097_v24 }
0x11d8   :  { %v3128_v22 = vld.sshfl [vmem:[#allocation1] sm:$0xff pattern:$0x73625140] }
0x11d9   :  { %4357 = vmatmul.msk.f32.vlgmr.msra.gmra.mxu0 %vm601_vm0, %v3128_v22  ;;  %3130 = vst [vmem:[#allocation1] ss:$4 sm:$0xff] %v3112_v29 }
0x11da   :  { %3125 = vst [vmem:[#allocation1 + $0x22] ss:$4 sm:$0xff] %v3110_v32 }
0x11db   :  { %3127 = vst [vmem:[#allocation1 + $0x23] ss:$4 sm:$0xff] %v3111_v28 }
0x11de   :  { %v3100_v49 = vpop.f32.mrf.mxu3 }
0x11df   :  { %3131 = vst [vmem:[#allocation1 + $0x1] ss:$4 sm:$0xff] %v3100_v49 }
0x11e6   :  { %v3132_v50 = vld.sshfl [vmem:[#allocation1] sm:$0xff pattern:$0x73625140] }
0x11e7   :  { %3175 = vst [vmem:[#allocation1] ss:$4 sm:$0xff] %v2790_v11 }
0x11e8   :  { %3177 = vst [vmem:[#allocation1 + $0x1] ss:$4 sm:$0xff] %v3169_v30 }
0x11e9   :  { %3179 = vst [vmem:[#allocation1 + $0x2] ss:$4 sm:$0xff] %v3170_v23 }
0x11ea   :  { %3181 = vst [vmem:[#allocation1 + $0x3] ss:$4 sm:$0xff] %v3171_v36  ;;  %v512_v36 = vld [vmem:[#allocation21] sm:$0xff] }
0x11f1   :  { %v3190_v54 = vld.sshfl [vmem:[#allocation1] sm:$0xff pattern:$0x73625140] }
0x11f2   :  { %4360 = vmatmul.msk.f32.vlgmr.msra.gmra.mxu1 %vm601_vm0, %v3190_v54  ;;  %3192 = vst [vmem:[#allocation1] ss:$4 sm:$0xff] %v3174_v39 }
0x11f3   :  { %3193 = vst [vmem:[#allocation1 + $0x1] ss:$4 sm:$0xff] %v2840_v21 }
0x11fa   :  { %v3194_v59 = vld.sshfl [vmem:[#allocation1] sm:$0xff pattern:$0x73625140] }
0x1207   :  { %v3053_v51 = vpop.f32.mrf.mxu2 }
0x1208   :  { %3121 = vst [vmem:[#allocation1 + $0x20] ss:$4 sm:$0xff] %v3053_v51 }
0x120f   :  { %v3129_v18 = vld.sshfl [vmem:[#allocation1 + $0x20] sm:$0xff pattern:$0x73625140] }
0x1210   :  { %4358 = vmatmul.msk.f32.gmra.mxu0 %vm601_vm0, %v3129_v18  ;;  %3183 = vst [vmem:[#allocation1 + $0x20] ss:$4 sm:$0xff] %v2793_v31 }
0x1211   :  { %3185 = vst [vmem:[#allocation1 + $0x21] ss:$4 sm:$0xff] %v2837_v4 }
0x1212   :  { %3187 = vst [vmem:[#allocation1 + $0x22] ss:$4 sm:$0xff] %v3172_v25 }
0x1213   :  { %3189 = vst [vmem:[#allocation1 + $0x23] ss:$4 sm:$0xff] %v3173_v53  ;;  %v517_v53 = vld [vmem:[#allocation25] sm:$0x1] }
0x1218   :  { %4359 = vmatmul.msk.f32.gmra.mxu0 %vm601_vm0, %v3132_v50  ;;  %v513_v50 = vld [vmem:[#allocation21 + $0x8] sm:$0xff] }
0x1219   :  { %3454 = vmatpush.msrb.mxu0 %v513_v50 }
0x121a   :  { %v3191_v42 = vld.sshfl [vmem:[#allocation1 + $0x20] sm:$0xff pattern:$0x73625140] }
0x121b   :  { %4361 = vmatmul.msk.f32.gmra.mxu1 %vm601_vm0, %v3191_v42  ;;  %3455 = vmatpush.msrb.mxu0 %v512_v36 }
0x1223   :  { %4362 = vmatmul.msk.f32.gmra.mxu1 %vm601_vm0, %v3194_v59 }
0x1256   :  { %v3156_v60 = vpop.f32.mrf.mxu0 }
0x126f   :  { %v3218_v1 = vpop.f32.mrf.mxu1 }
0x1270   :  { %v3219_v6 = vadd.f32 %v3218_v1, %v3156_v60 }
0x1272   :  { %v3230_v44 = vrot.slane %v3219_v6, 2  ;;  %v3231_v5 = vrot.slane %v3219_v6, 4  ;;  %v3232_v46 = vrot.slane %v3219_v6, 6  ;;  %v3244_v15 = vadd.f32 %v4624_v17, %v3219_v6 }
0x1274   :  { %v3245_v47 = vadd.f32 %v3230_v44, %v5859_v0  ;;  %v3246_v34 = vadd.f32 %v3231_v5, %v5861_v2  ;;  %v3247_v55 = vadd.f32 %v3232_v46, %v5863_v3  ;;  %v6421_v45 = vadd.f32 %v3244_v15, %v6151_v10  ;;  %v4503_v10 = vld [vmem:[%s6709_s5] ss:$0 sm:$0xff] }
0x1275   :  { %3436 = vrot.lane.b32.xlu2 %v4503_v10, %s5245_s27 }
0x1276   :  { %v6424_v19 = vadd.f32 %v3245_v47, %v6155_v57  ;;  %v6427_v27 = vadd.f32 %v3246_v34, %v6159_v52  ;;  %v6430_v48 = vadd.f32 %v3247_v55, %v6163_v26  ;;  %3274 = vst [vmem:[#allocation1] ss:$4 sm:$0xff] %v6421_v45 }
0x1278   :  { %3276 = vst [vmem:[#allocation1 + $0x1] ss:$4 sm:$0xff] %v6424_v19 }
0x1279   :  { %3278 = vst [vmem:[#allocation1 + $0x2] ss:$4 sm:$0xff] %v6427_v27 }
0x127a   :  { %3280 = vst [vmem:[#allocation1 + $0x3] ss:$4 sm:$0xff] %v6430_v48 }
0x1281   :  { %v3289_v62 = vld.sshfl [vmem:[#allocation1] sm:$0xff pattern:$0x73625140] }
0x1282   :  { %4363 = vmatmul.msk.f32.vlgmr.msrb.gmra.mxu2 %vm679_vm1, %v3289_v62  ;;  %v514_v62 = vld [vmem:[#allocation22] sm:$0x1] }
0x128d   :  { %v3159_v57 = vpop.f32.mrf.mxu0 }
0x1295   :  { %v3162_v29 = vpop.f32.mrf.mxu0 }
0x1298   :  { %v3221_v52 = vpop.f32.mrf.mxu1 }
0x1299   :  { %v3222_v11 = vadd.f32 %v3221_v52, %v3159_v57 }
0x129b   :  { %v3233_v4 = vrot.slane %v3222_v11, 2  ;;  %v3234_v26 = vrot.slane %v3222_v11, 4  ;;  %v3235_v31 = vrot.slane %v3222_v11, 6  ;;  %v3248_v41 = vadd.f32 %v4624_v17, %v3222_v11 }
0x129d   :  { %v3249_v38 = vadd.f32 %v4624_v17, %v3233_v4  ;;  %v3250_v37 = vadd.f32 %v3234_v26, %v5859_v0  ;;  %v3251_v20 = vadd.f32 %v3235_v31, %v5861_v2  ;;  %v6442_v21 = vadd.f32 %v3248_v41, %v6170_v8 }
0x129f   :  { %v6445_v24 = vadd.f32 %v3249_v38, %v6174_v33  ;;  %v6448_v32 = vadd.f32 %v3250_v37, %v6178_v12  ;;  %v6451_v28 = vadd.f32 %v3251_v20, %v6182_v13  ;;  %3282 = vst [vmem:[#allocation1 + $0x20] ss:$4 sm:$0xff] %v6442_v21 }
0x12a0   :  { %v3224_v22 = vpop.f32.mrf.mxu1 }
0x12a1   :  { %3284 = vst [vmem:[#allocation1 + $0x21] ss:$4 sm:$0xff] %v6445_v24  ;;  %v3225_v0 = vadd.f32 %v3224_v22, %v3162_v29 }
0x12a2   :  { %3286 = vst [vmem:[#allocation1 + $0x22] ss:$4 sm:$0xff] %v6448_v32 }
0x12a3   :  { %3288 = vst [vmem:[#allocation1 + $0x23] ss:$4 sm:$0xff] %v6451_v28  ;;  %v3236_v2 = vrot.slane %v3225_v0, 2  ;;  %v3252_v8 = vadd.f32 %v3225_v0, %v5863_v3  ;;  %v3494_v0 = vperm.slane %v517_v53, 0 }
0x12a5   :  { %v3253_v33 = vadd.f32 %v4624_v17, %v3236_v2  ;;  %v6459_v12 = vadd.f32 %v3252_v8, %v6190_v40  ;;  %v3496_v8 = vrot.slane %v3494_v0, 4 }
0x12a7   :  { %v6462_v13 = vadd.f32 %v3253_v33, %v6194_v35  ;;  %3291 = vst [vmem:[#allocation1] ss:$4 sm:$0xff] %v6459_v12 }
0x12a9   :  { %3292 = vst [vmem:[#allocation1 + $0x1] ss:$4 sm:$0xff] %v6462_v13 }
0x12aa   :  { %v3290_v49 = vld.sshfl [vmem:[#allocation1 + $0x20] sm:$0xff pattern:$0x73625140] }
0x12ab   :  { %4364 = vmatmul.msk.f32.gmra.mxu2 %vm679_vm1, %v3290_v49  ;;  %3302 = vst [vmem:[#allocation1 + $0x20] ss:$4 sm:$0xff] %v5923_v56 }
0x12ac   :  { %3304 = vst [vmem:[#allocation1 + $0x21] ss:$4 sm:$0xff] %v5923_v56 }
0x12ad   :  { %3306 = vst [vmem:[#allocation1 + $0x22] ss:$4 sm:$0xff] %v5934_v58 }
0x12ae   :  { %3308 = vst [vmem:[#allocation1 + $0x23] ss:$4 sm:$0xff] %v5939_v61 }
0x12b0   :  { %v3293_v3 = vld.sshfl [vmem:[#allocation1] sm:$0xff pattern:$0x73625140] }
0x12b1   :  { %3294 = vst [vmem:[#allocation1] ss:$4 sm:$0xff] %v5923_v56 }
0x12b2   :  { %3296 = vst [vmem:[#allocation1 + $0x1] ss:$4 sm:$0xff] %v5934_v58 }
0x12b3   :  { %4365 = vmatmul.msk.f32.gmra.mxu2 %vm679_vm1, %v3293_v3  ;;  %3298 = vst [vmem:[#allocation1 + $0x2] ss:$4 sm:$0xff] %v5939_v61 }
0x12b4   :  { %3300 = vst [vmem:[#allocation1 + $0x3] ss:$4 sm:$0xff] %v5946_v63 }
0x12b5   :  { %v3310_v35 = vld.sshfl [vmem:[#allocation1 + $0x20] sm:$0xff pattern:$0x73625140] }
0x12b6   :  { %3357 = vst [vmem:[#allocation1 + $0x20] ss:$4 sm:$0xff] %v5948_v7 }
0x12b7   :  { %3359 = vst [vmem:[#allocation1 + $0x21] ss:$4 sm:$0xff] %v5948_v7 }
0x12b8   :  { %3361 = vst [vmem:[#allocation1 + $0x22] ss:$4 sm:$0xff] %v5956_v9 }
0x12b9   :  { %3363 = vst [vmem:[#allocation1 + $0x23] ss:$4 sm:$0xff] %v5959_v14 }
0x12bb   :  { %v3309_v40 = vld.sshfl [vmem:[#allocation1] sm:$0xff pattern:$0x73625140] }
0x12bc   :  { %3311 = vst [vmem:[#allocation1] ss:$4 sm:$0xff] %v5946_v63  ;;  %v516_v63 = vld [vmem:[#allocation24 + $0x8] sm:$0xff] }
0x12bd   :  { %3312 = vst [vmem:[#allocation1 + $0x1] ss:$4 sm:$0xff] %v5923_v56  ;;  %v515_v56 = vld [vmem:[#allocation24] sm:$0xff]  ;;  %3485 = vmatpush.msrb.mxu1 %v516_v63 }
0x12be   :  { %v4492_v23 = vpack.i.bf16 %v515_v56, %v516_v63 }
0x12bf   :  { %3486 = vmatpush.msrb.mxu1 %v515_v56 }
0x12c0   :  { %4493 = vrot.lane.b32.xlu2 %v4492_v23, %s5242_s20  ;;  %v3365_v25 = vld.sshfl [vmem:[#allocation1 + $0x20] sm:$0xff pattern:$0x73625140] }
0x12c4   :  { %v3313_v61 = vld.sshfl [vmem:[#allocation1] sm:$0xff pattern:$0x73625140] }
0x12c5   :  { %3349 = vst [vmem:[#allocation1] ss:$4 sm:$0xff] %v5948_v7 }
0x12c6   :  { %3351 = vst [vmem:[#allocation1 + $0x1] ss:$4 sm:$0xff] %v5956_v9 }
0x12c7   :  { %3353 = vst [vmem:[#allocation1 + $0x2] ss:$4 sm:$0xff] %v5959_v14 }
0x12c8   :  { %3355 = vst [vmem:[#allocation1 + $0x3] ss:$4 sm:$0xff] %v5968_v16 }
0x12cf   :  { %v3437_v39 = vpop.permute.xlu2 %3436  ;;  %v3364_v54 = vld.sshfl [vmem:[#allocation1] sm:$0xff pattern:$0x73625140] }
0x12d0   :  { %4369 = vmatmul.msk.f32.vlgmr.msrb.gmra.mxu0 %vm679_vm1, %v3437_v39  ;;  %3366 = vst [vmem:[#allocation1] ss:$4 sm:$0xff] %v5968_v16 }
0x12d1   :  { %3367 = vst [vmem:[#allocation1 + $0x1] ss:$4 sm:$0xff] %v5948_v7 }
0x12d8   :  { %v3368_v42 = vld.sshfl [vmem:[#allocation1] sm:$0xff pattern:$0x73625140] }
0x12d9   :  { %3464 = vst [vmem:[#allocation1] ss:$9 sm:$0xff] %v517_v53 }
0x12da   :  { %3466 = vst [vmem:[#allocation1 + $0x1] ss:$9 sm:$0xff] %v517_v53 }
0x12e1   :  { %v6493_v6 = vld [vmem:[#allocation1] sm:$0xff] }
0x1305   :  { %v3340_v58 = vpop.f32.mrf.mxu2 }
0x1306   :  { %v3341_v30 = vadd.f32 %v3340_v58, %v3309_v40 }
0x1308   :  { %4366 = vmatmul.msk.f32.vlgmr.msrb.gmra.mxu3 %vm679_vm1, %v3341_v30 }
0x131a   :  { %v4494_v59 = vpop.permute.xlu2 %4493 }
0x131b   :  { %v4496_v60 = vunpack.i.h.bf16 %v4494_v59  ;;  %v4495_v1 = vunpack.i.l.bf16 %v4494_v59 }
0x131d   :  { %3585 = vmatpush.msra.mxu0 %v4495_v1 }
0x131f   :  { %3586 = vmatpush.msra.mxu0 %v4496_v60 }
0x132e   :  { %v3343_v9 = vpop.f32.mrf.mxu2 }
0x132f   :  { %v3344_v14 = vadd.f32 %v3343_v9, %v3310_v35 }
0x1331   :  { %4367 = vmatmul.msk.f32.gmra.mxu3 %vm679_vm1, %v3344_v14 }
0x1336   :  { %v3346_v51 = vpop.f32.mrf.mxu2 }
0x1337   :  { %v3347_v18 = vadd.f32 %v3346_v51, %v3313_v61 }
0x1339   :  { %4368 = vmatmul.msk.f32.gmra.mxu3 %vm679_vm1, %v3347_v18 }
0x134d   :  { %v3457_v10 = vpop.f32.mrf.mxu0 }
0x134e   :  { %v6500_v57 = vadd.f32 %v3457_v10, %v514_v62 }
0x1350   :  { %v3461_v52 = vrot.slane %v6500_v57, 7 }
0x138b   :  { %v3398_v16 = vpop.f32.mrf.mxu3 }
0x138c   :  { %v3399_v7 = vadd.f32 %v3398_v16, %v3364_v54 }
0x138e   :  { %v3410_v44 = vrot.slane %v3399_v7, 2  ;;  %v3411_v5 = vrot.slane %v3399_v7, 4  ;;  %v3412_v46 = vrot.slane %v3399_v7, 6  ;;  %v3424_v17 = vadd.f32 %v3399_v7, %v6421_v45 }
0x138f   :  { %v3462_v45 = vsel %vm1642_vm5, %v3461_v52, %v6500_v57  ;;  %v523_v52 = vld [vmem:[#allocation31] sm:$0x1] }
0x1390   :  { %v3425_v15 = vadd.f32 %v3410_v44, %v6424_v19  ;;  %v3426_v47 = vadd.f32 %v3411_v5, %v6427_v27  ;;  %v3427_v34 = vadd.f32 %v3412_v46, %v6430_v48  ;;  %3508 = vst [vmem:[#allocation1] ss:$4 sm:$0xff] %v3424_v17  ;;  %4370 = vmatmul.msk.f32.vlgmr.msrb.gmra.mxu1 %vm679_vm1, %v3462_v45 }
0x1392   :  { %3510 = vst [vmem:[#allocation1 + $0x1] ss:$4 sm:$0xff] %v3425_v15 }
0x1393   :  { %3512 = vst [vmem:[#allocation1 + $0x2] ss:$4 sm:$0xff] %v3426_v47 }
0x1394   :  { %3514 = vst [vmem:[#allocation1 + $0x3] ss:$4 sm:$0xff] %v3427_v34 }
0x139b   :  { %v3523_v55 = vld.sshfl [vmem:[#allocation1] sm:$0xff pattern:$0x73625140] }
0x139c   :  { %4371 = vmatmul.msk.f32.vlgmr.msra.gmra.mxu0 %vm679_vm1, %v3523_v55 }
0x13b4   :  { %v3401_v19 = vpop.f32.mrf.mxu3 }
0x13b5   :  { %v3402_v27 = vadd.f32 %v3401_v19, %v3365_v25  ;;  %v526_v19 = vld [vmem:[#allocation34] sm:$0x1] }
0x13b7   :  { %v3413_v48 = vrot.slane %v3402_v27, 2  ;;  %v3414_v11 = vrot.slane %v3402_v27, 4  ;;  %v3415_v4 = vrot.slane %v3402_v27, 6  ;;  %v3428_v26 = vadd.f32 %v3402_v27, %v6442_v21 }
0x13b8   :  { %v3495_v21 = vrot.slane %v3494_v0, 2 }
0x13b9   :  { %v3429_v31 = vadd.f32 %v3413_v48, %v6445_v24  ;;  %v3430_v41 = vadd.f32 %v3414_v11, %v6448_v32  ;;  %v3431_v38 = vadd.f32 %v3415_v4, %v6451_v28  ;;  %3516 = vst [vmem:[#allocation1 + $0x20] ss:$4 sm:$0xff] %v3428_v26  ;;  %v3497_v32 = vrot.slane %v3494_v0, 6 }
0x13bb   :  { %3518 = vst [vmem:[#allocation1 + $0x21] ss:$4 sm:$0xff] %v3429_v31 }
0x13bc   :  { %3520 = vst [vmem:[#allocation1 + $0x22] ss:$4 sm:$0xff] %v3430_v41  ;;  %v3404_v37 = vpop.f32.mrf.mxu3 }
0x13bd   :  { %3522 = vst [vmem:[#allocation1 + $0x23] ss:$4 sm:$0xff] %v3431_v38  ;;  %v3405_v20 = vadd.f32 %v3404_v37, %v3368_v42 }
0x13bf   :  { %v3416_v29 = vrot.slane %v3405_v20, 2  ;;  %v3432_v22 = vadd.f32 %v3405_v20, %v6459_v12 }
0x13c1   :  { %v3433_v2 = vadd.f32 %v3416_v29, %v6462_v13  ;;  %3525 = vst [vmem:[#allocation1] ss:$4 sm:$0xff] %v3432_v22 }
0x13c3   :  { %3526 = vst [vmem:[#allocation1 + $0x1] ss:$4 sm:$0xff] %v3433_v2 }
0x13c4   :  { %v3524_v24 = vld.sshfl [vmem:[#allocation1 + $0x20] sm:$0xff pattern:$0x73625140] }
0x13c5   :  { %4372 = vmatmul.msk.f32.gmra.mxu0 %vm679_vm1, %v3524_v24  ;;  %3544 = vst [vmem:[#allocation1 + $0x20] ss:$4 sm:$0xff] %v3494_v0 }
0x13c6   :  { %3546 = vst [vmem:[#allocation1 + $0x21] ss:$4 sm:$0xff] %v3494_v0 }
0x13c7   :  { %3548 = vst [vmem:[#allocation1 + $0x22] ss:$4 sm:$0xff] %v3495_v21 }
0x13c8   :  { %3550 = vst [vmem:[#allocation1 + $0x23] ss:$4 sm:$0xff] %v3496_v8 }
0x13ca   :  { %v3527_v28 = vld.sshfl [vmem:[#allocation1] sm:$0xff pattern:$0x73625140] }
0x13cb   :  { %3536 = vst [vmem:[#allocation1] ss:$4 sm:$0xff] %v3494_v0 }
0x13cc   :  { %3538 = vst [vmem:[#allocation1 + $0x1] ss:$4 sm:$0xff] %v3495_v21 }
0x13cd   :  { %4373 = vmatmul.msk.f32.gmra.mxu0 %vm679_vm1, %v3527_v28  ;;  %3540 = vst [vmem:[#allocation1 + $0x2] ss:$4 sm:$0xff] %v3496_v8 }
0x13ce   :  { %3542 = vst [vmem:[#allocation1 + $0x3] ss:$4 sm:$0xff] %v3497_v32 }
0x13cf   :  { %v3552_v33 = vld.sshfl [vmem:[#allocation1 + $0x20] sm:$0xff pattern:$0x73625140] }
0x13d0   :  { %3558 = vrot.lane.b32.xlu2 %v3552_v33, %s5242_s20 }
0x13d5   :  { %v3551_v12 = vld.sshfl [vmem:[#allocation1] sm:$0xff pattern:$0x73625140] }
0x13d6   :  { %3553 = vst [vmem:[#allocation1] ss:$4 sm:$0xff] %v3497_v32 }
0x13d7   :  { %3554 = vst [vmem:[#allocation1 + $0x1] ss:$4 sm:$0xff] %v3494_v0 }
0x13d8   :  { %3556 = vrot.lane.b32.xlu2 %v3551_v12, %s5242_s20 }
0x13de   :  { %v3555_v13 = vld.sshfl [vmem:[#allocation1] sm:$0xff pattern:$0x73625140] }
0x13e0   :  { %3560 = vrot.lane.b32.xlu2 %v3555_v13, %s5242_s20 }
0x140d   :  { %v3488_v51 = vpop.f32.mrf.mxu1 }
0x140e   :  { %v3489_v53 = vadd.f32 %v3488_v51, %v6493_v6 }
0x1410   :  { %v6544_v42 = vmul.f32 0.35355338, %v3489_v53  ;;  %v3492_v1 = vrot.slane %v3489_v53, 1 }
0x1412   :  { %v3608_v16 = vmul.f32 0.35355338, %v3492_v1 }
0x1414   :  { %v3833_v55 = vperm.slane %v3608_v16, 0 }
0x1419   :  { %v3588_v3 = vpop.f32.mrf.mxu0 }
0x142a   :  { %v3559_v49 = vpop.permute.xlu2 %3558 }
0x1432   :  { %v3557_v40 = vpop.permute.xlu2 %3556 }
0x1433   :  { %v6517_v35 = vadd.f32 %v3588_v3, %v3557_v40 }
0x1435   :  { %v6520_v58 = vrot.slane %v6517_v35, 2  ;;  %v6523_v30 = vrot.slane %v6517_v35, 4  ;;  %v6526_v61 = vrot.slane %v6517_v35, 6  ;;  %3609 = vst [vmem:[#allocation1] ss:$4 sm:$0xff] %v6517_v35 }
0x1437   :  { %3611 = vst [vmem:[#allocation1 + $0x1] ss:$4 sm:$0xff] %v6520_v58 }
0x1438   :  { %3613 = vst [vmem:[#allocation1 + $0x2] ss:$4 sm:$0xff] %v6523_v30 }
0x1439   :  { %3615 = vst [vmem:[#allocation1 + $0x3] ss:$4 sm:$0xff] %v6526_v61 }
0x143a   :  { %v3561_v54 = vpop.permute.xlu2 %3560 }
0x1440   :  { %v3618_v39 = vld.sshfl [vmem:[#allocation1] sm:$0xff pattern:$0x73625140] }
0x1442   :  { %v3591_v56 = vpop.f32.mrf.mxu0 }
0x1443   :  { %v3592_v63 = vadd.f32 %v3591_v56, %v3559_v49 }
0x1445   :  { %v6532_v50 = vrot.slane %v3592_v63, 2  ;;  %v6534_v23 = vrot.slane %v3592_v63, 4  ;;  %v6536_v36 = vrot.slane %v3592_v63, 6  ;;  %3617 = vst [vmem:[#allocation1 + $0x20] ss:$4 sm:$0xff] %v3592_v63 }
0x1447   :  { %3647 = vst [vmem:[#allocation1] ss:$4 sm:$0xff] %v6532_v50 }
0x1448   :  { %3649 = vst [vmem:[#allocation1 + $0x1] ss:$4 sm:$0xff] %v6534_v23 }
0x1449   :  { %3651 = vst [vmem:[#allocation1 + $0x2] ss:$4 sm:$0xff] %v6536_v36 }
0x144a   :  { %v3594_v9 = vpop.f32.mrf.mxu0 }
0x144b   :  { %v3595_v14 = vadd.f32 %v3594_v9, %v3561_v54 }
0x144c   :  { %v3619_v18 = vld.sshfl [vmem:[#allocation1 + $0x20] sm:$0xff pattern:$0x73625140] }
0x144d   :  { %v3606_v25 = vrot.slane %v3595_v14, 2  ;;  %4374 = vmatpush.xpose.msk.msra.mxu1 %vm601_vm0, %v3619_v18  ;;  %3653 = vst [vmem:[#allocation1 + $0x3] ss:$4 sm:$0xff] %v3595_v14 }
0x144f   :  { %3655 = vst [vmem:[#allocation1 + $0x20] ss:$4 sm:$0xff] %v3606_v25 }
0x1451   :  { %4375 = vmatpush.xpose.msk.msra.mxu1 %vm601_vm0, %v3618_v39 }
0x1454   :  { %4376 = vmatmul.msk.f32.vlgmr.msra.gmra.mxu1 %vm601_vm0, %v6544_v42  ;;  %v3656_v59 = vld.sshfl [vmem:[#allocation1] sm:$0xff pattern:$0x73625140] }
0x1455   :  { %3707 = vst [vmem:[#allocation1] ss:$4 sm:$0xff] %v6517_v35 }
0x1456   :  { %v3657_v60 = vld.sshfl [vmem:[#allocation1 + $0x20] sm:$0xff pattern:$0x73625140]  ;;  %3709 = vst [vmem:[#allocation1 + $0x1] ss:$4 sm:$0xff] %v6520_v58 }
0x1457   :  { %4377 = vmatpush.xpose.msk.msra.mxu2 %vm601_vm0, %v3657_v60  ;;  %3715 = vst [vmem:[#allocation1 + $0x20] ss:$4 sm:$0xff] %v3592_v63 }
0x1458   :  { %3711 = vst [vmem:[#allocation1 + $0x2] ss:$4 sm:$0xff] %v6523_v30 }
0x1459   :  { %3713 = vst [vmem:[#allocation1 + $0x3] ss:$4 sm:$0xff] %v6526_v61 }
0x145b   :  { %4378 = vmatpush.xpose.msk.msra.mxu2 %vm601_vm0, %v3656_v59 }
0x145e   :  { %4379 = vmatmul.msk.f32.vlgmr.msra.gmra.mxu2 %vm601_vm0, %v3608_v16  ;;  %v3717_v7 = vld.sshfl [vmem:[#allocation1 + $0x20] sm:$0xff pattern:$0x73625140] }
0x145f   :  { %3720 = vrot.lane.b32.xlu2 %v3717_v7, %s5242_s20  ;;  %3756 = vst [vmem:[#allocation1 + $0x20] ss:$4 sm:$0xff] %v3606_v25 }
0x1460   :  { %v3716_v6 = vld.sshfl [vmem:[#allocation1] sm:$0xff pattern:$0x73625140] }
0x1461   :  { %3748 = vst [vmem:[#allocation1] ss:$4 sm:$0xff] %v6532_v50 }
0x1462   :  { %3750 = vst [vmem:[#allocation1 + $0x1] ss:$4 sm:$0xff] %v6534_v23 }
0x1463   :  { %3752 = vst [vmem:[#allocation1 + $0x2] ss:$4 sm:$0xff] %v6536_v36 }
0x1464   :  { %3754 = vst [vmem:[#allocation1 + $0x3] ss:$4 sm:$0xff] %v3595_v14 }
0x1466   :  { %v6559_v44 = vld.sshfl [vmem:[#allocation1 + $0x20] sm:$0xff pattern:$0x73625140] }
0x1467   :  { %3800 = vst [vmem:[#allocation1 + $0x20] ss:$4 sm:$0xff] %v3592_v63 }
0x146b   :  { %v6561_v5 = vld.sshfl [vmem:[#allocation1] sm:$0xff pattern:$0x73625140] }
0x146c   :  { %3792 = vst [vmem:[#allocation1] ss:$4 sm:$0xff] %v6517_v35 }
0x146d   :  { %3794 = vst [vmem:[#allocation1 + $0x1] ss:$4 sm:$0xff] %v6520_v58 }
0x146e   :  { %v3802_v46 = vld.sshfl [vmem:[#allocation1 + $0x20] sm:$0xff pattern:$0x73625140]  ;;  %3796 = vst [vmem:[#allocation1 + $0x2] ss:$4 sm:$0xff] %v6523_v30 }
0x146f   :  { %3844 = vst [vmem:[#allocation1 + $0x20] ss:$4 sm:$0xff] %v3606_v25 }
0x1470   :  { %3798 = vst [vmem:[#allocation1 + $0x3] ss:$4 sm:$0xff] %v6526_v61 }
0x1476   :  { %v3846_v17 = vld.sshfl [vmem:[#allocation1 + $0x20] sm:$0xff pattern:$0x73625140] }
0x1477   :  { %v6567_v15 = vld.sshfl [vmem:[#allocation1] sm:$0xff pattern:$0x73625140]  ;;  %3849 = vrot.lane.b32.xlu0 %v3846_v17, %s5244_s21  ;;  %3907 = vst [vmem:[#allocation1 + $0x20] ss:$4 sm:$0xff] %v3592_v63 }
0x1478   :  { %3836 = vst [vmem:[#allocation1] ss:$4 sm:$0xff] %v6532_v50 }
0x1479   :  { %3838 = vst [vmem:[#allocation1 + $0x1] ss:$4 sm:$0xff] %v6534_v23 }
0x147a   :  { %3840 = vst [vmem:[#allocation1 + $0x2] ss:$4 sm:$0xff] %v6536_v36 }
0x147b   :  { %3842 = vst [vmem:[#allocation1 + $0x3] ss:$4 sm:$0xff] %v3595_v14 }
0x147e   :  { %v6573_v47 = vld.sshfl [vmem:[#allocation1 + $0x20] sm:$0xff pattern:$0x73625140] }
0x147f   :  { %3948 = vst [vmem:[#allocation1 + $0x20] ss:$4 sm:$0xff] %v3606_v25 }
0x1482   :  { %v3845_v34 = vld.sshfl [vmem:[#allocation1] sm:$0xff pattern:$0x73625140] }
0x1483   :  { %3847 = vrot.lane.b32.xlu2 %v3845_v34, %s5244_s21  ;;  %3899 = vst [vmem:[#allocation1] ss:$4 sm:$0xff] %v6517_v35 }
0x1484   :  { %3901 = vst [vmem:[#allocation1 + $0x1] ss:$4 sm:$0xff] %v6520_v58 }
0x1485   :  { %3903 = vst [vmem:[#allocation1 + $0x2] ss:$4 sm:$0xff] %v6523_v30 }
0x1486   :  { %3905 = vst [vmem:[#allocation1 + $0x3] ss:$4 sm:$0xff] %v6526_v61  ;;  %v3950_v10 = vld.sshfl [vmem:[#allocation1 + $0x20] sm:$0xff pattern:$0x73625140] }
0x148b   :  { %3834 = vrot.lane.b32.xlu2 %v3833_v55, %s5244_s21 }
0x148d   :  { %v3908_v62 = vld.sshfl [vmem:[#allocation1] sm:$0xff pattern:$0x73625140] }
0x148e   :  { %3940 = vst [vmem:[#allocation1] ss:$4 sm:$0xff] %v6532_v50 }
0x148f   :  { %3942 = vst [vmem:[#allocation1 + $0x1] ss:$4 sm:$0xff] %v6534_v23 }
0x1490   :  { %3944 = vst [vmem:[#allocation1 + $0x2] ss:$4 sm:$0xff] %v6536_v36 }
0x1491   :  { %3946 = vst [vmem:[#allocation1 + $0x3] ss:$4 sm:$0xff] %v3595_v14 }
0x1493   :  { %3805 = vrot.lane.b32.xlu2 %v3802_v46, %s5244_s21 }
0x1498   :  { %v3949_v45 = vld.sshfl [vmem:[#allocation1] sm:$0xff pattern:$0x73625140] }
0x1499   :  { %4045 = vst [vmem:[#allocation1] ss:$9 sm:$0xff] %v523_v52 }
0x149a   :  { %4047 = vst [vmem:[#allocation1 + $0x1] ss:$9 sm:$0xff] %v523_v52  ;;  %v4625_v52 = vld [vmem:[%s5435_s9 + $0x8] sm:$0xff] }
0x14a1   :  { %v6585_v27 = vld [vmem:[#allocation1] sm:$0xff] }
0x14a2   :  { %4073 = vst [vmem:[#allocation1] ss:$9 sm:$0xff] %v526_v19 }
0x14a3   :  { %4075 = vst [vmem:[#allocation1 + $0x1] ss:$9 sm:$0xff] %v526_v19 }
0x14aa   :  { %v6587_v48 = vld [vmem:[#allocation1] sm:$0xff] }
0x14ab   :  { %4110 = vst [vmem:[#allocation1] ss:$9 sm:$0xff] %v6077_v43 }
0x14ac   :  { %4112 = vst [vmem:[#allocation1 + $0x1] ss:$9 sm:$0xff] %v6077_v43  ;;  %v3789_v43 = vperm.slane %v6544_v42, 0 }
0x14b9   :  { %v3721_v11 = vpop.permute.xlu2 %3720 }
0x14ba   :  { %4380 = vmatpush.msk.msra.mxu3 %vm931_vm2, %v3721_v11 }
0x14d1   :  { %v3644_v4 = vpop.f32.mrf.mxu1 }
0x14d2   :  { %v3685_v26 = vsel %vm1866_vm6, %v3644_v4, -inf }
0x14d3   :  { %3686 = vmax.xlane.f32.xlu1 %v3685_v26 }
0x14dd   :  { %v3848_v31 = vpop.permute.xlu2 %3847 }
0x14e1   :  { %v3682_v41 = vpop.f32.mrf.mxu2 }
0x14e2   :  { %v3688_v38 = vsel %vm1866_vm6, %v3682_v41, -inf }
0x14e3   :  { %3689 = vmax.xlane.f32.xlu2 %v3688_v38 }
0x14e5   :  { %v3835_v37 = vpop.permute.xlu2 %3834 }
0x14e9   :  { %v3850_v33 = vpop.permute.xlu0 %3849 }
0x14ec   :  { %3718 = vrot.lane.b32.xlu1 %v3716_v6, %s5242_s20 }
0x14ed   :  { %v3806_v20 = vpop.permute.xlu2 %3805 }
0x14ee   :  { %4384 = vmatpush.xpose.msk.msrb.mxu2 %vm601_vm0, %v3806_v20  ;;  %v521_v20 = vld [vmem:[#allocation30] sm:$0xff] }
0x14f4   :  { %3790 = vrot.lane.b32.xlu1 %v3789_v43, %s5244_s21 }
0x1546   :  { %v3687_v29 = vpop.xlane.xlu1 %3686 }
0x1547   :  { %v3691_v22 = vsub.f32 %v3644_v4, %v3687_v29 }
0x1549   :  { %v3693_v0 = vmul.f32 1.442695, %v3691_v22 }
0x154b   :  { %4592 = vpow2.f32 %v3693_v0 }
0x1551   :  { %v4593_v2 = vpop.eup %4592 }
0x1552   :  { %v3697_v21 = vsel %vm1866_vm6, %v4593_v2, 0.0 }
0x1553   :  { %3698 = vadd.xlane.f32.xlu0 %v3697_v21 }
0x1556   :  { %v3690_v24 = vpop.xlane.xlu2 %3689 }
0x1557   :  { %v3692_v8 = vsub.f32 %v3682_v41, %v3690_v24  ;;  %v520_v24 = vld [vmem:[#allocation28] sm:$0x1] }
0x1559   :  { %v3695_v32 = vmul.f32 1.442695, %v3692_v8 }
0x155b   :  { %4594 = vpow2.f32 %v3695_v32 }
0x155e   :  { %v3719_v28 = vpop.permute.xlu1 %3718 }
0x155f   :  { %3743 = vmatpush.msra.mxu3 %v3719_v28 }
0x1561   :  { %4387 = vmatpush.xpose.msk.msrb.mxu3 %vm601_vm0, %v3850_v33  ;;  %v4595_v12 = vpop.eup %4594 }
0x1562   :  { %v3700_v13 = vsel %vm1866_vm6, %v4595_v12, 0.0 }
0x1563   :  { %3701 = vadd.xlane.f32.xlu2 %v3700_v13  ;;  %v524_v13 = vld [vmem:[#allocation33] sm:$0xff] }
0x1565   :  { %4388 = vmatpush.xpose.msk.msrb.mxu3 %vm601_vm0, %v3848_v31 }
0x1566   :  { %v3791_v30 = vpop.permute.xlu1 %3790 }
0x1567   :  { %3803 = vrot.lane.b32.xlu0 %v6567_v15, %s5244_s21 }
0x157b   :  { %3953 = vrot.lane.b32.xlu2 %v3950_v10, %s5243_s22  ;;  %v519_v10 = vld [vmem:[#allocation27 + $0x8] sm:$0xff] }
0x1583   :  { %3951 = vrot.lane.b32.xlu2 %v3949_v45, %s5243_s22  ;;  %v4626_v45 = vld [vmem:[%s5435_s9] sm:$0xff] }
0x158b   :  { %3910 = vrot.lane.b32.xlu2 %v3908_v62, %s5243_s22  ;;  %v518_v62 = vld [vmem:[#allocation27] sm:$0xff] }
0x158c   :  { %4028 = vmatpush.msrb.mxu0 %v518_v62 }
0x15c6   :  { %v3699_v49 = vpop.xlane.xlu0 %3698 }
0x15c7   :  { %4596 = vrcp.f32 %v3699_v49 }
0x15cd   :  { %v4597_v3 = vpop.eup %4596 }
0x15ce   :  { %v3705_v40 = vmul.f32 %v4597_v3, %v4593_v2 }
0x15d0   :  { %4381 = vmatmul.msk.f32.vlgmr.msra.gmra.mxu3 %vm863_vm3, %v3705_v40 }
0x15d1   :  { %4002 = vmatpush.msra.mxu3 %v519_v10 }
0x15d6   :  { %v3702_v35 = vpop.xlane.xlu2 %3701 }
0x15d8   :  { %4389 = vmatmul.msk.f32.vlgmr.msrb.gmra.mxu3 %vm601_vm0, %v3835_v37  ;;  %v522_v37 = vld [vmem:[#allocation30 + $0x8] sm:$0xff] }
0x15d9   :  { %v3804_v58 = vpop.permute.xlu0 %3803  ;;  %4131 = vmatpush.msrb.mxu3 %v4625_v52 }
0x15da   :  { %4385 = vmatpush.xpose.msk.msrb.mxu2 %vm601_vm0, %v3804_v58 }
0x15db   :  { %4132 = vmatpush.msrb.mxu3 %v4626_v45 }
0x15dd   :  { %4386 = vmatmul.msk.f32.vlgmr.msrb.gmra.mxu2 %vm601_vm0, %v3791_v30 }
0x15de   :  { %v3954_v61 = vpop.permute.xlu2 %3953 }
0x15df   :  { %4392 = vmatpush.msk.msra.mxu2 %vm931_vm2, %v3954_v61 }
0x15e6   :  { %v3952_v56 = vpop.permute.xlu2 %3951 }
0x15e7   :  { %3976 = vmatpush.msra.mxu2 %v3952_v56 }
0x1653   :  { %v3745_v63 = vpop.f32.mrf.mxu3 }
0x165b   :  { %v3874_v50 = vpop.f32.mrf.mxu3 }
0x165c   :  { %v3880_v23 = vsel %vm1866_vm6, %v3874_v50, -inf }
0x165d   :  { %3881 = vmax.xlane.f32.xlu0 %v3880_v23 }
0x1660   :  { %v3830_v36 = vpop.f32.mrf.mxu2 }
0x1661   :  { %v3877_v39 = vsel %vm1866_vm6, %v3830_v36, -inf }
0x1662   :  { %3878 = vmax.xlane.f32.xlu1 %v3877_v39 }
0x167b   :  { %3761 = vrot.lane.b32.xlu1 %v6559_v44, %s5242_s20 }
0x1683   :  { %3912 = vrot.lane.b32.xlu1 %v6573_v47, %s5243_s22 }
0x16d0   :  { %v3882_v54 = vpop.xlane.xlu0 %3881 }
0x16d1   :  { %v3884_v51 = vsub.f32 %v3874_v50, %v3882_v54 }
0x16d3   :  { %v3887_v25 = vmul.f32 1.442695, %v3884_v51 }
0x16d5   :  { %v3879_v9 = vpop.xlane.xlu1 %3878 }
0x16d6   :  { %v3883_v14 = vsub.f32 %v3830_v36, %v3879_v9 }
0x16d8   :  { %v3885_v18 = vmul.f32 1.442695, %v3883_v14 }
0x16da   :  { %4598 = vpow2.f32 %v3885_v18 }
0x16db   :  { %4600 = vpow2.f32 %v3887_v25 }
0x16e0   :  { %v4599_v53 = vpop.eup %4598 }
0x16e1   :  { %v3889_v42 = vsel %vm1866_vm6, %v4599_v53, 0.0  ;;  %v4601_v59 = vpop.eup %4600 }
0x16e2   :  { %3890 = vadd.xlane.f32.xlu0 %v3889_v42  ;;  %v3892_v60 = vsel %vm1866_vm6, %v4601_v59, 0.0 }
0x16ea   :  { %3893 = vadd.xlane.f32.xlu0 %v3892_v60 }
0x16ed   :  { %v3762_v1 = vpop.permute.xlu1 %3761 }
0x16ee   :  { %4382 = vmatpush.msk.msrb.mxu1 %vm931_vm2, %v3762_v1 }
0x16f5   :  { %v3913_v47 = vpop.permute.xlu1 %3912 }
0x16fe   :  { %3759 = vrot.lane.b32.xlu0 %v6561_v5, %s5242_s20  ;;  %v3911_v5 = vpop.permute.xlu2 %3910 }
0x1755   :  { %v3891_v16 = vpop.xlane.xlu0 %3890 }
0x175d   :  { %v3894_v7 = vpop.xlane.xlu0 %3893 }
0x175e   :  { %4602 = vrcp.f32 %v3894_v7 }
0x175f   :  { %4604 = vrcp.f32 %v3702_v35 }
0x1760   :  { %4606 = vrcp.f32 %v3891_v16 }
0x1764   :  { %v4603_v6 = vpop.eup %4602 }
0x1765   :  { %v3898_v44 = vmul.f32 %v4603_v6, %v4601_v59  ;;  %v4605_v46 = vpop.eup %4604 }
0x1766   :  { %v3706_v17 = vmul.f32 %v4605_v46, %v4595_v12  ;;  %v4607_v34 = vpop.eup %4606  ;;  %v525_v12 = vld [vmem:[#allocation33 + $0x8] sm:$0xff] }
0x1767   :  { %4393 = vmatmul.msk.f32.vlgmr.msra.gmra.mxu2 %vm863_vm3, %v3898_v44  ;;  %v3897_v55 = vmul.f32 %v4607_v34, %v4599_v53 }
0x1768   :  { %4095 = vmatpush.msrb.mxu2 %v525_v12 }
0x176a   :  { %4096 = vmatpush.msrb.mxu2 %v524_v13 }
0x1770   :  { %v3760_v15 = vpop.permute.xlu0 %3759 }
0x1771   :  { %3784 = vmatpush.msrb.mxu1 %v3760_v15 }
0x1772   :  { %4383 = vmatmul.msk.f32.vlgmr.msrb.gmra.mxu1 %vm863_vm3, %v3706_v17 }
0x1773   :  { %4390 = vmatpush.msk.msra.mxu1 %vm931_vm2, %v3913_v47 }
0x1775   :  { %3935 = vmatpush.msra.mxu1 %v3911_v5 }
0x1777   :  { %4066 = vmatpush.msrb.mxu1 %v522_v37 }
0x1779   :  { %4067 = vmatpush.msrb.mxu1 %v521_v20 }
0x177a   :  { %4391 = vmatmul.msk.f32.vlgmr.msra.gmra.mxu1 %vm863_vm3, %v3897_v55 }
0x17ea   :  { %v3978_v26 = vpop.f32.mrf.mxu2 }
0x17eb   :  { %v3983_v31 = vrot.slane %v3978_v26, 7 }
0x17ef   :  { %v3786_v19 = vpop.f32.mrf.mxu1 }
0x17f0   :  { %v4009_v11 = vrot.slane %v3786_v19, 7 }
0x17f2   :  { %v4010_v4 = vsel %vm1642_vm5, %v4009_v11, %v3745_v63  ;;  %v4113_v63 = vld [vmem:[#allocation1] sm:$0xff] }
0x17f3   :  { %4395 = vmatmul.msk.f32.vlgmr.msrb.gmra.mxu0 %vm601_vm0, %v4010_v4 }
0x17f7   :  { %v3937_v41 = vpop.f32.mrf.mxu1 }
0x17f8   :  { %v3984_v38 = vsel %vm1642_vm5, %v3983_v31, %v3937_v41 }
0x17f9   :  { %4394 = vmatmul.msk.f32.vlgmr.msra.gmra.mxu3 %vm601_vm0, %v3984_v38 }
0x1870   :  { %v4030_v43 = vpop.f32.mrf.mxu0 }
0x187c   :  { %v4004_v29 = vpop.f32.mrf.mxu3 }
0x187d   :  { %v4031_v22 = vadd.f32 %v4030_v43, %v4004_v29 }
0x187f   :  { %v4034_v0 = vrot.slane %v4031_v22, 1  ;;  %v4036_v2 = vadd.f32 %v4031_v22, %v6500_v57 }
0x1881   :  { %v4037_v21 = vadd.f32 %v4034_v0, %v6500_v57  ;;  %v4038_v32 = vadd.f32 %v4036_v2, %v520_v24 }
0x1883   :  { %v4039_v8 = vadd.f32 %v4037_v21, %v520_v24 }
0x1885   :  { %v4042_v28 = vrot.slane %v4039_v8, 7 }
0x1887   :  { %v4043_v33 = vsel %vm1642_vm5, %v4042_v28, %v4038_v32 }
0x1888   :  { %4396 = vmatmul.msk.f32.vlgmr.msrb.gmra.mxu1 %vm679_vm1, %v4043_v33 }
0x1905   :  { %v4069_v49 = vpop.f32.mrf.mxu1 }
0x1906   :  { %v4070_v3 = vadd.f32 %v4069_v49, %v6585_v27 }
0x1908   :  { %4397 = vmatmul.msk.f32.vlgmr.msrb.gmra.mxu2 %vm679_vm1, %v4070_v3 }
0x198b   :  { %v4098_v40 = vpop.f32.mrf.mxu2 }
0x198c   :  { %v4099_v57 = vadd.f32 %v4098_v40, %v6587_v48 }
0x198e   :  { %v4102_v35 = vrot.slane %v4099_v57, 1  ;;  %v4104_v30 = vadd.f32 %v4099_v57, %v4038_v32 }
0x1990   :  { %v4105_v58 = vadd.f32 %v4102_v35, %v4039_v8 }
0x1992   :  { %v4108_v61 = vrot.slane %v4105_v58, 7 }
0x1994   :  { %v4109_v56 = vsel %vm1642_vm5, %v4108_v61, %v4104_v30 }
0x1995   :  { %4398 = vmatmul.msk.f32.vlgmr.msrb.gmra.mxu3 %vm679_vm1, %v4109_v56 }
0x1a18   :  { %v4134_v50 = vpop.f32.mrf.mxu3 }
0x1a19   :  { %v4135_v23 = vadd.f32 %v4134_v50, %v4113_v63 }
0x1a1b   :  { %v4138_v36 = vrot.slane %v4135_v23, 1  ;;  %v4140_v39 = vsub.f32 0.0, %v4135_v23 }
0x1a1d   :  { %v4141_v54 = vsub.f32 0.0, %v4138_v36  ;;  %v4142_v27 = vmul.f32 1.442695, %v4140_v39 }
0x1a1f   :  { %4608 = vpow2.f32 %v4142_v27  ;;  %v4144_v9 = vmul.f32 1.442695, %v4141_v54 }
0x1a21   :  { %4610 = vpow2.f32 %v4144_v9 }
0x1a25   :  { %v4609_v14 = vpop.eup %4608 }
0x1a26   :  { %v4146_v48 = vadd.f32 1.0, %v4609_v14 }
0x1a27   :  { %v4611_v51 = vpop.eup %4610 }
0x1a28   :  { %v4147_v18 = vadd.f32 1.0, %v4611_v51  ;;  %4612 = vrcp.f32 %v4146_v48  ;;  %v4159_v1 = vand.u32 2147483648, %v4146_v48  ;;  %v4157_v7 = vand.u32 2147483647, %v4146_v48 }
0x1a29   :  { %vm4153_vm2 = vweird.f32 %v4146_v48 }
0x1a2a   :  { %4614 = vrcp.f32 %v4147_v18  ;;  %v4174_v44 = vand.u32 2147483648, %v4147_v18  ;;  %v4172_v15 = vand.u32 2147483647, %v4147_v18  ;;  %v4160_v47 = vor.u32 1.1754944e-38, %v4159_v1 }
0x1a2b   :  { %vm4158_vm5 = vcmp.eq.f32.partialorder %v4157_v7, 8.507059e+37  ;;  %vm4168_vm6 = vweird.f32 %v4147_v18 }
0x1a2c   :  { %v4175_v62 = vor.u32 1.1754944e-38, %v4174_v44  ;;  %vm4173_vm8 = vcmp.eq.f32.partialorder %v4172_v15, 8.507059e+37 }
0x1a2e   :  { %v4613_v25 = vpop.eup %4612 }
0x1a2f   :  { %v4149_v53 = vmul.f32 %v4613_v25, %v4146_v48  ;;  %vm4154_vm1 = vweird.f32 %v4613_v25 }
0x1a30   :  { %v4615_v42 = vpop.eup %4614  ;;  %vm4155_vm4 = vmor %vm4153_vm2, %vm4154_vm1 }
0x1a31   :  { %v4150_v59 = vsub.f32 1.0, %v4149_v53  ;;  %v4164_v60 = vmul.f32 %v4615_v42, %v4147_v18  ;;  %vm4169_vm3 = vweird.f32 %v4615_v42 }
0x1a32   :  { %vm4170_vm7 = vmor %vm4168_vm6, %vm4169_vm3 }
0x1a33   :  { %v4151_v16 = vmul.f32 %v4613_v25, %v4150_v59  ;;  %v4165_v6 = vsub.f32 1.0, %v4164_v60 }
0x1a35   :  { %v4152_v46 = vadd.f32 %v4613_v25, %v4151_v16  ;;  %v4166_v17 = vmul.f32 %v4615_v42, %v4165_v6 }
0x1a37   :  { %v4156_v5 = vsel %vm4155_vm4, %v4613_v25, %v4152_v46  ;;  %v4167_v34 = vadd.f32 %v4615_v42, %v4166_v17 }
0x1a38   :  { %v4161_v55 = vsel %vm4158_vm5, %v4160_v47, %v4156_v5 }
0x1a39   :  { %v4171_v10 = vsel %vm4170_vm7, %v4615_v42, %v4167_v34  ;;  %v4180_v52 = vperm.slane %v4161_v55, 0 }
0x1a3a   :  { %v4176_v45 = vsel %vm4173_vm8, %v4175_v62, %v4171_v10 }
0x1a3b   :  { %v4181_v19 = vperm.slane %v4176_v45, 0  ;;  %4184 = vst.msk [vmem:[%s5450_s8] sm:$0xff] %vm601_vm0, %v4180_v52 }
0x1a3c   :  { %4185 = vst.msk [vmem:[%s5450_s8 + $0x8] sm:$0x3] %vm2368_vm15, %v4180_v52 }
0x1a3d   :  { %4186 = vst.msk [vmem:[%s5450_s8 + $0x10] sm:$0xff] %vm601_vm0, %v4181_v19 }
0x1a3e   :  { %4187 = vst.msk [vmem:[%s5450_s8 + $0x18] sm:$0x3] %vm2368_vm15, %v4181_v19 }
0x1a3f   :  { %4196 = vsyncpa [#allocation3], 1 }
0x1a40   :  { %4197 = vsyncpa [#allocation5], 1 }
0x1a41   :  { %4198 = vsyncpa [#allocation8], 1 }
0x1a42   :  { %4199 = vsyncpa [#allocation11], 1 }
0x1a43   :  { %4200 = vsyncpa [#allocation14], 1 }
0x1a44   :  { %4201 = vsyncpa [#allocation17], 1 }
0x1a45   :  { %4202 = vsyncpa [#allocation20], 1 }
0x1a46   :  { %4203 = vsyncpa [#allocation23], 1 }
0x1a47   :  { %4204 = vsyncpa [#allocation26], 1 }
0x1a48   :  { %4205 = vsyncpa [#allocation29], 1 }
0x1a49   :  { %4206 = vsyncpa [#allocation32], 1 }
0x1a4a   :  { %4207 = vsyncpa [#allocation35], 1 }

</bundles_post_ra>
